<compile_context>
chip_gen: v5e
topology: v5e:2x2
jax: 0.10.0
libtpu: 0.0.40
codegen_flags: <defaults>
</compile_context>

<pallas_src>
import functools

import jax
import jax.numpy as jnp
from jax import lax
from jax.experimental import pallas as pl
from jax.experimental.pallas import tpu as pltpu

EPS = 1e-5  # PyTorch InstanceNorm2d default


# ---------------------------------------------------------------- kernel helpers
def _reflect_pad_into(pad_ref, x):
    """Write a ReflectionPad2d(1) copy of x (H,W,C) into pad_ref (H+2,W+2,C).

    All stores use static slices and are built from the source value only (no
    read-back of the scratch), so the pad phase carries no RAW dependency on
    itself.  `x` must already be in the scratch's dtype (cast once by caller).
    """
    H, W, _ = x.shape
    pad_ref[1:H + 1, 1:W + 1, :] = x                       # interior
    pad_ref[0:1, 1:W + 1, :] = x[1:2]                      # top row    -> x row 1
    pad_ref[H + 1:H + 2, 1:W + 1, :] = x[H - 2:H - 1]      # bottom row -> x row H-2
    # Halo columns incl. corners, straight from x: padded col 0 is the
    # H-reflection of x[:, 1]; padded col W+1 is that of x[:, W-2].
    left = jnp.concatenate(
        [x[1:2, 1:2], x[:, 1:2], x[H - 2:H - 1, 1:2]], axis=0)
    right = jnp.concatenate(
        [x[1:2, W - 2:W - 1], x[:, W - 2:W - 1], x[H - 2:H - 1, W - 2:W - 1]],
        axis=0)
    pad_ref[:, 0:1, :] = left
    pad_ref[:, W + 1:W + 2, :] = right


def _conv3x3(pad_ref, w_ref):
    """3x3 VALID conv over the padded scratch Ref (H+2,W+2,C); f32 accumulation.

    Each tap is a static offset slice of the Ref itself (offset vector loads in
    the scratch's compute dtype) feeding an MXU matmul with f32 accumulation.
    """
    Hp, Wp, _ = pad_ref.shape
    H, W = Hp - 2, Wp - 2
    acc = None
    for ky in range(3):
        for kx in range(3):
            patch = pad_ref[ky:ky + H, kx:kx + W, :]        # compute-dtype load
            part = jnp.einsum("hwc,cd->hwd", patch, w_ref[ky, kx],
                              preferred_element_type=jnp.float32)
            acc = part if acc is None else acc + part
    # TODO(synk): replace the 8 f32 accumulator adds with one long-K im2col
    #             matmul (K=9C; MRB in-place accumulation on v7x) once unaligned
    #             lane concatenation is verified on the target Mosaic build.
    return acc


def _instance_norm(y, one_pass):
    """Per-channel mean/var over spatial dims (biased var, eps=1e-5), f32 math."""
    mean = jnp.mean(y, axis=(0, 1), keepdims=True)
    if one_pass:
        # Single traversal: var = E[y^2] - mean^2 (fine post-conv; bf16 path).
        var = jnp.maximum(
            jnp.mean(y * y, axis=(0, 1), keepdims=True) - mean * mean, 0.0)
    else:
        # Two-pass form kept for the strict f32 path (no cancellation risk).
        var = jnp.mean(jnp.square(y - mean), axis=(0, 1), keepdims=True)
    return (y - mean) * lax.rsqrt(var + EPS)


# ------------------------------------------------------------------ fused kernel
def resnet_block_kernel(x_ref, w1_ref, w2_ref, o_ref, pad_ref, *,
                        compute_dtype, one_pass_stats):
    """Whole ResnetBlock forward for one batch element, entirely in VMEM.

    Conv biases are intentionally absent: bias before InstanceNorm(affine=False)
    is exactly cancelled by the mean subtraction.
    """
    x = x_ref[0]                                           # (H, W, C), input dtype

    # ---- reflect-pad -> conv1 -> InstanceNorm -> ReLU (h never leaves VMEM)
    _reflect_pad_into(pad_ref, x.astype(compute_dtype))
    h = jnp.maximum(_instance_norm(_conv3x3(pad_ref, w1_ref), one_pass_stats), 0.0)

    # ---- reflect-pad(h) -> conv2 -> InstanceNorm (scratch reused)
    _reflect_pad_into(pad_ref, h.astype(compute_dtype))
    y2 = _instance_norm(_conv3x3(pad_ref, w2_ref), one_pass_stats)

    # ---- skip connection (f32 add, cast once on store)
    o_ref[0] = (x.astype(jnp.float32) + y2).astype(o_ref.dtype)


# ---------------------------------------------------------------- pallas wrapper
def _vmem_limit_bytes(H, W, C, in_dtype, compute_dtype):
    """Footprint-based scoped-VMEM request, capped at ~85% of physical VMEM."""
    in_b = jnp.dtype(in_dtype).itemsize
    cd_b = jnp.dtype(compute_dtype).itemsize
    tile = H * W * C
    est = (4 * tile * in_b                          # x + out, double-buffered
           + (H + 2) * (W + 2) * C * cd_b           # pad scratch (compute dtype)
           + 2 * 9 * C * C * cd_b                   # w1 + w2 (resident)
           + 6 * tile * 4)                          # f32 temporaries (acc, h, y2)
    request = max(2 * est, 32 << 20)
    try:
        phys = int(pltpu.get_tpu_info().vmem_capacity_bytes)
    except Exception:                               # conservative fallback (v7x-sized)
        phys = 64 << 20
    cap = (phys * 85) // 100                        # leave Mosaic-scratch headroom
    return int(min(request, cap))


@functools.partial(jax.jit, static_argnames=("compute_dtype",))
def resnet_block_nhwc(x, w1, b1, w2, b2, *, compute_dtype=None):
    """x: (B,H,W,C) NHWC.  w*: (3,3,C,C) HWIO.  b*: (C,).  Returns (B,H,W,C).

    b1/b2 are accepted for PyTorch API parity but are mathematically no-ops
    (bias before InstanceNorm2d(affine=False) cancels), so they are not passed
    to the kernel.  For best MXU throughput on v6e/v7x pass
    compute_dtype=jnp.bfloat16 even for f32 inputs (statistics, accumulation and
    the skip-add stay f32).
    """
    del b1, b2  # exactly cancelled by the affine-free InstanceNorm
    B, H, W, C = x.shape
    if H < 2 or W < 2:
        raise ValueError("ReflectionPad2d(1) needs H, W >= 2")
    cdt = jnp.dtype(compute_dtype) if compute_dtype is not None else jnp.dtype(x.dtype)

    kernel = functools.partial(resnet_block_kernel, compute_dtype=cdt,
                               one_pass_stats=bool(cdt != jnp.dtype(jnp.float32)))
    return pl.pallas_call(
        kernel,
        out_shape=jax.ShapeDtypeStruct((B, H, W, C), x.dtype),
        grid_spec=pltpu.PrefetchScalarGridSpec(
            num_scalar_prefetch=0,
            grid=(B,),
            in_specs=[
                pl.BlockSpec((1, H, W, C), lambda i: (i, 0, 0, 0)),
                pl.BlockSpec((3, 3, C, C), lambda i: (0, 0, 0, 0)),
                pl.BlockSpec((3, 3, C, C), lambda i: (0, 0, 0, 0)),
            ],
            out_specs=pl.BlockSpec((1, H, W, C), lambda i: (i, 0, 0, 0)),
            # One reused compute-dtype scratch holds the reflection-padded tile
            # for both convs.
            scratch_shapes=[pltpu.VMEM((H + 2, W + 2, C), cdt)],
        ),
        compiler_params=pltpu.CompilerParams(
            dimension_semantics=("parallel",),
            vmem_limit_bytes=_vmem_limit_bytes(H, W, C, x.dtype, cdt),
        ),
    )(x, w1.astype(cdt), w2.astype(cdt))


@functools.partial(jax.jit, static_argnames=("compute_dtype",))
def resnet_block(x_nchw, w1, b1, w2, b2, *, compute_dtype=None):
    """PyTorch-layout entry point: x (B,C,H,W) -> (B,C,H,W); internally NHWC."""
    x = jnp.transpose(x_nchw, (0, 2, 3, 1))                # NCHW -> NHWC
    out = resnet_block_nhwc(x, w1, b1, w2, b2, compute_dtype=compute_dtype)
    return jnp.transpose(out, (0, 3, 1, 2))                # NHWC -> NCHW


# ----------------------------------------------------------- pure-JAX reference
def _reference(x_nchw, w1, b1, w2, b2):
    x = jnp.transpose(x_nchw, (0, 2, 3, 1)).astype(jnp.float32)
    dn = ("NHWC", "HWIO", "NHWC")

    def pad(t):
        return jnp.pad(t, ((0, 0), (1, 1), (1, 1), (0, 0)), mode="reflect")

    def conv_in(inp, w, b):
        y = lax.conv_general_dilated(pad(inp), w.astype(jnp.float32), (1, 1),
                                     "VALID", dimension_numbers=dn)
        y = y + b.reshape(1, 1, 1, -1).astype(jnp.float32)   # bias kept here on purpose
        mean = jnp.mean(y, axis=(1, 2), keepdims=True)
        var = jnp.mean((y - mean) ** 2, axis=(1, 2), keepdims=True)
        return (y - mean) * lax.rsqrt(var + EPS)

    h = jnp.maximum(conv_in(x, w1, b1), 0.0)
    out = x + conv_in(h, w2, b2)
    return jnp.transpose(out, (0, 3, 1, 2))


# ------------------------------------------------------------------------ main
if __name__ == "__main__":
    B, C, H, W = 2, 4, 16, 16   # small synthetic shapes, NCHW like PyTorch
    key = jax.random.PRNGKey(0)
    kx, kw1, kb1, kw2, kb2 = jax.random.split(key, 5)

    x = jax.random.normal(kx, (B, C, H, W), dtype=jnp.float32)
    w1 = jax.random.normal(kw1, (3, 3, C, C), dtype=jnp.float32) * 0.1
    b1 = jax.random.normal(kb1, (C,), dtype=jnp.float32) * 0.1
    w2 = jax.random.normal(kw2, (3, 3, C, C), dtype=jnp.float32) * 0.1
    b2 = jax.random.normal(kb2, (C,), dtype=jnp.float32) * 0.1

    ref = _reference(x, w1, b1, w2, b2)

    # float32 path: strict check against the PyTorch-equivalent reference
    # (also validates that dropping the pre-norm bias is a numerical no-op).
    out = jax.block_until_ready(resnet_block(x, w1, b1, w2, b2))
    assert out.shape == (B, C, H, W)
    assert jnp.allclose(out, ref, atol=1e-4, rtol=1e-4), "f32 mismatch vs reference"

    # bf16 MXU fast path: bf16 pad scratch / matmul operands, f32 accumulation,
    # one-pass InstanceNorm statistics.
    out_bf16 = jax.block_until_ready(
        resnet_block(x.astype(jnp.bfloat16), w1, b1, w2, b2,
                     compute_dtype=jnp.bfloat16))
    assert out_bf16.shape == (B, C, H, W)
    assert out_bf16.dtype == jnp.bfloat16
    assert jnp.allclose(out_bf16.astype(jnp.float32), ref, atol=2.5e-1, rtol=1e-1), \
        "bf16 mismatch vs reference"

    print("KERNEL_OK")
</pallas_src>

<mosaic_0001>
module attributes {stable_mosaic.version = 11 : i64} {
  func.func @resnet_block_kernel(%arg0: i32, %arg1: memref<1x16x16x4xf32, #tpu.memory_space<vmem>>, %arg2: memref<3x3x4x4xf32, #tpu.memory_space<vmem>>, %arg3: memref<3x3x4x4xf32, #tpu.memory_space<vmem>>, %arg4: memref<1x16x16x4xf32, #tpu.memory_space<vmem>>, %arg5: memref<18x18x4xf32, #tpu.memory_space<vmem>>) attributes {dimension_semantics = [#tpu.dimension_semantics<parallel>], iteration_bounds = array<i64: 2>, scalar_prefetch = 0 : i64, scratch_operands = 1 : i64, tpu.core_type = #tpu.core_type<tc>, window_params = [{transform_indices = @transform_0, window_bounds = array<i64: 1, 16, 16, 4>}, {pipeline_mode = #tpu.pipeline_mode<synchronous>, transform_indices = @transform_1, window_bounds = array<i64: 3, 3, 4, 4>}, {pipeline_mode = #tpu.pipeline_mode<synchronous>, transform_indices = @transform_2, window_bounds = array<i64: 3, 3, 4, 4>}, {transform_indices = @transform_3, window_bounds = array<i64: 1, 16, 16, 4>}]} {
    %c0 = arith.constant 0 : index
    %c0_0 = arith.constant 0 : index
    %c0_1 = arith.constant 0 : index
    %c0_2 = arith.constant 0 : index
    %0 = vector.load %arg1[%c0, %c0_0, %c0_1, %c0_2] : memref<1x16x16x4xf32, #tpu.memory_space<vmem>>, vector<1x16x16x4xf32>
    %1 = vector.shape_cast %0 : vector<1x16x16x4xf32> to vector<16x16x4xf32>
    %c1 = arith.constant 1 : index
    %c1_3 = arith.constant 1 : index
    %c0_4 = arith.constant 0 : index
    %2 = vector.load %arg5[%c1, %c1_3, %c0_4] : memref<18x18x4xf32, #tpu.memory_space<vmem>>, vector<16x16x4xf32>
    tpu.vector_store %arg5[%c1, %c1_3, %c0_4], %1 {strides = array<i32>} : memref<18x18x4xf32, #tpu.memory_space<vmem>>, vector<16x16x4xf32>,
    %3 = vector.extract_strided_slice %1 {offsets = [1, 0, 0], sizes = [1, 16, 4], strides = [1, 1, 1]} : vector<16x16x4xf32> to vector<1x16x4xf32>
    %c0_5 = arith.constant 0 : index
    %c1_6 = arith.constant 1 : index
    %c0_7 = arith.constant 0 : index
    %4 = vector.load %arg5[%c0_5, %c1_6, %c0_7] : memref<18x18x4xf32, #tpu.memory_space<vmem>>, vector<1x16x4xf32>
    tpu.vector_store %arg5[%c0_5, %c1_6, %c0_7], %3 {strides = array<i32>} : memref<18x18x4xf32, #tpu.memory_space<vmem>>, vector<1x16x4xf32>,
    %5 = vector.extract_strided_slice %1 {offsets = [14, 0, 0], sizes = [1, 16, 4], strides = [1, 1, 1]} : vector<16x16x4xf32> to vector<1x16x4xf32>
    %c17 = arith.constant 17 : index
    %c1_8 = arith.constant 1 : index
    %c0_9 = arith.constant 0 : index
    %6 = vector.load %arg5[%c17, %c1_8, %c0_9] : memref<18x18x4xf32, #tpu.memory_space<vmem>>, vector<1x16x4xf32>
    tpu.vector_store %arg5[%c17, %c1_8, %c0_9], %5 {strides = array<i32>} : memref<18x18x4xf32, #tpu.memory_space<vmem>>, vector<1x16x4xf32>,
    %7 = vector.extract_strided_slice %1 {offsets = [1, 1, 0], sizes = [1, 1, 4], strides = [1, 1, 1]} : vector<16x16x4xf32> to vector<1x1x4xf32>
    %8 = vector.extract_strided_slice %1 {offsets = [0, 1, 0], sizes = [16, 1, 4], strides = [1, 1, 1]} : vector<16x16x4xf32> to vector<16x1x4xf32>
    %9 = vector.extract_strided_slice %1 {offsets = [14, 1, 0], sizes = [1, 1, 4], strides = [1, 1, 1]} : vector<16x16x4xf32> to vector<1x1x4xf32>
    %10 = tpu.concatenate %7, %8, %9 in 0 : vector<1x1x4xf32>, vector<16x1x4xf32>, vector<1x1x4xf32> -> vector<18x1x4xf32>
    %11 = vector.extract_strided_slice %1 {offsets = [1, 14, 0], sizes = [1, 1, 4], strides = [1, 1, 1]} : vector<16x16x4xf32> to vector<1x1x4xf32>
    %12 = vector.extract_strided_slice %1 {offsets = [0, 14, 0], sizes = [16, 1, 4], strides = [1, 1, 1]} : vector<16x16x4xf32> to vector<16x1x4xf32>
    %13 = vector.extract_strided_slice %1 {offsets = [14, 14, 0], sizes = [1, 1, 4], strides = [1, 1, 1]} : vector<16x16x4xf32> to vector<1x1x4xf32>
    %14 = tpu.concatenate %11, %12, %13 in 0 : vector<1x1x4xf32>, vector<16x1x4xf32>, vector<1x1x4xf32> -> vector<18x1x4xf32>
    %c0_10 = arith.constant 0 : index
    %c0_11 = arith.constant 0 : index
    %c0_12 = arith.constant 0 : index
    %15 = vector.load %arg5[%c0_10, %c0_11, %c0_12] : memref<18x18x4xf32, #tpu.memory_space<vmem>>, vector<18x1x4xf32>
    tpu.vector_store %arg5[%c0_10, %c0_11, %c0_12], %10 {strides = array<i32>} : memref<18x18x4xf32, #tpu.memory_space<vmem>>, vector<18x1x4xf32>,
    %c0_13 = arith.constant 0 : index
    %c17_14 = arith.constant 17 : index
    %c0_15 = arith.constant 0 : index
    %16 = vector.load %arg5[%c0_13, %c17_14, %c0_15] : memref<18x18x4xf32, #tpu.memory_space<vmem>>, vector<18x1x4xf32>
    tpu.vector_store %arg5[%c0_13, %c17_14, %c0_15], %14 {strides = array<i32>} : memref<18x18x4xf32, #tpu.memory_space<vmem>>, vector<18x1x4xf32>,
    %c0_16 = arith.constant 0 : index
    %c0_17 = arith.constant 0 : index
    %c0_18 = arith.constant 0 : index
    %17 = vector.load %arg5[%c0_16, %c0_17, %c0_18] : memref<18x18x4xf32, #tpu.memory_space<vmem>>, vector<16x16x4xf32>
    %c0_19 = arith.constant 0 : index
    %c0_20 = arith.constant 0 : index
    %c0_21 = arith.constant 0 : index
    %c0_22 = arith.constant 0 : index
    %18 = vector.load %arg2[%c0_19, %c0_20, %c0_21, %c0_22] : memref<3x3x4x4xf32, #tpu.memory_space<vmem>>, vector<1x1x4x4xf32>
    %19 = vector.shape_cast %18 : vector<1x1x4x4xf32> to vector<4x4xf32>
    "tpu.trace_start"() <{level = 10 : i32, message = "hwc,cd->hwd"}> : () -> ()
    %cst = arith.constant dense<0.000000e+00> : vector<16x16x4xf32>
    %20 = tpu.matmul %17, %19, %cst {dimension_numbers = #tpu.dot_dimension_numbers<[2], [0], [0, 1], [1], [0, 0, 0, 1, 1, 1], [], []>} : vector<16x16x4xf32>, vector<4x4xf32>, vector<16x16x4xf32> -> vector<16x16x4xf32>
    "tpu.trace_stop"() : () -> ()
    %c0_23 = arith.constant 0 : index
    %c1_24 = arith.constant 1 : index
    %c0_25 = arith.constant 0 : index
    %21 = vector.load %arg5[%c0_23, %c1_24, %c0_25] : memref<18x18x4xf32, #tpu.memory_space<vmem>>, vector<16x16x4xf32>
    %c0_26 = arith.constant 0 : index
    %c1_27 = arith.constant 1 : index
    %c0_28 = arith.constant 0 : index
    %c0_29 = arith.constant 0 : index
    %22 = vector.load %arg2[%c0_26, %c1_27, %c0_28, %c0_29] : memref<3x3x4x4xf32, #tpu.memory_space<vmem>>, vector<1x1x4x4xf32>
    %23 = vector.shape_cast %22 : vector<1x1x4x4xf32> to vector<4x4xf32>
    "tpu.trace_start"() <{level = 10 : i32, message = "hwc,cd->hwd"}> : () -> ()
    %cst_30 = arith.constant dense<0.000000e+00> : vector<16x16x4xf32>
    %24 = tpu.matmul %21, %23, %cst_30 {dimension_numbers = #tpu.dot_dimension_numbers<[2], [0], [0, 1], [1], [0, 0, 0, 1, 1, 1], [], []>} : vector<16x16x4xf32>, vector<4x4xf32>, vector<16x16x4xf32> -> vector<16x16x4xf32>
    "tpu.trace_stop"() : () -> ()
    %25 = arith.addf %20, %24 : vector<16x16x4xf32>
    %c0_31 = arith.constant 0 : index
    %c2 = arith.constant 2 : index
    %c0_32 = arith.constant 0 : index
    %26 = vector.load %arg5[%c0_31, %c2, %c0_32] : memref<18x18x4xf32, #tpu.memory_space<vmem>>, vector<16x16x4xf32>
    %c0_33 = arith.constant 0 : index
    %c2_34 = arith.constant 2 : index
    %c0_35 = arith.constant 0 : index
    %c0_36 = arith.constant 0 : index
    %27 = vector.load %arg2[%c0_33, %c2_34, %c0_35, %c0_36] : memref<3x3x4x4xf32, #tpu.memory_space<vmem>>, vector<1x1x4x4xf32>
    %28 = vector.shape_cast %27 : vector<1x1x4x4xf32> to vector<4x4xf32>
    "tpu.trace_start"() <{level = 10 : i32, message = "hwc,cd->hwd"}> : () -> ()
    %cst_37 = arith.constant dense<0.000000e+00> : vector<16x16x4xf32>
    %29 = tpu.matmul %26, %28, %cst_37 {dimension_numbers = #tpu.dot_dimension_numbers<[2], [0], [0, 1], [1], [0, 0, 0, 1, 1, 1], [], []>} : vector<16x16x4xf32>, vector<4x4xf32>, vector<16x16x4xf32> -> vector<16x16x4xf32>
    "tpu.trace_stop"() : () -> ()
    %30 = arith.addf %25, %29 : vector<16x16x4xf32>
    %c1_38 = arith.constant 1 : index
    %c0_39 = arith.constant 0 : index
    %c0_40 = arith.constant 0 : index
    %31 = vector.load %arg5[%c1_38, %c0_39, %c0_40] : memref<18x18x4xf32, #tpu.memory_space<vmem>>, vector<16x16x4xf32>
    %c1_41 = arith.constant 1 : index
    %c0_42 = arith.constant 0 : index
    %c0_43 = arith.constant 0 : index
    %c0_44 = arith.constant 0 : index
    %32 = vector.load %arg2[%c1_41, %c0_42, %c0_43, %c0_44] : memref<3x3x4x4xf32, #tpu.memory_space<vmem>>, vector<1x1x4x4xf32>
    %33 = vector.shape_cast %32 : vector<1x1x4x4xf32> to vector<4x4xf32>
    "tpu.trace_start"() <{level = 10 : i32, message = "hwc,cd->hwd"}> : () -> ()
    %cst_45 = arith.constant dense<0.000000e+00> : vector<16x16x4xf32>
    %34 = tpu.matmul %31, %33, %cst_45 {dimension_numbers = #tpu.dot_dimension_numbers<[2], [0], [0, 1], [1], [0, 0, 0, 1, 1, 1], [], []>} : vector<16x16x4xf32>, vector<4x4xf32>, vector<16x16x4xf32> -> vector<16x16x4xf32>
    "tpu.trace_stop"() : () -> ()
    %35 = arith.addf %30, %34 : vector<16x16x4xf32>
    %c1_46 = arith.constant 1 : index
    %c1_47 = arith.constant 1 : index
    %c0_48 = arith.constant 0 : index
    %36 = vector.load %arg5[%c1_46, %c1_47, %c0_48] : memref<18x18x4xf32, #tpu.memory_space<vmem>>, vector<16x16x4xf32>
    %c1_49 = arith.constant 1 : index
    %c1_50 = arith.constant 1 : index
    %c0_51 = arith.constant 0 : index
    %c0_52 = arith.constant 0 : index
    %37 = vector.load %arg2[%c1_49, %c1_50, %c0_51, %c0_52] : memref<3x3x4x4xf32, #tpu.memory_space<vmem>>, vector<1x1x4x4xf32>
    %38 = vector.shape_cast %37 : vector<1x1x4x4xf32> to vector<4x4xf32>
    "tpu.trace_start"() <{level = 10 : i32, message = "hwc,cd->hwd"}> : () -> ()
    %cst_53 = arith.constant dense<0.000000e+00> : vector<16x16x4xf32>
    %39 = tpu.matmul %36, %38, %cst_53 {dimension_numbers = #tpu.dot_dimension_numbers<[2], [0], [0, 1], [1], [0, 0, 0, 1, 1, 1], [], []>} : vector<16x16x4xf32>, vector<4x4xf32>, vector<16x16x4xf32> -> vector<16x16x4xf32>
    "tpu.trace_stop"() : () -> ()
    %40 = arith.addf %35, %39 : vector<16x16x4xf32>
    %c1_54 = arith.constant 1 : index
    %c2_55 = arith.constant 2 : index
    %c0_56 = arith.constant 0 : index
    %41 = vector.load %arg5[%c1_54, %c2_55, %c0_56] : memref<18x18x4xf32, #tpu.memory_space<vmem>>, vector<16x16x4xf32>
    %c1_57 = arith.constant 1 : index
    %c2_58 = arith.constant 2 : index
    %c0_59 = arith.constant 0 : index
    %c0_60 = arith.constant 0 : index
    %42 = vector.load %arg2[%c1_57, %c2_58, %c0_59, %c0_60] : memref<3x3x4x4xf32, #tpu.memory_space<vmem>>, vector<1x1x4x4xf32>
    %43 = vector.shape_cast %42 : vector<1x1x4x4xf32> to vector<4x4xf32>
    "tpu.trace_start"() <{level = 10 : i32, message = "hwc,cd->hwd"}> : () -> ()
    %cst_61 = arith.constant dense<0.000000e+00> : vector<16x16x4xf32>
    %44 = tpu.matmul %41, %43, %cst_61 {dimension_numbers = #tpu.dot_dimension_numbers<[2], [0], [0, 1], [1], [0, 0, 0, 1, 1, 1], [], []>} : vector<16x16x4xf32>, vector<4x4xf32>, vector<16x16x4xf32> -> vector<16x16x4xf32>
    "tpu.trace_stop"() : () -> ()
    %45 = arith.addf %40, %44 : vector<16x16x4xf32>
    %c2_62 = arith.constant 2 : index
    %c0_63 = arith.constant 0 : index
    %c0_64 = arith.constant 0 : index
    %46 = vector.load %arg5[%c2_62, %c0_63, %c0_64] : memref<18x18x4xf32, #tpu.memory_space<vmem>>, vector<16x16x4xf32>
    %c2_65 = arith.constant 2 : index
    %c0_66 = arith.constant 0 : index
    %c0_67 = arith.constant 0 : index
    %c0_68 = arith.constant 0 : index
    %47 = vector.load %arg2[%c2_65, %c0_66, %c0_67, %c0_68] : memref<3x3x4x4xf32, #tpu.memory_space<vmem>>, vector<1x1x4x4xf32>
    %48 = vector.shape_cast %47 : vector<1x1x4x4xf32> to vector<4x4xf32>
    "tpu.trace_start"() <{level = 10 : i32, message = "hwc,cd->hwd"}> : () -> ()
    %cst_69 = arith.constant dense<0.000000e+00> : vector<16x16x4xf32>
    %49 = tpu.matmul %46, %48, %cst_69 {dimension_numbers = #tpu.dot_dimension_numbers<[2], [0], [0, 1], [1], [0, 0, 0, 1, 1, 1], [], []>} : vector<16x16x4xf32>, vector<4x4xf32>, vector<16x16x4xf32> -> vector<16x16x4xf32>
    "tpu.trace_stop"() : () -> ()
    %50 = arith.addf %45, %49 : vector<16x16x4xf32>
    %c2_70 = arith.constant 2 : index
    %c1_71 = arith.constant 1 : index
    %c0_72 = arith.constant 0 : index
    %51 = vector.load %arg5[%c2_70, %c1_71, %c0_72] : memref<18x18x4xf32, #tpu.memory_space<vmem>>, vector<16x16x4xf32>
    %c2_73 = arith.constant 2 : index
    %c1_74 = arith.constant 1 : index
    %c0_75 = arith.constant 0 : index
    %c0_76 = arith.constant 0 : index
    %52 = vector.load %arg2[%c2_73, %c1_74, %c0_75, %c0_76] : memref<3x3x4x4xf32, #tpu.memory_space<vmem>>, vector<1x1x4x4xf32>
    %53 = vector.shape_cast %52 : vector<1x1x4x4xf32> to vector<4x4xf32>
    "tpu.trace_start"() <{level = 10 : i32, message = "hwc,cd->hwd"}> : () -> ()
    %cst_77 = arith.constant dense<0.000000e+00> : vector<16x16x4xf32>
    %54 = tpu.matmul %51, %53, %cst_77 {dimension_numbers = #tpu.dot_dimension_numbers<[2], [0], [0, 1], [1], [0, 0, 0, 1, 1, 1], [], []>} : vector<16x16x4xf32>, vector<4x4xf32>, vector<16x16x4xf32> -> vector<16x16x4xf32>
    "tpu.trace_stop"() : () -> ()
    %55 = arith.addf %50, %54 : vector<16x16x4xf32>
    %c2_78 = arith.constant 2 : index
    %c2_79 = arith.constant 2 : index
    %c0_80 = arith.constant 0 : index
    %56 = vector.load %arg5[%c2_78, %c2_79, %c0_80] : memref<18x18x4xf32, #tpu.memory_space<vmem>>, vector<16x16x4xf32>
    %c2_81 = arith.constant 2 : index
    %c2_82 = arith.constant 2 : index
    %c0_83 = arith.constant 0 : index
    %c0_84 = arith.constant 0 : index
    %57 = vector.load %arg2[%c2_81, %c2_82, %c0_83, %c0_84] : memref<3x3x4x4xf32, #tpu.memory_space<vmem>>, vector<1x1x4x4xf32>
    %58 = vector.shape_cast %57 : vector<1x1x4x4xf32> to vector<4x4xf32>
    "tpu.trace_start"() <{level = 10 : i32, message = "hwc,cd->hwd"}> : () -> ()
    %cst_85 = arith.constant dense<0.000000e+00> : vector<16x16x4xf32>
    %59 = tpu.matmul %56, %58, %cst_85 {dimension_numbers = #tpu.dot_dimension_numbers<[2], [0], [0, 1], [1], [0, 0, 0, 1, 1, 1], [], []>} : vector<16x16x4xf32>, vector<4x4xf32>, vector<16x16x4xf32> -> vector<16x16x4xf32>
    "tpu.trace_stop"() : () -> ()
    %60 = arith.addf %55, %59 : vector<16x16x4xf32>
    %cst_86 = arith.constant dense<0.000000e+00> : vector<4xf32>
    %61 = vector.multi_reduction <add>, %60, %cst_86 [0, 1] : vector<16x16x4xf32> to vector<4xf32>
    %62 = vector.shape_cast %61 : vector<4xf32> to vector<1x1x4xf32>
    %cst_87 = arith.constant 2.560000e+02 : f32
    %63 = vector.broadcast %cst_87 : f32 to vector<1x1x4xf32>
    %64 = arith.divf %62, %63 : vector<1x1x4xf32>
    %65 = vector.broadcast %64 : vector<1x1x4xf32> to vector<16x16x4xf32>
    %66 = arith.subf %60, %65 : vector<16x16x4xf32>
    %67 = arith.mulf %66, %66 : vector<16x16x4xf32>
    %cst_88 = arith.constant dense<0.000000e+00> : vector<4xf32>
    %68 = vector.multi_reduction <add>, %67, %cst_88 [0, 1] : vector<16x16x4xf32> to vector<4xf32>
    %69 = vector.shape_cast %68 : vector<4xf32> to vector<1x1x4xf32>
    %cst_89 = arith.constant 2.560000e+02 : f32
    %70 = vector.broadcast %cst_89 : f32 to vector<1x1x4xf32>
    %71 = arith.divf %69, %70 : vector<1x1x4xf32>
    %72 = vector.broadcast %64 : vector<1x1x4xf32> to vector<16x16x4xf32>
    %73 = arith.subf %60, %72 : vector<16x16x4xf32>
    %cst_90 = arith.constant 9.99999974E-6 : f32
    %74 = vector.broadcast %cst_90 : f32 to vector<1x1x4xf32>
    %75 = arith.addf %71, %74 : vector<1x1x4xf32>
    %76 = math.rsqrt %75 : vector<1x1x4xf32>
    %77 = vector.broadcast %76 : vector<1x1x4xf32> to vector<16x16x4xf32>
    %78 = arith.mulf %73, %77 : vector<16x16x4xf32>
    %cst_91 = arith.constant 0.000000e+00 : f32
    %79 = vector.broadcast %cst_91 : f32 to vector<16x16x4xf32>
    %80 = arith.maximumf %78, %79 : vector<16x16x4xf32>
    %c1_92 = arith.constant 1 : index
    %c1_93 = arith.constant 1 : index
    %c0_94 = arith.constant 0 : index
    %81 = vector.load %arg5[%c1_92, %c1_93, %c0_94] : memref<18x18x4xf32, #tpu.memory_space<vmem>>, vector<16x16x4xf32>
    tpu.vector_store %arg5[%c1_92, %c1_93, %c0_94], %80 {strides = array<i32>} : memref<18x18x4xf32, #tpu.memory_space<vmem>>, vector<16x16x4xf32>,
    %82 = vector.extract_strided_slice %80 {offsets = [1, 0, 0], sizes = [1, 16, 4], strides = [1, 1, 1]} : vector<16x16x4xf32> to vector<1x16x4xf32>
    %c0_95 = arith.constant 0 : index
    %c1_96 = arith.constant 1 : index
    %c0_97 = arith.constant 0 : index
    %83 = vector.load %arg5[%c0_95, %c1_96, %c0_97] : memref<18x18x4xf32, #tpu.memory_space<vmem>>, vector<1x16x4xf32>
    tpu.vector_store %arg5[%c0_95, %c1_96, %c0_97], %82 {strides = array<i32>} : memref<18x18x4xf32, #tpu.memory_space<vmem>>, vector<1x16x4xf32>,
    %84 = vector.extract_strided_slice %80 {offsets = [14, 0, 0], sizes = [1, 16, 4], strides = [1, 1, 1]} : vector<16x16x4xf32> to vector<1x16x4xf32>
    %c17_98 = arith.constant 17 : index
    %c1_99 = arith.constant 1 : index
    %c0_100 = arith.constant 0 : index
    %85 = vector.load %arg5[%c17_98, %c1_99, %c0_100] : memref<18x18x4xf32, #tpu.memory_space<vmem>>, vector<1x16x4xf32>
    tpu.vector_store %arg5[%c17_98, %c1_99, %c0_100], %84 {strides = array<i32>} : memref<18x18x4xf32, #tpu.memory_space<vmem>>, vector<1x16x4xf32>,
    %86 = vector.extract_strided_slice %80 {offsets = [1, 1, 0], sizes = [1, 1, 4], strides = [1, 1, 1]} : vector<16x16x4xf32> to vector<1x1x4xf32>
    %87 = vector.extract_strided_slice %80 {offsets = [0, 1, 0], sizes = [16, 1, 4], strides = [1, 1, 1]} : vector<16x16x4xf32> to vector<16x1x4xf32>
    %88 = vector.extract_strided_slice %80 {offsets = [14, 1, 0], sizes = [1, 1, 4], strides = [1, 1, 1]} : vector<16x16x4xf32> to vector<1x1x4xf32>
    %89 = tpu.concatenate %86, %87, %88 in 0 : vector<1x1x4xf32>, vector<16x1x4xf32>, vector<1x1x4xf32> -> vector<18x1x4xf32>
    %90 = vector.extract_strided_slice %80 {offsets = [1, 14, 0], sizes = [1, 1, 4], strides = [1, 1, 1]} : vector<16x16x4xf32> to vector<1x1x4xf32>
    %91 = vector.extract_strided_slice %80 {offsets = [0, 14, 0], sizes = [16, 1, 4], strides = [1, 1, 1]} : vector<16x16x4xf32> to vector<16x1x4xf32>
    %92 = vector.extract_strided_slice %80 {offsets = [14, 14, 0], sizes = [1, 1, 4], strides = [1, 1, 1]} : vector<16x16x4xf32> to vector<1x1x4xf32>
    %93 = tpu.concatenate %90, %91, %92 in 0 : vector<1x1x4xf32>, vector<16x1x4xf32>, vector<1x1x4xf32> -> vector<18x1x4xf32>
    %c0_101 = arith.constant 0 : index
    %c0_102 = arith.constant 0 : index
    %c0_103 = arith.constant 0 : index
    %94 = vector.load %arg5[%c0_101, %c0_102, %c0_103] : memref<18x18x4xf32, #tpu.memory_space<vmem>>, vector<18x1x4xf32>
    tpu.vector_store %arg5[%c0_101, %c0_102, %c0_103], %89 {strides = array<i32>} : memref<18x18x4xf32, #tpu.memory_space<vmem>>, vector<18x1x4xf32>,
    %c0_104 = arith.constant 0 : index
    %c17_105 = arith.constant 17 : index
    %c0_106 = arith.constant 0 : index
    %95 = vector.load %arg5[%c0_104, %c17_105, %c0_106] : memref<18x18x4xf32, #tpu.memory_space<vmem>>, vector<18x1x4xf32>
    tpu.vector_store %arg5[%c0_104, %c17_105, %c0_106], %93 {strides = array<i32>} : memref<18x18x4xf32, #tpu.memory_space<vmem>>, vector<18x1x4xf32>,
    %c0_107 = arith.constant 0 : index
    %c0_108 = arith.constant 0 : index
    %c0_109 = arith.constant 0 : index
    %96 = vector.load %arg5[%c0_107, %c0_108, %c0_109] : memref<18x18x4xf32, #tpu.memory_space<vmem>>, vector<16x16x4xf32>
    %c0_110 = arith.constant 0 : index
    %c0_111 = arith.constant 0 : index
    %c0_112 = arith.constant 0 : index
    %c0_113 = arith.constant 0 : index
    %97 = vector.load %arg3[%c0_110, %c0_111, %c0_112, %c0_113] : memref<3x3x4x4xf32, #tpu.memory_space<vmem>>, vector<1x1x4x4xf32>
    %98 = vector.shape_cast %97 : vector<1x1x4x4xf32> to vector<4x4xf32>
    "tpu.trace_start"() <{level = 10 : i32, message = "hwc,cd->hwd"}> : () -> ()
    %cst_114 = arith.constant dense<0.000000e+00> : vector<16x16x4xf32>
    %99 = tpu.matmul %96, %98, %cst_114 {dimension_numbers = #tpu.dot_dimension_numbers<[2], [0], [0, 1], [1], [0, 0, 0, 1, 1, 1], [], []>} : vector<16x16x4xf32>, vector<4x4xf32>, vector<16x16x4xf32> -> vector<16x16x4xf32>
    "tpu.trace_stop"() : () -> ()
    %c0_115 = arith.constant 0 : index
    %c1_116 = arith.constant 1 : index
    %c0_117 = arith.constant 0 : index
    %100 = vector.load %arg5[%c0_115, %c1_116, %c0_117] : memref<18x18x4xf32, #tpu.memory_space<vmem>>, vector<16x16x4xf32>
    %c0_118 = arith.constant 0 : index
    %c1_119 = arith.constant 1 : index
    %c0_120 = arith.constant 0 : index
    %c0_121 = arith.constant 0 : index
    %101 = vector.load %arg3[%c0_118, %c1_119, %c0_120, %c0_121] : memref<3x3x4x4xf32, #tpu.memory_space<vmem>>, vector<1x1x4x4xf32>
    %102 = vector.shape_cast %101 : vector<1x1x4x4xf32> to vector<4x4xf32>
    "tpu.trace_start"() <{level = 10 : i32, message = "hwc,cd->hwd"}> : () -> ()
    %cst_122 = arith.constant dense<0.000000e+00> : vector<16x16x4xf32>
    %103 = tpu.matmul %100, %102, %cst_122 {dimension_numbers = #tpu.dot_dimension_numbers<[2], [0], [0, 1], [1], [0, 0, 0, 1, 1, 1], [], []>} : vector<16x16x4xf32>, vector<4x4xf32>, vector<16x16x4xf32> -> vector<16x16x4xf32>
    "tpu.trace_stop"() : () -> ()
    %104 = arith.addf %99, %103 : vector<16x16x4xf32>
    %c0_123 = arith.constant 0 : index
    %c2_124 = arith.constant 2 : index
    %c0_125 = arith.constant 0 : index
    %105 = vector.load %arg5[%c0_123, %c2_124, %c0_125] : memref<18x18x4xf32, #tpu.memory_space<vmem>>, vector<16x16x4xf32>
    %c0_126 = arith.constant 0 : index
    %c2_127 = arith.constant 2 : index
    %c0_128 = arith.constant 0 : index
    %c0_129 = arith.constant 0 : index
    %106 = vector.load %arg3[%c0_126, %c2_127, %c0_128, %c0_129] : memref<3x3x4x4xf32, #tpu.memory_space<vmem>>, vector<1x1x4x4xf32>
    %107 = vector.shape_cast %106 : vector<1x1x4x4xf32> to vector<4x4xf32>
    "tpu.trace_start"() <{level = 10 : i32, message = "hwc,cd->hwd"}> : () -> ()
    %cst_130 = arith.constant dense<0.000000e+00> : vector<16x16x4xf32>
    %108 = tpu.matmul %105, %107, %cst_130 {dimension_numbers = #tpu.dot_dimension_numbers<[2], [0], [0, 1], [1], [0, 0, 0, 1, 1, 1], [], []>} : vector<16x16x4xf32>, vector<4x4xf32>, vector<16x16x4xf32> -> vector<16x16x4xf32>
    "tpu.trace_stop"() : () -> ()
    %109 = arith.addf %104, %108 : vector<16x16x4xf32>
    %c1_131 = arith.constant 1 : index
    %c0_132 = arith.constant 0 : index
    %c0_133 = arith.constant 0 : index
    %110 = vector.load %arg5[%c1_131, %c0_132, %c0_133] : memref<18x18x4xf32, #tpu.memory_space<vmem>>, vector<16x16x4xf32>
    %c1_134 = arith.constant 1 : index
    %c0_135 = arith.constant 0 : index
    %c0_136 = arith.constant 0 : index
    %c0_137 = arith.constant 0 : index
    %111 = vector.load %arg3[%c1_134, %c0_135, %c0_136, %c0_137] : memref<3x3x4x4xf32, #tpu.memory_space<vmem>>, vector<1x1x4x4xf32>
    %112 = vector.shape_cast %111 : vector<1x1x4x4xf32> to vector<4x4xf32>
    "tpu.trace_start"() <{level = 10 : i32, message = "hwc,cd->hwd"}> : () -> ()
    %cst_138 = arith.constant dense<0.000000e+00> : vector<16x16x4xf32>
    %113 = tpu.matmul %110, %112, %cst_138 {dimension_numbers = #tpu.dot_dimension_numbers<[2], [0], [0, 1], [1], [0, 0, 0, 1, 1, 1], [], []>} : vector<16x16x4xf32>, vector<4x4xf32>, vector<16x16x4xf32> -> vector<16x16x4xf32>
    "tpu.trace_stop"() : () -> ()
    %114 = arith.addf %109, %113 : vector<16x16x4xf32>
    %c1_139 = arith.constant 1 : index
    %c1_140 = arith.constant 1 : index
    %c0_141 = arith.constant 0 : index
    %115 = vector.load %arg5[%c1_139, %c1_140, %c0_141] : memref<18x18x4xf32, #tpu.memory_space<vmem>>, vector<16x16x4xf32>
    %c1_142 = arith.constant 1 : index
    %c1_143 = arith.constant 1 : index
    %c0_144 = arith.constant 0 : index
    %c0_145 = arith.constant 0 : index
    %116 = vector.load %arg3[%c1_142, %c1_143, %c0_144, %c0_145] : memref<3x3x4x4xf32, #tpu.memory_space<vmem>>, vector<1x1x4x4xf32>
    %117 = vector.shape_cast %116 : vector<1x1x4x4xf32> to vector<4x4xf32>
    "tpu.trace_start"() <{level = 10 : i32, message = "hwc,cd->hwd"}> : () -> ()
    %cst_146 = arith.constant dense<0.000000e+00> : vector<16x16x4xf32>
    %118 = tpu.matmul %115, %117, %cst_146 {dimension_numbers = #tpu.dot_dimension_numbers<[2], [0], [0, 1], [1], [0, 0, 0, 1, 1, 1], [], []>} : vector<16x16x4xf32>, vector<4x4xf32>, vector<16x16x4xf32> -> vector<16x16x4xf32>
    "tpu.trace_stop"() : () -> ()
    %119 = arith.addf %114, %118 : vector<16x16x4xf32>
    %c1_147 = arith.constant 1 : index
    %c2_148 = arith.constant 2 : index
    %c0_149 = arith.constant 0 : index
    %120 = vector.load %arg5[%c1_147, %c2_148, %c0_149] : memref<18x18x4xf32, #tpu.memory_space<vmem>>, vector<16x16x4xf32>
    %c1_150 = arith.constant 1 : index
    %c2_151 = arith.constant 2 : index
    %c0_152 = arith.constant 0 : index
    %c0_153 = arith.constant 0 : index
    %121 = vector.load %arg3[%c1_150, %c2_151, %c0_152, %c0_153] : memref<3x3x4x4xf32, #tpu.memory_space<vmem>>, vector<1x1x4x4xf32>
    %122 = vector.shape_cast %121 : vector<1x1x4x4xf32> to vector<4x4xf32>
    "tpu.trace_start"() <{level = 10 : i32, message = "hwc,cd->hwd"}> : () -> ()
    %cst_154 = arith.constant dense<0.000000e+00> : vector<16x16x4xf32>
    %123 = tpu.matmul %120, %122, %cst_154 {dimension_numbers = #tpu.dot_dimension_numbers<[2], [0], [0, 1], [1], [0, 0, 0, 1, 1, 1], [], []>} : vector<16x16x4xf32>, vector<4x4xf32>, vector<16x16x4xf32> -> vector<16x16x4xf32>
    "tpu.trace_stop"() : () -> ()
    %124 = arith.addf %119, %123 : vector<16x16x4xf32>
    %c2_155 = arith.constant 2 : index
    %c0_156 = arith.constant 0 : index
    %c0_157 = arith.constant 0 : index
    %125 = vector.load %arg5[%c2_155, %c0_156, %c0_157] : memref<18x18x4xf32, #tpu.memory_space<vmem>>, vector<16x16x4xf32>
    %c2_158 = arith.constant 2 : index
    %c0_159 = arith.constant 0 : index
    %c0_160 = arith.constant 0 : index
    %c0_161 = arith.constant 0 : index
    %126 = vector.load %arg3[%c2_158, %c0_159, %c0_160, %c0_161] : memref<3x3x4x4xf32, #tpu.memory_space<vmem>>, vector<1x1x4x4xf32>
    %127 = vector.shape_cast %126 : vector<1x1x4x4xf32> to vector<4x4xf32>
    "tpu.trace_start"() <{level = 10 : i32, message = "hwc,cd->hwd"}> : () -> ()
    %cst_162 = arith.constant dense<0.000000e+00> : vector<16x16x4xf32>
    %128 = tpu.matmul %125, %127, %cst_162 {dimension_numbers = #tpu.dot_dimension_numbers<[2], [0], [0, 1], [1], [0, 0, 0, 1, 1, 1], [], []>} : vector<16x16x4xf32>, vector<4x4xf32>, vector<16x16x4xf32> -> vector<16x16x4xf32>
    "tpu.trace_stop"() : () -> ()
    %129 = arith.addf %124, %128 : vector<16x16x4xf32>
    %c2_163 = arith.constant 2 : index
    %c1_164 = arith.constant 1 : index
    %c0_165 = arith.constant 0 : index
    %130 = vector.load %arg5[%c2_163, %c1_164, %c0_165] : memref<18x18x4xf32, #tpu.memory_space<vmem>>, vector<16x16x4xf32>
    %c2_166 = arith.constant 2 : index
    %c1_167 = arith.constant 1 : index
    %c0_168 = arith.constant 0 : index
    %c0_169 = arith.constant 0 : index
    %131 = vector.load %arg3[%c2_166, %c1_167, %c0_168, %c0_169] : memref<3x3x4x4xf32, #tpu.memory_space<vmem>>, vector<1x1x4x4xf32>
    %132 = vector.shape_cast %131 : vector<1x1x4x4xf32> to vector<4x4xf32>
    "tpu.trace_start"() <{level = 10 : i32, message = "hwc,cd->hwd"}> : () -> ()
    %cst_170 = arith.constant dense<0.000000e+00> : vector<16x16x4xf32>
    %133 = tpu.matmul %130, %132, %cst_170 {dimension_numbers = #tpu.dot_dimension_numbers<[2], [0], [0, 1], [1], [0, 0, 0, 1, 1, 1], [], []>} : vector<16x16x4xf32>, vector<4x4xf32>, vector<16x16x4xf32> -> vector<16x16x4xf32>
    "tpu.trace_stop"() : () -> ()
    %134 = arith.addf %129, %133 : vector<16x16x4xf32>
    %c2_171 = arith.constant 2 : index
    %c2_172 = arith.constant 2 : index
    %c0_173 = arith.constant 0 : index
    %135 = vector.load %arg5[%c2_171, %c2_172, %c0_173] : memref<18x18x4xf32, #tpu.memory_space<vmem>>, vector<16x16x4xf32>
    %c2_174 = arith.constant 2 : index
    %c2_175 = arith.constant 2 : index
    %c0_176 = arith.constant 0 : index
    %c0_177 = arith.constant 0 : index
    %136 = vector.load %arg3[%c2_174, %c2_175, %c0_176, %c0_177] : memref<3x3x4x4xf32, #tpu.memory_space<vmem>>, vector<1x1x4x4xf32>
    %137 = vector.shape_cast %136 : vector<1x1x4x4xf32> to vector<4x4xf32>
    "tpu.trace_start"() <{level = 10 : i32, message = "hwc,cd->hwd"}> : () -> ()
    %cst_178 = arith.constant dense<0.000000e+00> : vector<16x16x4xf32>
    %138 = tpu.matmul %135, %137, %cst_178 {dimension_numbers = #tpu.dot_dimension_numbers<[2], [0], [0, 1], [1], [0, 0, 0, 1, 1, 1], [], []>} : vector<16x16x4xf32>, vector<4x4xf32>, vector<16x16x4xf32> -> vector<16x16x4xf32>
    "tpu.trace_stop"() : () -> ()
    %139 = arith.addf %134, %138 : vector<16x16x4xf32>
    %cst_179 = arith.constant dense<0.000000e+00> : vector<4xf32>
    %140 = vector.multi_reduction <add>, %139, %cst_179 [0, 1] : vector<16x16x4xf32> to vector<4xf32>
    %141 = vector.shape_cast %140 : vector<4xf32> to vector<1x1x4xf32>
    %cst_180 = arith.constant 2.560000e+02 : f32
    %142 = vector.broadcast %cst_180 : f32 to vector<1x1x4xf32>
    %143 = arith.divf %141, %142 : vector<1x1x4xf32>
    %144 = vector.broadcast %143 : vector<1x1x4xf32> to vector<16x16x4xf32>
    %145 = arith.subf %139, %144 : vector<16x16x4xf32>
    %146 = arith.mulf %145, %145 : vector<16x16x4xf32>
    %cst_181 = arith.constant dense<0.000000e+00> : vector<4xf32>
    %147 = vector.multi_reduction <add>, %146, %cst_181 [0, 1] : vector<16x16x4xf32> to vector<4xf32>
    %148 = vector.shape_cast %147 : vector<4xf32> to vector<1x1x4xf32>
    %cst_182 = arith.constant 2.560000e+02 : f32
    %149 = vector.broadcast %cst_182 : f32 to vector<1x1x4xf32>
    %150 = arith.divf %148, %149 : vector<1x1x4xf32>
    %151 = vector.broadcast %143 : vector<1x1x4xf32> to vector<16x16x4xf32>
    %152 = arith.subf %139, %151 : vector<16x16x4xf32>
    %cst_183 = arith.constant 9.99999974E-6 : f32
    %153 = vector.broadcast %cst_183 : f32 to vector<1x1x4xf32>
    %154 = arith.addf %150, %153 : vector<1x1x4xf32>
    %155 = math.rsqrt %154 : vector<1x1x4xf32>
    %156 = vector.broadcast %155 : vector<1x1x4xf32> to vector<16x16x4xf32>
    %157 = arith.mulf %152, %156 : vector<16x16x4xf32>
    %158 = arith.addf %1, %157 : vector<16x16x4xf32>
    %c0_184 = arith.constant 0 : index
    %c0_185 = arith.constant 0 : index
    %c0_186 = arith.constant 0 : index
    %c0_187 = arith.constant 0 : index
    %159 = vector.load %arg4[%c0_184, %c0_185, %c0_186, %c0_187] : memref<1x16x16x4xf32, #tpu.memory_space<vmem>>, vector<1x16x16x4xf32>
    %160 = vector.shape_cast %159 : vector<1x16x16x4xf32> to vector<16x16x4xf32>
    %161 = vector.shape_cast %158 : vector<16x16x4xf32> to vector<1x16x16x4xf32>
    tpu.vector_store %arg4[%c0_184, %c0_185, %c0_186, %c0_187], %161 {strides = array<i32>} : memref<1x16x16x4xf32, #tpu.memory_space<vmem>>, vector<1x16x16x4xf32>,
    return
  }
  func.func @transform_0(%arg0: i32) -> (i32, i32, i32, i32) {
    %c0_i32 = arith.constant 0 : i32
    %c0_i32_0 = arith.constant 0 : i32
    %c0_i32_1 = arith.constant 0 : i32
    %c0_i32_2 = arith.constant 0 : i32
    return %arg0, %c0_i32, %c0_i32_0, %c0_i32_1 : i32, i32, i32, i32
  }
  func.func @transform_1(%arg0: i32) -> (i32, i32, i32, i32) {
    %c0_i32 = arith.constant 0 : i32
    %c0_i32_0 = arith.constant 0 : i32
    %c0_i32_1 = arith.constant 0 : i32
    %c0_i32_2 = arith.constant 0 : i32
    %c0_i32_3 = arith.constant 0 : i32
    return %c0_i32, %c0_i32_0, %c0_i32_1, %c0_i32_2 : i32, i32, i32, i32
  }
  func.func @transform_2(%arg0: i32) -> (i32, i32, i32, i32) {
    %c0_i32 = arith.constant 0 : i32
    %c0_i32_0 = arith.constant 0 : i32
    %c0_i32_1 = arith.constant 0 : i32
    %c0_i32_2 = arith.constant 0 : i32
    %c0_i32_3 = arith.constant 0 : i32
    return %c0_i32, %c0_i32_0, %c0_i32_1, %c0_i32_2 : i32, i32, i32, i32
  }
  func.func @transform_3(%arg0: i32) -> (i32, i32, i32, i32) {
    %c0_i32 = arith.constant 0 : i32
    %c0_i32_0 = arith.constant 0 : i32
    %c0_i32_1 = arith.constant 0 : i32
    %c0_i32_2 = arith.constant 0 : i32
    return %arg0, %c0_i32, %c0_i32_0, %c0_i32_1 : i32, i32, i32, i32
  }
}

</mosaic_0001>

<bundles_post_ra>
// kernel: resnet_block_nhwc.1
= control target key start
LH: loop header
LB: loop body
LE: loop exit
PB: predicated region body
PF: predicated region fallthrough
CT: control target
= control target key end

     0   :  { %s6549_s12 = smov 0   ;;  %s10124_s0 = inlined_call_operand.vmem [shape: f32[2,16,16,4], index: 0, kind: input, shape index: {}]   ;;  %s10125_s1 = inlined_call_operand.vmem [shape: f32[3,3,4,4], index: 1, kind: input, shape index: {}]   ;;  %s10126_s2 = inlined_call_operand.vmem [shape: f32[3,3,4,4], index: 2, kind: input, shape index: {}]   ;;  %s10127_s3 = inlined_call_operand.vmem [shape: f32[2,16,16,4], index: 3, kind: output, shape index: {}]  }
   0x1 LB: > { %s5880_s13 = sadd.s32 4294967295, %s6526_s12   ;;  %p5884_p0 = scmp.ge.s32.totalorder %s6526_s12, 1  ;;  %s6526_s12 = sphi %s6549_s12, %s13_s12  }
   0x2   : > { %p137_p1 = scmp.lt.s32.totalorder %s6526_s12, 3 }
   0x4   : > { %p138_p2 = pnand %p5884_p0, %p137_p1 }
   0x6   : > { %141 = sbr.rel (%p138_p2) target bundleno = 2004 (0x7d4), region = 32 }
   0xb   : > { %v5889_v0 = vld [vmem:[%s10125_s1 + $0x4] sm:$0xf]  ;;  %vm443_vm0 = vcmask 1043456   ;;  %v312_v1 = vld [vmem:[%s10125_s1] sm:$0xf]  ;;  %p161_p3 = scmp.lt.s32.totalorder %s5880_s13, 1 }
   0xc   : > { %6503 = vmatpush.msk.msra.mxu2 %vm443_vm0, %v5889_v0  ;;  %6504 = vmatpush.msk.msra.mxu3 %vm443_vm0, %v312_v1  ;;  %v5956_v2 = vld [vmem:[%s10125_s1 + $0x8] sm:$0xf]  ;;  %v5990_v3 = vld [vmem:[%s10125_s1 + $0xc] sm:$0xf]  ;;  %v6024_v4 = vld [vmem:[%s10125_s1 + $0x10] sm:$0xf] }
   0xd   : > { %s10583_s13 = smov (!%p161_p3, %s5880_s13), 1  ;;  %5890 = vmatpush.msk.msra.mxu0 %vm443_vm0, %v5889_v0  ;;  %5923 = vmatpush.msk.msra.mxu1 %vm443_vm0, %v312_v1  ;;  %vm204_vm1 = vcmask 31744   ;;  %vm242_vm2 = vcmask 25601   ;;  %vm261_vm3 = vcmask 30726  }
   0xe   : > { %5957 = vmatpush.msk.msrb.mxu2 %vm443_vm0, %v5956_v2  ;;  %5991 = vmatpush.msk.msrb.mxu3 %vm443_vm0, %v5990_v3  ;;  %s6501_s24 = sshll.u32 %s10583_s13, 8 }
   0xf   : > { %6025 = vmatpush.msk.msrb.mxu0 %vm443_vm0, %v6024_v4  ;;  %s6587_s27 = scalar_lea.vmem %s10124_s0, %s6501_s24  ;;  %s9969_s5 = scalar_lea.vmem %s10127_s3, %s6501_s24 }
  0x10   : > { %v6590_v5 = vld [vmem:[%s6587_s27 + $0x70] sm:$0xff]  ;;  %v6593_v6 = vld [vmem:[%s6587_s27 + $0x78] sm:$0xff]  ;;  %v6609_v8 = vld [vmem:[%s6587_s27 + $0x80] sm:$0xff] }
  0x11   : > { %10244 = vst [vmem:[#allocation3_spill] sm:$0xff] %v6590_v5  ;;  %v6598_v7 = vld [vmem:[%s6587_s27 + $0x10] sm:$0xff]  ;;  %v6616_v9 = vld [vmem:[%s6587_s27 + $0x18] sm:$0xff]  ;;  %v6629_v12 = vld [vmem:[%s6587_s27 + $0x88] sm:$0xff] }
  0x12   : > { %10245 = vst [vmem:[#allocation4_spill] sm:$0xff] %v6593_v6  ;;  %v6636_v13 = vld [vmem:[%s6587_s27] sm:$0xff]  ;;  %v6644_v15 = vld [vmem:[%s6587_s27 + $0x90] sm:$0xff]  ;;  %v6654_v18 = vld [vmem:[%s6587_s27 + $0x8] sm:$0xff] }
  0x13   : > { %219 = vst.msk [vmem:[#allocation2 + $0xc1] sm:$0xff] %vm204_vm1, %v6590_v5  ;;  %v6661_v20 = vld [vmem:[%s6587_s27 + $0x98] sm:$0xff]  ;;  %v6670_v22 = vld [vmem:[%s6587_s27 + $0xa0] sm:$0xff]  ;;  %v6691_v27 = vld [vmem:[%s6587_s27 + $0xa8] sm:$0xff] }
  0x14   : > { %10246 = vst [vmem:[#allocation5_spill] sm:$0xff] %v6598_v7  ;;  %v6700_v29 = vld [vmem:[%s6587_s27 + $0x20] sm:$0xff]  ;;  %v6719_v33 = vld [vmem:[%s6587_s27 + $0xb0] sm:$0xff]  ;;  %v6730_v35 = vld [vmem:[%s6587_s27 + $0x28] sm:$0xff] }
  0x15   : > { %251 = vst.msk [vmem:[#allocation2 + $0xbf] sm:$0x2] %vm242_vm2, %v6590_v5  ;;  %v6747_v39 = vld [vmem:[%s6587_s27 + $0xb8] sm:$0xff]  ;;  %v6756_v41 = vld [vmem:[%s6587_s27 + $0x30] sm:$0xff]  ;;  %v6775_v45 = vld [vmem:[%s6587_s27 + $0xc0] sm:$0xff] }
  0x16   : > { %220 = vst.msk [vmem:[#allocation2 + $0xc9] sm:$0xff] %vm204_vm1, %v6593_v6  ;;  %v6786_v47 = vld [vmem:[%s6587_s27 + $0x38] sm:$0xff]  ;;  %v6803_v51 = vld [vmem:[%s6587_s27 + $0xc8] sm:$0xff]  ;;  %v6812_v53 = vld [vmem:[%s6587_s27 + $0x40] sm:$0xff] }
  0x17   : > { %237 = vst.msk [vmem:[#allocation2 + $0x1] sm:$0xff] %vm204_vm1, %v6598_v7  ;;  %v6831_v57 = vld [vmem:[%s6587_s27 + $0xd0] sm:$0xff]  ;;  %v6842_v59 = vld [vmem:[%s6587_s27 + $0x48] sm:$0xff]  ;;  %v6859_v63 = vld [vmem:[%s6587_s27 + $0xd8] sm:$0xff] }
  0x18   : > { %207 = vst.msk [vmem:[#allocation2 + $0x31] sm:$0xff] %vm204_vm1, %v6598_v7  ;;  %v6868_v1 = vld [vmem:[%s6587_s27 + $0x50] sm:$0xff] }
  0x19   : > { %10247 = vst [vmem:[#allocation6_spill] sm:$0xff] %v6609_v8 }
  0x1a   : > { %243 = vst.msk [vmem:[#allocation2 - $0x1] sm:$0x2] %vm242_vm2, %v6598_v7  ;;  %v6618_v10 = vld [vmem:[#allocation2 + $0xc1] sm:$0xff] }
  0x1b   : > { %245 = vst.msk [vmem:[#allocation2 + $0x2f] sm:$0x2] %vm242_vm2, %v6598_v7  ;;  %5907 = vmatmul.msk.f32.vlgmr.msra.gmra.mxu2 %vm204_vm1, %v6618_v10  ;;  %v6092_v7 = vld [vmem:[%s10125_s1 + $0x18] sm:$0xf] }
  0x1c   : > { %10248 = vst [vmem:[#allocation7_spill] sm:$0xff] %v6616_v9  ;;  %v6624_v11 = vld [vmem:[#allocation2 + $0xc0] sm:$0xff]  ;;  %6093 = vmatpush.msk.msra.mxu2 %vm443_vm0, %v6092_v7 }
  0x1d   : > { %221 = vst.msk [vmem:[#allocation2 + $0xd9] sm:$0xff] %vm204_vm1, %v6609_v8  ;;  %5940 = vmatmul.msk.f32.vlgmr.msra.gmra.mxu3 %vm204_vm1, %v6624_v11  ;;  %v6648_v17 = vld [vmem:[#allocation2 + $0xc9] sm:$0xff] }
  0x1e   : > { %252 = vst.msk [vmem:[#allocation2 + $0xd7] sm:$0x2] %vm242_vm2, %v6609_v8  ;;  %v313_v14 = vld [vmem:[#allocation2 + $0x1] sm:$0xff] }
  0x1f   : > { %10249 = vst [vmem:[#allocation8_spill] sm:$0xff] %v6629_v12  ;;  %5891 = vmatmul.msk.f32.vlgmr.msra.gmra.mxu0 %vm204_vm1, %v313_v14  ;;  %v6656_v19 = vld [vmem:[#allocation2 + $0xc8] sm:$0xff]  ;;  %v6744_v38 = vld [vmem:[#allocation2 + $0x31] sm:$0xff]  ;;  %v6887_v14 = vld [vmem:[%s6587_s27 + $0xe0] sm:$0xff] }
  0x20   : > { %238 = vst.msk [vmem:[#allocation2 + $0x9] sm:$0xff] %vm204_vm1, %v6616_v9 }
  0x21   : > { %10250 = vst [vmem:[#allocation9_spill] sm:$0xff] %v6636_v13  ;;  %v280_v16 = vld [vmem:[#allocation2] sm:$0xff] }
  0x22   : > { %208 = vst.msk [vmem:[#allocation2 + $0x39] sm:$0xff] %vm204_vm1, %v6616_v9  ;;  %5924 = vmatmul.msk.f32.vlgmr.msra.gmra.mxu1 %vm204_vm1, %v280_v16  ;;  %v6753_v40 = vld [vmem:[#allocation2 + $0x30] sm:$0xff] }
  0x23   : > { %222 = vst.msk [vmem:[#allocation2 + $0xe1] sm:$0xff] %vm204_vm1, %v6629_v12  ;;  %5908 = vmatmul.msk.f32.gmra.mxu2 %vm204_vm1, %v6648_v17 }
  0x24   : > { %10251 = vst [vmem:[#allocation10_spill] sm:$0xff] %v6644_v15  ;;  %v6681_v24 = vld [vmem:[#allocation2 + $0xd9] sm:$0xff] }
  0x25   : > { %205 = vst.msk [vmem:[#allocation2 + $0x19] sm:$0xff] %vm204_vm1, %v6636_v13  ;;  %5941 = vmatmul.msk.f32.gmra.mxu3 %vm204_vm1, %v6656_v19  ;;  %v6684_v25 = vld [vmem:[#allocation2 + $0xd8] sm:$0xff] }
  0x26   : > { %244 = vst.msk [vmem:[#allocation2 + $0x17] sm:$0x2] %vm242_vm2, %v6636_v13  ;;  %v6126_v13 = vld [vmem:[%s10125_s1 + $0x1c] sm:$0xf] }
  0x27   : > { %10252 = vst [vmem:[#allocation11_spill] sm:$0xff] %v6654_v18  ;;  %v314_v21 = vld [vmem:[#allocation2 + $0x9] sm:$0xff]  ;;  %6127 = vmatpush.msk.msra.mxu3 %vm443_vm0, %v6126_v13 }
  0x28   : > { %223 = vst.msk [vmem:[#allocation2 + $0xf1] sm:$0xff] %vm204_vm1, %v6644_v15  ;;  %v281_v23 = vld [vmem:[#allocation2 + $0x8] sm:$0xff]  ;;  %5892 = vmatmul.msk.f32.gmra.mxu0 %vm204_vm1, %v314_v21  ;;  %v6898_v21 = vld [vmem:[%s6587_s27 + $0x58] sm:$0xff] }
  0x29   : > { %10253 = vst [vmem:[#allocation12_spill] sm:$0xff] %v6661_v20  ;;  %v6772_v44 = vld [vmem:[#allocation2 + $0x39] sm:$0xff] }
  0x2a   : > { %253 = vst.msk [vmem:[#allocation2 + $0xef] sm:$0x2] %vm242_vm2, %v6644_v15  ;;  %5925 = vmatmul.msk.f32.gmra.mxu1 %vm204_vm1, %v281_v23  ;;  %v6708_v30 = vld [vmem:[#allocation2 + $0xe1] sm:$0xff]  ;;  %v6781_v46 = vld [vmem:[#allocation2 + $0x38] sm:$0xff] }
  0x2b   : > { %206 = vst.msk [vmem:[#allocation2 + $0x21] sm:$0xff] %vm204_vm1, %v6654_v18  ;;  %5909 = vmatmul.msk.f32.gmra.mxu2 %vm204_vm1, %v6681_v24  ;;  %v6712_v31 = vld [vmem:[#allocation2 + $0xe0] sm:$0xff] }
  0x2c   : > { %10254 = vst [vmem:[#allocation13_spill] sm:$0xff] %v6670_v22  ;;  %v6688_v26 = vld [vmem:[#allocation2 + $0x19] sm:$0xff] }
  0x2d   : > { %224 = vst.msk [vmem:[#allocation2 + $0xf9] sm:$0xff] %vm204_vm1, %v6661_v20  ;;  %5942 = vmatmul.msk.f32.gmra.mxu3 %vm204_vm1, %v6684_v25  ;;  %v6697_v28 = vld [vmem:[#allocation2 + $0x18] sm:$0xff] }
  0x2e   : > { %225 = vst.msk [vmem:[#allocation2 + $0x109] sm:$0xff] %vm204_vm1, %v6670_v22 }
  0x2f   : > { %254 = vst.msk [vmem:[#allocation2 + $0x107] sm:$0x2] %vm242_vm2, %v6670_v22  ;;  %v6736_v36 = vld [vmem:[#allocation2 + $0xf1] sm:$0xff]  ;;  %v6930_v22 = vld [vmem:[%s6587_s27 + $0x60] sm:$0xff] }
  0x30   : > { %10255 = vst [vmem:[#allocation14_spill] sm:$0xff] %v6691_v27  ;;  %5893 = vmatmul.msk.f32.gmra.mxu0 %vm204_vm1, %v6688_v26 }
  0x31   : > { %226 = vst.msk [vmem:[#allocation2 + $0x111] sm:$0xff] %vm204_vm1, %v6691_v27  ;;  %v6740_v37 = vld [vmem:[#allocation2 + $0xf0] sm:$0xff] }
  0x32   : > { %10256 = vst [vmem:[#allocation15_spill] sm:$0xff] %v6700_v29  ;;  %5926 = vmatmul.msk.f32.gmra.mxu1 %vm204_vm1, %v6697_v28  ;;  %v6716_v32 = vld [vmem:[#allocation2 + $0x21] sm:$0xff] }
  0x33   : > { %209 = vst.msk [vmem:[#allocation2 + $0x49] sm:$0xff] %vm204_vm1, %v6700_v29  ;;  %5910 = vmatmul.msk.f32.gmra.mxu2 %vm204_vm1, %v6708_v30  ;;  %v6725_v34 = vld [vmem:[#allocation2 + $0x20] sm:$0xff] }
  0x34   : > { %246 = vst.msk [vmem:[#allocation2 + $0x47] sm:$0x2] %vm242_vm2, %v6700_v29  ;;  %v6764_v42 = vld [vmem:[#allocation2 + $0xf9] sm:$0xff] }
  0x35   : > { %10257 = vst [vmem:[#allocation16_spill] sm:$0xff] %v6719_v33  ;;  %5943 = vmatmul.msk.f32.gmra.mxu3 %vm204_vm1, %v6712_v31  ;;  %v6768_v43 = vld [vmem:[#allocation2 + $0xf8] sm:$0xff]  ;;  %v6792_v48 = vld [vmem:[#allocation2 + $0x109] sm:$0xff] }
  0x36   : > { %227 = vst.msk [vmem:[#allocation2 + $0x121] sm:$0xff] %vm204_vm1, %v6719_v33  ;;  %v6796_v49 = vld [vmem:[#allocation2 + $0x108] sm:$0xff] }
  0x37   : > { %255 = vst.msk [vmem:[#allocation2 + $0x11f] sm:$0x2] %vm242_vm2, %v6719_v33  ;;  %v6919_v33 = vld [vmem:[%s6587_s27 + $0xe8] sm:$0xff] }
  0x38   : > { %10258 = vst [vmem:[#allocation17_spill] sm:$0xff] %v6730_v35  ;;  %5894 = vmatmul.msk.f32.gmra.mxu0 %vm204_vm1, %v6716_v32  ;;  %v6820_v54 = vld [vmem:[#allocation2 + $0x111] sm:$0xff] }
  0x39   : > { %210 = vst.msk [vmem:[#allocation2 + $0x51] sm:$0xff] %vm204_vm1, %v6730_v35  ;;  %v6824_v55 = vld [vmem:[#allocation2 + $0x110] sm:$0xff] }
  0x3a   : > { %5927 = vmatmul.msk.f32.gmra.mxu1 %vm204_vm1, %v6725_v34  ;;  %10259 = vst [vmem:[#allocation18_spill] sm:$0xff] %v6747_v39  ;;  %v6800_v50 = vld [vmem:[#allocation2 + $0x49] sm:$0xff] }
  0x3b   : > { %5911 = vmatmul.msk.f32.gmra.mxu2 %vm204_vm1, %v6736_v36  ;;  %228 = vst.msk [vmem:[#allocation2 + $0x129] sm:$0xff] %vm204_vm1, %v6747_v39  ;;  %v6809_v52 = vld [vmem:[#allocation2 + $0x48] sm:$0xff] }
  0x3c   : > { %10260 = vst [vmem:[#allocation19_spill] sm:$0xff] %v6756_v41 }
  0x3d   : > { %5944 = vmatmul.msk.f32.gmra.mxu3 %vm204_vm1, %v6740_v37  ;;  %211 = vst.msk [vmem:[#allocation2 + $0x61] sm:$0xff] %vm204_vm1, %v6756_v41  ;;  %v6848_v60 = vld [vmem:[#allocation2 + $0x121] sm:$0xff] }
  0x3e   : > { %247 = vst.msk [vmem:[#allocation2 + $0x5f] sm:$0x2] %vm242_vm2, %v6756_v41  ;;  %v6852_v61 = vld [vmem:[#allocation2 + $0x120] sm:$0xff] }
  0x3f   : > { %10261 = vst [vmem:[#allocation20_spill] sm:$0xff] %v6775_v45 }
  0x40   : > { %5895 = vmatmul.msk.f32.gmra.mxu0 %vm204_vm1, %v6744_v38  ;;  %229 = vst.msk [vmem:[#allocation2 + $0x139] sm:$0xff] %vm204_vm1, %v6775_v45  ;;  %v6828_v56 = vld [vmem:[#allocation2 + $0x51] sm:$0xff] }
  0x41   : > { %256 = vst.msk [vmem:[#allocation2 + $0x137] sm:$0x2] %vm242_vm2, %v6775_v45  ;;  %v6837_v58 = vld [vmem:[#allocation2 + $0x50] sm:$0xff] }
  0x42   : > { %5928 = vmatmul.msk.f32.gmra.mxu1 %vm204_vm1, %v6753_v40  ;;  %10262 = vst [vmem:[#allocation21_spill] sm:$0xff] %v6786_v47  ;;  %v6876_v2 = vld [vmem:[#allocation2 + $0x129] sm:$0xff] }
  0x43   : > { %5912 = vmatmul.msk.f32.gmra.mxu2 %vm204_vm1, %v6764_v42  ;;  %212 = vst.msk [vmem:[#allocation2 + $0x69] sm:$0xff] %vm204_vm1, %v6786_v47  ;;  %v6880_v3 = vld [vmem:[#allocation2 + $0x128] sm:$0xff] }
  0x44   : > { %10263 = vst [vmem:[#allocation22_spill] sm:$0xff] %v6803_v51  ;;  %v6856_v62 = vld [vmem:[#allocation2 + $0x61] sm:$0xff] }
  0x45   : > { %5945 = vmatmul.msk.f32.gmra.mxu3 %vm204_vm1, %v6768_v43  ;;  %230 = vst.msk [vmem:[#allocation2 + $0x141] sm:$0xff] %vm204_vm1, %v6803_v51  ;;  %v6865_v0 = vld [vmem:[#allocation2 + $0x60] sm:$0xff] }
  0x46   : > { %10264 = vst [vmem:[#allocation23_spill] sm:$0xff] %v6812_v53 }
  0x47   : > { %213 = vst.msk [vmem:[#allocation2 + $0x79] sm:$0xff] %vm204_vm1, %v6812_v53  ;;  %v6906_v23 = vld [vmem:[#allocation2 + $0x139] sm:$0xff] }
  0x48   : > { %5896 = vmatmul.msk.f32.gmra.mxu0 %vm204_vm1, %v6772_v44  ;;  %248 = vst.msk [vmem:[#allocation2 + $0x77] sm:$0x2] %vm242_vm2, %v6812_v53  ;;  %v6953_v53 = vld [vmem:[%s6587_s27 + $0x68] sm:$0xff] }
  0x49   : > { %10265 = vst [vmem:[#allocation24_spill] sm:$0xff] %v6831_v57 }
  0x4a   : > { %5929 = vmatmul.msk.f32.gmra.mxu1 %vm204_vm1, %v6781_v46  ;;  %231 = vst.msk [vmem:[#allocation2 + $0x151] sm:$0xff] %vm204_vm1, %v6831_v57  ;;  %v6884_v4 = vld [vmem:[#allocation2 + $0x69] sm:$0xff] }
  0x4b   : > { %5913 = vmatmul.msk.f32.gmra.mxu2 %vm204_vm1, %v6792_v48  ;;  %257 = vst.msk [vmem:[#allocation2 + $0x14f] sm:$0x2] %vm242_vm2, %v6831_v57  ;;  %v6893_v16 = vld [vmem:[#allocation2 + $0x68] sm:$0xff]  ;;  %v6912_v57 = vld [vmem:[#allocation2 + $0x138] sm:$0xff] }
  0x4c   : > { %10266 = vst [vmem:[#allocation25_spill] sm:$0xff] %v6842_v59  ;;  %v6938_v15 = vld [vmem:[#allocation2 + $0x141] sm:$0xff] }
  0x4d   : > { %5946 = vmatmul.msk.f32.gmra.mxu3 %vm204_vm1, %v6796_v49  ;;  %214 = vst.msk [vmem:[#allocation2 + $0x81] sm:$0xff] %vm204_vm1, %v6842_v59  ;;  %v6942_v8 = vld [vmem:[#allocation2 + $0x140] sm:$0xff] }
  0x4e   : > { %10267 = vst [vmem:[#allocation26_spill] sm:$0xff] %v6859_v63  ;;  %v6916_v45 = vld [vmem:[#allocation2 + $0x79] sm:$0xff] }
  0x4f   : > { %232 = vst.msk [vmem:[#allocation2 + $0x159] sm:$0xff] %vm204_vm1, %v6859_v63 }
  0x50   : > { %5897 = vmatmul.msk.f32.gmra.mxu0 %vm204_vm1, %v6800_v50  ;;  %10268 = vst [vmem:[#allocation27_spill] sm:$0xff] %v6868_v1 }
  0x51   : > { %215 = vst.msk [vmem:[#allocation2 + $0x91] sm:$0xff] %vm204_vm1, %v6868_v1 }
  0x52   : > { %5930 = vmatmul.msk.f32.gmra.mxu1 %vm204_vm1, %v6809_v52  ;;  %249 = vst.msk [vmem:[#allocation2 + $0x8f] sm:$0x2] %vm242_vm2, %v6868_v1  ;;  %v6963_v41 = vld [vmem:[#allocation2 + $0x150] sm:$0xff] }
  0x53   : > { %5914 = vmatmul.msk.f32.gmra.mxu2 %vm204_vm1, %v6820_v54  ;;  %10269 = vst [vmem:[#allocation28_spill] sm:$0xff] %v6887_v14 }
  0x54   : > { %233 = vst.msk [vmem:[#allocation2 + $0x169] sm:$0xff] %vm204_vm1, %v6887_v14  ;;  %v6946_v5 = vld [vmem:[#allocation2 + $0x81] sm:$0xff] }
  0x55   : > { %5947 = vmatmul.msk.f32.gmra.mxu3 %vm204_vm1, %v6824_v55  ;;  %240 = vst.msk [vmem:[#allocation2 + $0x199] sm:$0xff] %vm204_vm1, %v6887_v14  ;;  %v6950_v1 = vld [vmem:[#allocation2 + $0x80] sm:$0xff] }
  0x56   : > { %10270 = vst [vmem:[#allocation29_spill] sm:$0xff] %v6898_v21  ;;  %v6991_v7 = vld [vmem:[#allocation2 + $0x159] sm:$0xff] }
  0x57   : > { %258 = vst.msk [vmem:[#allocation2 + $0x167] sm:$0x2] %vm242_vm2, %v6887_v14  ;;  %v6997_v13 = vld [vmem:[#allocation2 + $0x158] sm:$0xff] }
  0x58   : > { %5898 = vmatmul.msk.f32.gmra.mxu0 %vm204_vm1, %v6828_v56  ;;  %260 = vst.msk [vmem:[#allocation2 + $0x197] sm:$0x2] %vm242_vm2, %v6887_v14  ;;  %v6925_v14 = vld [vmem:[#allocation2 + $0x78] sm:$0xff] }
  0x59   : > { %216 = vst.msk [vmem:[#allocation2 + $0x99] sm:$0xff] %vm204_vm1, %v6898_v21  ;;  %v6967_v29 = vld [vmem:[#allocation2 + $0x91] sm:$0xff] }
  0x5a   : > { %5931 = vmatmul.msk.f32.gmra.mxu1 %vm204_vm1, %v6837_v58  ;;  %10271 = vst [vmem:[#allocation30_spill] sm:$0xff] %v6919_v33 }
  0x5b   : > { %5915 = vmatmul.msk.f32.gmra.mxu2 %vm204_vm1, %v6848_v60  ;;  %234 = vst.msk [vmem:[#allocation2 + $0x171] sm:$0xff] %vm204_vm1, %v6919_v33 }
  0x5c   : > { %241 = vst.msk [vmem:[#allocation2 + $0x1a1] sm:$0xff] %vm204_vm1, %v6919_v33 }
  0x5d   : > { %5948 = vmatmul.msk.f32.gmra.mxu3 %vm204_vm1, %v6852_v61  ;;  %10272 = vst [vmem:[#allocation31_spill] sm:$0xff] %v6930_v22 }
  0x5e   : > { %217 = vst.msk [vmem:[#allocation2 + $0xa9] sm:$0xff] %vm204_vm1, %v6930_v22 }
  0x5f   : > { %250 = vst.msk [vmem:[#allocation2 + $0xa7] sm:$0x2] %vm242_vm2, %v6930_v22  ;;  %v6959_v22 = vld [vmem:[#allocation2 + $0x151] sm:$0xff] }
  0x60   : > { %5899 = vmatmul.msk.f32.gmra.mxu0 %vm204_vm1, %v6856_v62  ;;  %10273 = vst [vmem:[#allocation32_spill] sm:$0xff] %v6953_v53 }
  0x61   : > { %218 = vst.msk [vmem:[#allocation2 + $0xb1] sm:$0xff] %vm204_vm1, %v6953_v53 }
  0x62   : > { %5932 = vmatmul.msk.f32.gmra.mxu1 %vm204_vm1, %v6865_v0  ;;  %10274 = vst [vmem:[#allocation33_spill] sm:$0xff] %v6959_v22 }
  0x63   : > { %5916 = vmatmul.msk.f32.gmra.mxu2 %vm204_vm1, %v6876_v2  ;;  %262 = vst.msk [vmem:[#allocation2 + $0xb] sm:$0x40] %vm261_vm3, %v6616_v9 }
  0x64   : > { %263 = vst.msk [vmem:[#allocation2 + $0x23] sm:$0x40] %vm261_vm3, %v6654_v18 }
  0x65   : > { %5949 = vmatmul.msk.f32.gmra.mxu3 %vm204_vm1, %v6880_v3  ;;  %264 = vst.msk [vmem:[#allocation2 + $0x3b] sm:$0x40] %vm261_vm3, %v6616_v9  ;;  %v1606_v9 = vld [vmem:[#allocation2 + $0x1a] sm:$0xff] }
  0x66   : > { %265 = vst.msk [vmem:[#allocation2 + $0x53] sm:$0x40] %vm261_vm3, %v6730_v35  ;;  %v7005_v35 = vld [vmem:[#allocation2 + $0x99] sm:$0xff] }
  0x67   : > { %10275 = vst [vmem:[#allocation34_spill] sm:$0xff] %v6991_v7 }
  0x68   : > { %5900 = vmatmul.msk.f32.gmra.mxu0 %vm204_vm1, %v6884_v4  ;;  %266 = vst.msk [vmem:[#allocation2 + $0x6b] sm:$0x40] %vm261_vm3, %v6786_v47  ;;  %v7016_v47 = vld [vmem:[#allocation2 + $0x98] sm:$0xff] }
  0x69   : > { %267 = vst.msk [vmem:[#allocation2 + $0x83] sm:$0x40] %vm261_vm3, %v6842_v59  ;;  %v6160_v59 = vld [vmem:[%s10125_s1 + $0x20] sm:$0xf] }
  0x6a   : > { %5933 = vmatmul.msk.f32.gmra.mxu1 %vm204_vm1, %v6893_v16  ;;  %268 = vst.msk [vmem:[#allocation2 + $0x9b] sm:$0x40] %vm261_vm3, %v6898_v21  ;;  %6161 = vmatpush.msk.msra.mxu0 %vm443_vm0, %v6160_v59  ;;  %v7037_v59 = vld [vmem:[#allocation2 + $0x168] sm:$0xff] }
  0x6b   : > { %5917 = vmatmul.msk.f32.gmra.mxu2 %vm204_vm1, %v6906_v23  ;;  %269 = vst.msk [vmem:[#allocation2 + $0xb3] sm:$0x40] %vm261_vm3, %v6953_v53  ;;  %v7031_v53 = vld [vmem:[#allocation2 + $0x169] sm:$0xff] }
  0x6c   : > { %270 = vst.msk [vmem:[#allocation2 + $0xcb] sm:$0x40] %vm261_vm3, %v6593_v6  ;;  %v6058_v6 = vld [vmem:[%s10125_s1 + $0x14] sm:$0xf] }
  0x6d   : > { %5950 = vmatmul.msk.f32.gmra.mxu3 %vm204_vm1, %v6912_v57  ;;  %271 = vst.msk [vmem:[#allocation2 + $0xe3] sm:$0x40] %vm261_vm3, %v6629_v12  ;;  %6059 = vmatpush.msk.msrb.mxu1 %vm443_vm0, %v6058_v6  ;;  %v7045_v6 = vld [vmem:[#allocation2 + $0xa9] sm:$0xff] }
  0x6e   : > { %272 = vst.msk [vmem:[#allocation2 + $0xfb] sm:$0x40] %vm261_vm3, %v6661_v20  ;;  %v772_v20 = vld [vmem:[#allocation2 + $0x2] sm:$0xff] }
  0x6f   : > { %273 = vst.msk [vmem:[#allocation2 + $0x113] sm:$0x40] %vm261_vm3, %v6691_v27  ;;  %v7065_v27 = vld [vmem:[#allocation2 + $0xb1] sm:$0xff] }
  0x70   : > { %5901 = vmatmul.msk.f32.gmra.mxu0 %vm204_vm1, %v6916_v45  ;;  %10276 = vst [vmem:[#allocation35_spill] sm:$0xff] %v7031_v53 }
  0x71   : > { %274 = vst.msk [vmem:[#allocation2 + $0x12b] sm:$0x40] %vm261_vm3, %v6747_v39  ;;  %v7053_v39 = vld [vmem:[#allocation2 + $0xa8] sm:$0xff] }
  0x72   : > { %5934 = vmatmul.msk.f32.gmra.mxu1 %vm204_vm1, %v6925_v14  ;;  %10277 = vst [vmem:[#allocation36_spill] sm:$0xff] %v7037_v59 }
  0x73   : > { %5918 = vmatmul.msk.f32.gmra.mxu2 %vm204_vm1, %v6938_v15  ;;  %275 = vst.msk [vmem:[#allocation2 + $0x143] sm:$0x40] %vm261_vm3, %v6803_v51  ;;  %v7061_v51 = vld [vmem:[#allocation2 + $0x170] sm:$0xff] }
  0x74   : > { %276 = vst.msk [vmem:[#allocation2 + $0x15b] sm:$0x40] %vm261_vm3, %v6859_v63  ;;  %v7057_v63 = vld [vmem:[#allocation2 + $0x171] sm:$0xff] }
  0x75   : > { %5951 = vmatmul.msk.f32.gmra.mxu3 %vm204_vm1, %v6942_v8  ;;  %277 = vst.msk [vmem:[#allocation2 + $0x173] sm:$0x40] %vm261_vm3, %v6919_v33 }
  0x76   : > { %279 = vst.msk [vmem:[#allocation2 + $0x1a3] sm:$0x40] %vm261_vm3, %v6919_v33  ;;  %v7069_v33 = vld [vmem:[#allocation2 + $0xb0] sm:$0xff] }
  0x77   : > { %10278 = vst [vmem:[#allocation37_spill] sm:$0xff] %v7057_v63 }
  0x78   : > { %5902 = vmatmul.msk.f32.gmra.mxu0 %vm204_vm1, %v6946_v5  ;;  %10279 = vst [vmem:[#allocation38_spill] sm:$0xff] %v7061_v51 }
  0x7a   : > { %5935 = vmatmul.msk.f32.gmra.mxu1 %vm204_vm1, %v6950_v1 }
  0x7b   : > { %5919 = vmatmul.msk.f32.gmra.mxu2 %vm204_vm1, %v6959_v22  ;;  %v6980_v22 = vld [vmem:[#allocation2 + $0x90] sm:$0xff] }
  0x7d   : > { %5952 = vmatmul.msk.f32.gmra.mxu3 %vm204_vm1, %v6963_v41 }
  0x80   : > { %5903 = vmatmul.msk.f32.gmra.mxu0 %vm204_vm1, %v6967_v29 }
  0x82   : > { %5936 = vmatmul.msk.f32.gmra.mxu1 %vm204_vm1, %v6980_v22 }
  0x83   : > { %5920 = vmatmul.msk.f32.gmra.mxu2 %vm204_vm1, %v6991_v7 }
  0x85   : > { %5953 = vmatmul.msk.f32.gmra.mxu3 %vm204_vm1, %v6997_v13 }
  0x88   : > { %5904 = vmatmul.msk.f32.gmra.mxu0 %vm204_vm1, %v7005_v35 }
  0x8a   : > { %5937 = vmatmul.msk.f32.gmra.mxu1 %vm204_vm1, %v7016_v47 }
  0x8b   : > { %5921 = vmatmul.msk.f32.gmra.mxu2 %vm204_vm1, %v7031_v53  ;;  %v773_v53 = vld [vmem:[#allocation2 + $0xa] sm:$0xff] }
  0x8d   : > { %5954 = vmatmul.msk.f32.gmra.mxu3 %vm204_vm1, %v7037_v59  ;;  %v1607_v59 = vld [vmem:[#allocation2 + $0x22] sm:$0xff] }
  0x90   : > { %5905 = vmatmul.msk.f32.gmra.mxu0 %vm204_vm1, %v7045_v6 }
  0x92   : > { %5938 = vmatmul.msk.f32.gmra.mxu1 %vm204_vm1, %v7053_v39 }
  0x93   : > { %5922 = vmatmul.msk.f32.gmra.mxu2 %vm204_vm1, %v7057_v63 }
  0x95   : > { %5955 = vmatmul.msk.f32.gmra.mxu3 %vm204_vm1, %v7061_v51 }
  0x98   : > { %5906 = vmatmul.msk.f32.gmra.mxu0 %vm204_vm1, %v7065_v27 }
  0x9a   : > { %5939 = vmatmul.msk.f32.gmra.mxu1 %vm204_vm1, %v7069_v33 }
  0x9b   : > { %5958 = vmatmul.msk.f32.vlgmr.msrb.gmra.mxu2 %vm204_vm1, %v772_v20 }
  0x9c   : > { %v7076_v12 = vpop.f32.mrf.mxu0 }
  0x9d   : > { %5992 = vmatmul.msk.f32.vlgmr.msrb.gmra.mxu3 %vm204_vm1, %v6697_v28 }
  0x9e   : > { %v512_v18 = vpop.f32.mrf.mxu2 }
  0x9f   : > { %v7080_v21 = vpop.f32.mrf.mxu1 }
  0xa0   : > { %6026 = vmatmul.msk.f32.vlgmr.msrb.gmra.mxu0 %vm204_vm1, %v6688_v26  ;;  %v724_v63 = vpop.f32.mrf.mxu3 }
  0xa1   : > { %v7084_v51 = vadd.f32 %v724_v63, %v512_v18  ;;  %v7106_v63 = vld [vmem:[#allocation2 + $0x32] sm:$0xff] }
  0xa2   : > { %6060 = vmatmul.msk.f32.vlgmr.msrb.gmra.mxu1 %vm204_vm1, %v1606_v9  ;;  %10282 = vst [vmem:[#allocation41_spill] sm:$0xff] %v7106_v63 }
  0xa3   : > { %10280 = vst [vmem:[#allocation39_spill] sm:$0xff] %v7084_v51  ;;  %5959 = vmatmul.msk.f32.gmra.mxu2 %vm204_vm1, %v773_v53 }
  0xa5   : > { %v7088_v20 = vpop.f32.mrf.mxu0  ;;  %5993 = vmatmul.msk.f32.gmra.mxu3 %vm204_vm1, %v6725_v34 }
  0xa6   : > { %v515_v7 = vpop.f32.mrf.mxu2 }
  0xa7   : > { %v7092_v28 = vpop.f32.mrf.mxu1 }
  0xa8   : > { %6027 = vmatmul.msk.f32.gmra.mxu0 %vm204_vm1, %v6716_v32  ;;  %v727_v26 = vpop.f32.mrf.mxu3 }
  0xa9   : > { %v7096_v18 = vadd.f32 %v727_v26, %v515_v7  ;;  %v7121_v26 = vld [vmem:[#allocation2 + $0x3a] sm:$0xff] }
  0xaa   : > { %6061 = vmatmul.msk.f32.gmra.mxu1 %vm204_vm1, %v1607_v59  ;;  %10284 = vst [vmem:[#allocation43_spill] sm:$0xff] %v7121_v26 }
  0xab   : > { %10281 = vst [vmem:[#allocation40_spill] sm:$0xff] %v7096_v18  ;;  %5960 = vmatmul.msk.f32.gmra.mxu2 %vm204_vm1, %v1606_v9 }
  0xad   : > { %v7100_v53 = vpop.f32.mrf.mxu0  ;;  %5994 = vmatmul.msk.f32.gmra.mxu3 %vm204_vm1, %v6753_v40 }
  0xae   : > { %v518_v51 = vpop.f32.mrf.mxu2 }
  0xaf   : > { %v7104_v34 = vpop.f32.mrf.mxu1 }
  0xb0   : > { %6028 = vmatmul.msk.f32.gmra.mxu0 %vm204_vm1, %v6744_v38  ;;  %v730_v32 = vpop.f32.mrf.mxu3 }
  0xb1   : > { %v7110_v7 = vadd.f32 %v730_v32, %v518_v51  ;;  %v7137_v32 = vld [vmem:[#allocation2 + $0x4a] sm:$0xff] }
  0xb2   : > { %6062 = vmatmul.msk.f32.gmra.mxu1 %vm204_vm1, %v7106_v63  ;;  %10286 = vst [vmem:[#allocation45_spill] sm:$0xff] %v7137_v32 }
  0xb3   : > { %10283 = vst [vmem:[#allocation42_spill] sm:$0xff] %v7110_v7  ;;  %5961 = vmatmul.msk.f32.gmra.mxu2 %vm204_vm1, %v1607_v59 }
  0xb5   : > { %v7115_v9 = vpop.f32.mrf.mxu0  ;;  %5995 = vmatmul.msk.f32.gmra.mxu3 %vm204_vm1, %v6781_v46 }
  0xb6   : > { %v521_v18 = vpop.f32.mrf.mxu2 }
  0xb7   : > { %v7119_v40 = vpop.f32.mrf.mxu1 }
  0xb8   : > { %6029 = vmatmul.msk.f32.gmra.mxu0 %vm204_vm1, %v6772_v44  ;;  %v733_v38 = vpop.f32.mrf.mxu3 }
  0xb9   : > { %v7125_v51 = vadd.f32 %v733_v38, %v521_v18 }
  0xba   : > { %6063 = vmatmul.msk.f32.gmra.mxu1 %vm204_vm1, %v7121_v26 }
  0xbb   : > { %10285 = vst [vmem:[#allocation44_spill] sm:$0xff] %v7125_v51  ;;  %5962 = vmatmul.msk.f32.gmra.mxu2 %vm204_vm1, %v7106_v63  ;;  %v7153_v51 = vld [vmem:[#allocation2 + $0x52] sm:$0xff] }
  0xbc   : > { %10288 = vst [vmem:[#allocation47_spill] sm:$0xff] %v7153_v51 }
  0xbd   : > { %v7131_v59 = vpop.f32.mrf.mxu0  ;;  %5996 = vmatmul.msk.f32.gmra.mxu3 %vm204_vm1, %v6809_v52 }
  0xbe   : > { %v524_v7 = vpop.f32.mrf.mxu2 }
  0xbf   : > { %v7135_v46 = vpop.f32.mrf.mxu1 }
  0xc0   : > { %6030 = vmatmul.msk.f32.gmra.mxu0 %vm204_vm1, %v6800_v50  ;;  %v736_v44 = vpop.f32.mrf.mxu3 }
  0xc1   : > { %v7141_v18 = vadd.f32 %v736_v44, %v524_v7 }
  0xc2   : > { %6064 = vmatmul.msk.f32.gmra.mxu1 %vm204_vm1, %v7137_v32 }
  0xc3   : > { %10287 = vst [vmem:[#allocation46_spill] sm:$0xff] %v7141_v18  ;;  %5963 = vmatmul.msk.f32.gmra.mxu2 %vm204_vm1, %v7121_v26  ;;  %v7169_v18 = vld [vmem:[#allocation2 + $0x62] sm:$0xff] }
  0xc4   : > { %10290 = vst [vmem:[#allocation49_spill] sm:$0xff] %v7169_v18 }
  0xc5   : > { %v7147_v38 = vpop.f32.mrf.mxu0  ;;  %5997 = vmatmul.msk.f32.gmra.mxu3 %vm204_vm1, %v6837_v58 }
  0xc6   : > { %v527_v63 = vpop.f32.mrf.mxu2 }
  0xc7   : > { %v7151_v52 = vpop.f32.mrf.mxu1 }
  0xc8   : > { %6031 = vmatmul.msk.f32.gmra.mxu0 %vm204_vm1, %v6828_v56  ;;  %v739_v50 = vpop.f32.mrf.mxu3 }
  0xc9   : > { %v7157_v7 = vadd.f32 %v739_v50, %v527_v63 }
  0xca   : > { %6065 = vmatmul.msk.f32.gmra.mxu1 %vm204_vm1, %v7153_v51 }
  0xcb   : > { %10289 = vst [vmem:[#allocation48_spill] sm:$0xff] %v7157_v7  ;;  %5964 = vmatmul.msk.f32.gmra.mxu2 %vm204_vm1, %v7137_v32  ;;  %v7185_v7 = vld [vmem:[#allocation2 + $0x6a] sm:$0xff] }
  0xcc   : > { %10292 = vst [vmem:[#allocation51_spill] sm:$0xff] %v7185_v7 }
  0xcd   : > { %v7163_v44 = vpop.f32.mrf.mxu0  ;;  %5998 = vmatmul.msk.f32.gmra.mxu3 %vm204_vm1, %v6865_v0 }
  0xce   : > { %v530_v26 = vpop.f32.mrf.mxu2 }
  0xcf   : > { %v7167_v58 = vpop.f32.mrf.mxu1 }
  0xd0   : > { %6032 = vmatmul.msk.f32.gmra.mxu0 %vm204_vm1, %v6856_v62  ;;  %v742_v56 = vpop.f32.mrf.mxu3 }
  0xd1   : > { %v7173_v63 = vadd.f32 %v742_v56, %v530_v26 }
  0xd2   : > { %6066 = vmatmul.msk.f32.gmra.mxu1 %vm204_vm1, %v7169_v18 }
  0xd3   : > { %10291 = vst [vmem:[#allocation50_spill] sm:$0xff] %v7173_v63  ;;  %5965 = vmatmul.msk.f32.gmra.mxu2 %vm204_vm1, %v7153_v51  ;;  %v7201_v63 = vld [vmem:[#allocation2 + $0x7a] sm:$0xff] }
  0xd4   : > { %10294 = vst [vmem:[#allocation53_spill] sm:$0xff] %v7201_v63 }
  0xd5   : > { %v7179_v50 = vpop.f32.mrf.mxu0  ;;  %5999 = vmatmul.msk.f32.gmra.mxu3 %vm204_vm1, %v6893_v16 }
  0xd6   : > { %v533_v32 = vpop.f32.mrf.mxu2 }
  0xd7   : > { %v7183_v0 = vpop.f32.mrf.mxu1 }
  0xd8   : > { %6033 = vmatmul.msk.f32.gmra.mxu0 %vm204_vm1, %v6884_v4  ;;  %v745_v62 = vpop.f32.mrf.mxu3 }
  0xd9   : > { %v7189_v26 = vadd.f32 %v745_v62, %v533_v32 }
  0xda   : > { %6067 = vmatmul.msk.f32.gmra.mxu1 %vm204_vm1, %v7185_v7 }
  0xdb   : > { %10293 = vst [vmem:[#allocation52_spill] sm:$0xff] %v7189_v26  ;;  %5966 = vmatmul.msk.f32.gmra.mxu2 %vm204_vm1, %v7169_v18  ;;  %v7217_v26 = vld [vmem:[#allocation2 + $0x82] sm:$0xff] }
  0xdc   : > { %10296 = vst [vmem:[#allocation55_spill] sm:$0xff] %v7217_v26 }
  0xdd   : > { %v7195_v56 = vpop.f32.mrf.mxu0  ;;  %6000 = vmatmul.msk.f32.gmra.mxu3 %vm204_vm1, %v6925_v14 }
  0xde   : > { %v536_v51 = vpop.f32.mrf.mxu2 }
  0xdf   : > { %v7199_v16 = vpop.f32.mrf.mxu1 }
  0xe0   : > { %6034 = vmatmul.msk.f32.gmra.mxu0 %vm204_vm1, %v6916_v45  ;;  %v748_v4 = vpop.f32.mrf.mxu3 }
  0xe1   : > { %v7205_v32 = vadd.f32 %v748_v4, %v536_v51 }
  0xe2   : > { %6068 = vmatmul.msk.f32.gmra.mxu1 %vm204_vm1, %v7201_v63 }
  0xe3   : > { %10295 = vst [vmem:[#allocation54_spill] sm:$0xff] %v7205_v32  ;;  %5967 = vmatmul.msk.f32.gmra.mxu2 %vm204_vm1, %v7185_v7  ;;  %v7233_v32 = vld [vmem:[#allocation2 + $0x92] sm:$0xff] }
  0xe4   : > { %10298 = vst [vmem:[#allocation57_spill] sm:$0xff] %v7233_v32 }
  0xe5   : > { %v7211_v62 = vpop.f32.mrf.mxu0  ;;  %6001 = vmatmul.msk.f32.gmra.mxu3 %vm204_vm1, %v6950_v1 }
  0xe6   : > { %v539_v18 = vpop.f32.mrf.mxu2 }
  0xe7   : > { %v7215_v14 = vpop.f32.mrf.mxu1 }
  0xe8   : > { %6035 = vmatmul.msk.f32.gmra.mxu0 %vm204_vm1, %v6946_v5  ;;  %v751_v45 = vpop.f32.mrf.mxu3 }
  0xe9   : > { %v7221_v51 = vadd.f32 %v751_v45, %v539_v18 }
  0xea   : > { %6069 = vmatmul.msk.f32.gmra.mxu1 %vm204_vm1, %v7217_v26 }
  0xeb   : > { %10297 = vst [vmem:[#allocation56_spill] sm:$0xff] %v7221_v51  ;;  %5968 = vmatmul.msk.f32.gmra.mxu2 %vm204_vm1, %v7201_v63  ;;  %v7249_v51 = vld [vmem:[#allocation2 + $0x9a] sm:$0xff] }
  0xec   : > { %10300 = vst [vmem:[#allocation59_spill] sm:$0xff] %v7249_v51 }
  0xed   : > { %v7227_v4 = vpop.f32.mrf.mxu0  ;;  %6002 = vmatmul.msk.f32.gmra.mxu3 %vm204_vm1, %v6980_v22 }
  0xee   : > { %v542_v7 = vpop.f32.mrf.mxu2 }
  0xef   : > { %v7231_v1 = vpop.f32.mrf.mxu1 }
  0xf0   : > { %6036 = vmatmul.msk.f32.gmra.mxu0 %vm204_vm1, %v6967_v29  ;;  %v754_v5 = vpop.f32.mrf.mxu3 }
  0xf1   : > { %v7237_v18 = vadd.f32 %v754_v5, %v542_v7 }
  0xf2   : > { %6070 = vmatmul.msk.f32.gmra.mxu1 %vm204_vm1, %v7233_v32 }
  0xf3   : > { %10299 = vst [vmem:[#allocation58_spill] sm:$0xff] %v7237_v18  ;;  %5969 = vmatmul.msk.f32.gmra.mxu2 %vm204_vm1, %v7217_v26  ;;  %v7265_v18 = vld [vmem:[#allocation2 + $0xaa] sm:$0xff] }
  0xf4   : > { %10302 = vst [vmem:[#allocation61_spill] sm:$0xff] %v7265_v18 }
  0xf5   : > { %v7243_v45 = vpop.f32.mrf.mxu0  ;;  %6003 = vmatmul.msk.f32.gmra.mxu3 %vm204_vm1, %v7016_v47 }
  0xf6   : > { %v545_v63 = vpop.f32.mrf.mxu2 }
  0xf7   : > { %v7247_v22 = vpop.f32.mrf.mxu1 }
  0xf8   : > { %6037 = vmatmul.msk.f32.gmra.mxu0 %vm204_vm1, %v7005_v35  ;;  %v757_v29 = vpop.f32.mrf.mxu3 }
  0xf9   : > { %v7253_v7 = vadd.f32 %v757_v29, %v545_v63 }
  0xfa   : > { %6071 = vmatmul.msk.f32.gmra.mxu1 %vm204_vm1, %v7249_v51 }
  0xfb   : > { %10301 = vst [vmem:[#allocation60_spill] sm:$0xff] %v7253_v7  ;;  %5970 = vmatmul.msk.f32.gmra.mxu2 %vm204_vm1, %v7233_v32  ;;  %v7281_v7 = vld [vmem:[#allocation2 + $0xb2] sm:$0xff] }
  0xfc   : > { %10304 = vst [vmem:[#allocation63_spill] sm:$0xff] %v7281_v7 }
  0xfd   : > { %v7259_v5 = vpop.f32.mrf.mxu0  ;;  %6004 = vmatmul.msk.f32.gmra.mxu3 %vm204_vm1, %v7053_v39 }
  0xfe   : > { %v548_v26 = vpop.f32.mrf.mxu2 }
  0xff   : > { %v7263_v47 = vpop.f32.mrf.mxu1 }
 0x100   : > { %6038 = vmatmul.msk.f32.gmra.mxu0 %vm204_vm1, %v7045_v6  ;;  %v760_v35 = vpop.f32.mrf.mxu3 }
 0x101   : > { %v7269_v63 = vadd.f32 %v760_v35, %v548_v26 }
 0x102   : > { %6072 = vmatmul.msk.f32.gmra.mxu1 %vm204_vm1, %v7265_v18 }
 0x103   : > { %10303 = vst [vmem:[#allocation62_spill] sm:$0xff] %v7269_v63  ;;  %5971 = vmatmul.msk.f32.gmra.mxu2 %vm204_vm1, %v7249_v51  ;;  %v7297_v63 = vld [vmem:[#allocation2 + $0xc2] sm:$0xff] }
 0x104   : > { %10306 = vst [vmem:[#allocation65_spill] sm:$0xff] %v7297_v63 }
 0x105   : > { %v7275_v29 = vpop.f32.mrf.mxu0  ;;  %6005 = vmatmul.msk.f32.gmra.mxu3 %vm204_vm1, %v7069_v33 }
 0x106   : > { %v551_v32 = vpop.f32.mrf.mxu2 }
 0x107   : > { %v7279_v39 = vpop.f32.mrf.mxu1 }
 0x108   : > { %6039 = vmatmul.msk.f32.gmra.mxu0 %vm204_vm1, %v7065_v27  ;;  %v763_v6 = vpop.f32.mrf.mxu3 }
 0x109   : > { %v7285_v26 = vadd.f32 %v763_v6, %v551_v32 }
 0x10a   : > { %6073 = vmatmul.msk.f32.gmra.mxu1 %vm204_vm1, %v7281_v7 }
 0x10b   : > { %10305 = vst [vmem:[#allocation64_spill] sm:$0xff] %v7285_v26  ;;  %5972 = vmatmul.msk.f32.gmra.mxu2 %vm204_vm1, %v7265_v18  ;;  %v7313_v26 = vld [vmem:[#allocation2 + $0xca] sm:$0xff] }
 0x10d   : > { %v7291_v35 = vpop.f32.mrf.mxu0  ;;  %6006 = vmatmul.msk.f32.gmra.mxu3 %vm204_vm1, %v6624_v11 }
 0x10e   : > { %v554_v51 = vpop.f32.mrf.mxu2 }
 0x10f   : > { %v7295_v33 = vpop.f32.mrf.mxu1 }
 0x110   : > { %6040 = vmatmul.msk.f32.gmra.mxu0 %vm204_vm1, %v6618_v10  ;;  %v766_v27 = vpop.f32.mrf.mxu3 }
 0x111   : > { %v7301_v32 = vadd.f32 %v766_v27, %v554_v51 }
 0x112   : > { %6074 = vmatmul.msk.f32.gmra.mxu1 %vm204_vm1, %v7297_v63 }
 0x113   : > { %10307 = vst [vmem:[#allocation66_spill] sm:$0xff] %v7301_v32  ;;  %5973 = vmatmul.msk.f32.gmra.mxu2 %vm204_vm1, %v7281_v7  ;;  %v7327_v7 = vld [vmem:[#allocation2 + $0xda] sm:$0xff] }
 0x115   : > { %v7307_v6 = vpop.f32.mrf.mxu0  ;;  %6007 = vmatmul.msk.f32.gmra.mxu3 %vm204_vm1, %v6656_v19  ;;  %v677_v19 = vadd.f32 %v7080_v21, %v7076_v12  ;;  %v680_v12 = vadd.f32 %v7092_v28, %v7088_v20  ;;  %v683_v20 = vadd.f32 %v7104_v34, %v7100_v53  ;;  %v686_v53 = vadd.f32 %v7119_v40, %v7115_v9 }
 0x116   : > { %v557_v18 = vpop.f32.mrf.mxu2  ;;  %v689_v9 = vadd.f32 %v7135_v46, %v7131_v59  ;;  %v692_v59 = vadd.f32 %v7151_v52, %v7147_v38  ;;  %v695_v38 = vadd.f32 %v7167_v58, %v7163_v44  ;;  %v698_v44 = vadd.f32 %v7183_v0, %v7179_v50  ;;  %v7439_v0 = vld [vmem:[#allocation2 + $0x13a] sm:$0xff] }
 0x117   : > { %v7311_v11 = vpop.f32.mrf.mxu1  ;;  %v701_v50 = vadd.f32 %v7199_v16, %v7195_v56  ;;  %v704_v56 = vadd.f32 %v7215_v14, %v7211_v62  ;;  %v7453_v16 = vld [vmem:[#allocation2 + $0x142] sm:$0xff] }
 0x118   : > { %6041 = vmatmul.msk.f32.gmra.mxu0 %vm204_vm1, %v6648_v17  ;;  %v769_v10 = vpop.f32.mrf.mxu3 }
 0x119   : > { %v7317_v51 = vadd.f32 %v769_v10, %v557_v18 }
 0x11a   : > { %6075 = vmatmul.msk.f32.gmra.mxu1 %vm204_vm1, %v7313_v26 }
 0x11b   : > { %10308 = vst [vmem:[#allocation67_spill] sm:$0xff] %v7317_v51  ;;  %5974 = vmatmul.msk.f32.gmra.mxu2 %vm204_vm1, %v7297_v63 }
 0x11d   : > { %v1478_v27 = vpop.f32.mrf.mxu0  ;;  %6008 = vmatmul.msk.f32.gmra.mxu3 %vm204_vm1, %v6684_v25 }
 0x11e   : > { %v922_v17 = vpop.f32.mrf.mxu2 }
 0x11f   : > { %v1756_v32 = vpop.f32.mrf.mxu1  ;;  %v1018_v18 = vadd.f32 %v922_v17, %v677_v19  ;;  %v7341_v19 = vld [vmem:[#allocation2 + $0xe2] sm:$0xff] }
 0x120   : > { %6042 = vmatmul.msk.f32.gmra.mxu0 %vm204_vm1, %v6681_v24  ;;  %v1200_v10 = vpop.f32.mrf.mxu3 }
 0x121   : > { %v1296_v51 = vadd.f32 %v1200_v10, %v1018_v18 }
 0x122   : > { %6076 = vmatmul.msk.f32.gmra.mxu1 %vm204_vm1, %v7327_v7 }
 0x123   : > { %v1574_v63 = vadd.f32 %v1478_v27, %v1296_v51  ;;  %5975 = vmatmul.msk.f32.gmra.mxu2 %vm204_vm1, %v7313_v26 }
 0x125   : > { %v1481_v25 = vpop.f32.mrf.mxu0  ;;  %6009 = vmatmul.msk.f32.gmra.mxu3 %vm204_vm1, %v6712_v31  ;;  %v7339_v21 = vadd.f32 %v1756_v32, %v1574_v63  ;;  %v7355_v63 = vld [vmem:[#allocation2 + $0xf2] sm:$0xff] }
 0x126   : > { %v925_v17 = vpop.f32.mrf.mxu2 }
 0x127   : > { %v1759_v24 = vpop.f32.mrf.mxu1  ;;  %v1019_v51 = vadd.f32 %v925_v17, %v680_v12 }
 0x128   : > { %6043 = vmatmul.msk.f32.gmra.mxu0 %vm204_vm1, %v6708_v30  ;;  %v1203_v27 = vpop.f32.mrf.mxu3 }
 0x129   : > { %v1297_v18 = vadd.f32 %v1203_v27, %v1019_v51 }
 0x12a   : > { %6077 = vmatmul.msk.f32.gmra.mxu1 %vm204_vm1, %v7341_v19 }
 0x12b   : > { %v1575_v10 = vadd.f32 %v1481_v25, %v1297_v18  ;;  %5976 = vmatmul.msk.f32.gmra.mxu2 %vm204_vm1, %v7327_v7 }
 0x12d   : > { %v1484_v31 = vpop.f32.mrf.mxu0  ;;  %6010 = vmatmul.msk.f32.gmra.mxu3 %vm204_vm1, %v6740_v37  ;;  %v7353_v28 = vadd.f32 %v1759_v24, %v1575_v10  ;;  %v7369_v24 = vld [vmem:[#allocation2 + $0xfa] sm:$0xff] }
 0x12e   : > { %v928_v32 = vpop.f32.mrf.mxu2 }
 0x12f   : > { %v1762_v30 = vpop.f32.mrf.mxu1  ;;  %v1020_v25 = vadd.f32 %v928_v32, %v683_v20 }
 0x130   : > { %6044 = vmatmul.msk.f32.gmra.mxu0 %vm204_vm1, %v6736_v36  ;;  %v1206_v12 = vpop.f32.mrf.mxu3 }
 0x131   : > { %v1298_v17 = vadd.f32 %v1206_v12, %v1020_v25 }
 0x132   : > { %6078 = vmatmul.msk.f32.gmra.mxu1 %vm204_vm1, %v7355_v63 }
 0x133   : > { %v1576_v51 = vadd.f32 %v1484_v31, %v1298_v17  ;;  %5977 = vmatmul.msk.f32.gmra.mxu2 %vm204_vm1, %v7341_v19 }
 0x135   : > { %v1487_v37 = vpop.f32.mrf.mxu0  ;;  %6011 = vmatmul.msk.f32.gmra.mxu3 %vm204_vm1, %v6768_v43  ;;  %v7367_v34 = vadd.f32 %v1762_v30, %v1576_v51  ;;  %v7383_v30 = vld [vmem:[#allocation2 + $0x10a] sm:$0xff] }
 0x136   : > { %v931_v27 = vpop.f32.mrf.mxu2 }
 0x137   : > { %v1765_v36 = vpop.f32.mrf.mxu1  ;;  %v1021_v18 = vadd.f32 %v931_v27, %v686_v53 }
 0x138   : > { %6045 = vmatmul.msk.f32.gmra.mxu0 %vm204_vm1, %v6764_v42  ;;  %v1209_v10 = vpop.f32.mrf.mxu3 }
 0x139   : > { %v1299_v31 = vadd.f32 %v1209_v10, %v1021_v18 }
 0x13a   : > { %6079 = vmatmul.msk.f32.gmra.mxu1 %vm204_vm1, %v7369_v24 }
 0x13b   : > { %v1577_v20 = vadd.f32 %v1487_v37, %v1299_v31  ;;  %5978 = vmatmul.msk.f32.gmra.mxu2 %vm204_vm1, %v7355_v63 }
 0x13d   : > { %v1490_v43 = vpop.f32.mrf.mxu0  ;;  %6012 = vmatmul.msk.f32.gmra.mxu3 %vm204_vm1, %v6796_v49  ;;  %v7381_v40 = vadd.f32 %v1765_v36, %v1577_v20 }
 0x13e   : > { %v934_v32 = vpop.f32.mrf.mxu2 }
 0x13f   : > { %v1768_v42 = vpop.f32.mrf.mxu1  ;;  %v1022_v25 = vadd.f32 %v934_v32, %v689_v9 }
 0x140   : > { %6046 = vmatmul.msk.f32.gmra.mxu0 %vm204_vm1, %v6792_v48  ;;  %v1212_v12 = vpop.f32.mrf.mxu3  ;;  %v7397_v48 = vld [vmem:[#allocation2 + $0x112] sm:$0xff] }
 0x141   : > { %v1300_v17 = vadd.f32 %v1212_v12, %v1022_v25 }
 0x142   : > { %6080 = vmatmul.msk.f32.gmra.mxu1 %vm204_vm1, %v7383_v30 }
 0x143   : > { %v1578_v51 = vadd.f32 %v1490_v43, %v1300_v17  ;;  %5979 = vmatmul.msk.f32.gmra.mxu2 %vm204_vm1, %v7369_v24 }
 0x145   : > { %v1493_v49 = vpop.f32.mrf.mxu0  ;;  %6013 = vmatmul.msk.f32.gmra.mxu3 %vm204_vm1, %v6824_v55  ;;  %v7395_v46 = vadd.f32 %v1768_v42, %v1578_v51 }
 0x146   : > { %v937_v37 = vpop.f32.mrf.mxu2 }
 0x147   : > { %v1771_v53 = vpop.f32.mrf.mxu1  ;;  %v1023_v36 = vadd.f32 %v937_v37, %v692_v59 }
 0x148   : > { %6047 = vmatmul.msk.f32.gmra.mxu0 %vm204_vm1, %v6820_v54  ;;  %v1215_v27 = vpop.f32.mrf.mxu3  ;;  %v7411_v54 = vld [vmem:[#allocation2 + $0x122] sm:$0xff] }
 0x149   : > { %v1301_v18 = vadd.f32 %v1215_v27, %v1023_v36 }
 0x14a   : > { %6081 = vmatmul.msk.f32.gmra.mxu1 %vm204_vm1, %v7397_v48 }
 0x14b   : > { %v1579_v10 = vadd.f32 %v1493_v49, %v1301_v18  ;;  %5980 = vmatmul.msk.f32.gmra.mxu2 %vm204_vm1, %v7383_v30 }
 0x14d   : > { %v1496_v55 = vpop.f32.mrf.mxu0  ;;  %6014 = vmatmul.msk.f32.gmra.mxu3 %vm204_vm1, %v6852_v61  ;;  %v7409_v52 = vadd.f32 %v1771_v53, %v1579_v10 }
 0x14e   : > { %v940_v31 = vpop.f32.mrf.mxu2 }
 0x14f   : > { %v1024_v20 = vadd.f32 %v940_v31, %v695_v38  ;;  %v1774_v9 = vpop.f32.mrf.mxu1  ;;  %v7474_v31 = vld [vmem:[#allocation2 + $0x152] sm:$0xff] }
 0x150   : > { %6048 = vmatmul.msk.f32.gmra.mxu0 %vm204_vm1, %v6848_v60  ;;  %v1218_v43 = vpop.f32.mrf.mxu3  ;;  %v7425_v60 = vld [vmem:[#allocation2 + $0x12a] sm:$0xff] }
 0x151   : > { %v1302_v42 = vadd.f32 %v1218_v43, %v1024_v20  ;;  %v7477_v20 = vld [vmem:[%s6587_s27 + $0xf8] sm:$0xff] }
 0x152   : > { %6082 = vmatmul.msk.f32.gmra.mxu1 %vm204_vm1, %v7411_v54  ;;  %10310 = vst [vmem:[#allocation69_spill] sm:$0xff] %v7477_v20 }
 0x153   : > { %v1580_v32 = vadd.f32 %v1496_v55, %v1302_v42  ;;  %5981 = vmatmul.msk.f32.gmra.mxu2 %vm204_vm1, %v7397_v48  ;;  %236 = vst.msk [vmem:[#allocation2 + $0x189] sm:$0xff] %vm204_vm1, %v7477_v20 }
 0x154   : > { %278 = vst.msk [vmem:[#allocation2 + $0x18b] sm:$0x40] %vm261_vm3, %v7477_v20 }
 0x155   : > { %v1499_v61 = vpop.f32.mrf.mxu0  ;;  %6015 = vmatmul.msk.f32.gmra.mxu3 %vm204_vm1, %v6880_v3  ;;  %v7423_v58 = vadd.f32 %v1774_v9, %v1580_v32  ;;  %v10311_v9 = vld [vmem:[#allocation33_spill] sm:$0xff] }
 0x156   : > { %v943_v25 = vpop.f32.mrf.mxu2 }
 0x157   : > { %v1025_v12 = vadd.f32 %v943_v25, %v698_v44  ;;  %v1777_v49 = vpop.f32.mrf.mxu1  ;;  %v7495_v44 = vld [vmem:[#allocation2 + $0x15a] sm:$0xff] }
 0x158   : > { %6049 = vmatmul.msk.f32.gmra.mxu0 %vm204_vm1, %v6876_v2  ;;  %v1221_v17 = vpop.f32.mrf.mxu3 }
 0x159   : > { %v1303_v51 = vadd.f32 %v1221_v17, %v1025_v12  ;;  %v10312_v12 = vld [vmem:[#allocation34_spill] sm:$0xff] }
 0x15a   : > { %6083 = vmatmul.msk.f32.gmra.mxu1 %vm204_vm1, %v7425_v60 }
 0x15b   : > { %v1581_v59 = vadd.f32 %v1499_v61, %v1303_v51  ;;  %5982 = vmatmul.msk.f32.gmra.mxu2 %vm204_vm1, %v7411_v54  ;;  %v710_v61 = vadd.f32 %v7247_v22, %v7243_v45  ;;  %v713_v45 = vadd.f32 %v7263_v47, %v7259_v5  ;;  %v7509_v22 = vld [vmem:[#allocation2 + $0x16a] sm:$0xff]  ;;  %v716_v5 = vadd.f32 %v7279_v39, %v7275_v29  ;;  %v7523_v47 = vld [vmem:[#allocation2 + $0x172] sm:$0xff] }
 0x15d   : > { %v1502_v3 = vpop.f32.mrf.mxu0  ;;  %6016 = vmatmul.msk.f32.gmra.mxu3 %vm204_vm1, %v6912_v57  ;;  %v7437_v2 = vadd.f32 %v1777_v49, %v1581_v59 }
 0x15e   : > { %v946_v37 = vpop.f32.mrf.mxu2 }
 0x15f   : > { %v1026_v53 = vadd.f32 %v946_v37, %v701_v50  ;;  %v10314_v37 = vld [vmem:[#allocation35_spill] sm:$0xff] }
 0x160   : > { %6050 = vmatmul.msk.f32.gmra.mxu0 %vm204_vm1, %v6906_v23  ;;  %v1224_v36 = vpop.f32.mrf.mxu3  ;;  %v7456_v23 = vld [vmem:[%s6587_s27 + $0xf0] sm:$0xff] }
 0x161   : > { %v1304_v27 = vadd.f32 %v1224_v36, %v1026_v53  ;;  %10309 = vst [vmem:[#allocation68_spill] sm:$0xff] %v7456_v23 }
 0x162   : > { %6084 = vmatmul.msk.f32.gmra.mxu1 %vm204_vm1, %v7439_v0  ;;  %235 = vst.msk [vmem:[#allocation2 + $0x181] sm:$0xff] %vm204_vm1, %v7456_v23 }
 0x163   : > { %v7445_v18 = vadd.f32 %v1502_v3, %v1304_v27  ;;  %5983 = vmatmul.msk.f32.gmra.mxu2 %vm204_vm1, %v7425_v60  ;;  %259 = vst.msk [vmem:[#allocation2 + $0x17f] sm:$0x2] %vm242_vm2, %v7456_v23  ;;  %v10313_v3 = vld [vmem:[#allocation36_spill] sm:$0xff] }
 0x165   : > { %v1505_v57 = vpop.f32.mrf.mxu0  ;;  %6017 = vmatmul.msk.f32.gmra.mxu3 %vm204_vm1, %v6942_v8 }
 0x166   : > { %v949_v10 = vpop.f32.mrf.mxu2 }
 0x167   : > { %v1027_v55 = vadd.f32 %v949_v10, %v704_v56  ;;  %v10315_v10 = vld [vmem:[#allocation38_spill] sm:$0xff] }
 0x168   : > { %6051 = vmatmul.msk.f32.gmra.mxu0 %vm204_vm1, %v6938_v15  ;;  %v1227_v38 = vpop.f32.mrf.mxu3  ;;  %v707_v15 = vadd.f32 %v7231_v1, %v7227_v4 }
 0x169   : > { %v1305_v8 = vadd.f32 %v1227_v38, %v1027_v55  ;;  %v10316_v38 = vld [vmem:[#allocation37_spill] sm:$0xff] }
 0x16a   : > { %6085 = vmatmul.msk.f32.gmra.mxu1 %vm204_vm1, %v7453_v16  ;;  %v7535_v39 = vld [vmem:[#allocation2 + $0x181] sm:$0xff] }
 0x16b   : > { %v7466_v62 = vadd.f32 %v1505_v57, %v1305_v8  ;;  %5984 = vmatmul.msk.f32.gmra.mxu2 %vm204_vm1, %v7439_v0 }
 0x16d   : > { %v1508_v14 = vpop.f32.mrf.mxu0  ;;  %6018 = vmatmul.msk.f32.gmra.mxu3 %vm204_vm1, %v6963_v41 }
 0x16e   : > { %v952_v43 = vpop.f32.mrf.mxu2 }
 0x16f   : > { %v1028_v42 = vadd.f32 %v952_v43, %v707_v15  ;;  %v7529_v43 = vld [vmem:[#allocation2 + $0x180] sm:$0xff] }
 0x170   : > { %6052 = vmatmul.msk.f32.gmra.mxu0 %vm204_vm1, %v10311_v9  ;;  %v1230_v32 = vpop.f32.mrf.mxu3 }
 0x171   : > { %v1306_v41 = vadd.f32 %v1230_v32, %v1028_v42  ;;  %v719_v42 = vadd.f32 %v7295_v33, %v7291_v35  ;;  %v7541_v32 = vld [vmem:[#allocation2 + $0x182] sm:$0xff] }
 0x172   : > { %6086 = vmatmul.msk.f32.gmra.mxu1 %vm204_vm1, %v7474_v31  ;;  %v7553_v33 = vld [vmem:[#allocation2 + $0x189] sm:$0xff] }
 0x173   : > { %v7487_v4 = vadd.f32 %v1508_v14, %v1306_v41  ;;  %5985 = vmatmul.msk.f32.gmra.mxu2 %vm204_vm1, %v7453_v16 }
 0x175   : > { %v1511_v1 = vpop.f32.mrf.mxu0  ;;  %6019 = vmatmul.msk.f32.gmra.mxu3 %vm204_vm1, %v6997_v13 }
 0x176   : > { %v955_v25 = vpop.f32.mrf.mxu2 }
 0x177   : > { %v1029_v17 = vadd.f32 %v955_v25, %v710_v61 }
 0x178   : > { %6053 = vmatmul.msk.f32.gmra.mxu0 %vm204_vm1, %v10312_v12  ;;  %v1233_v51 = vpop.f32.mrf.mxu3  ;;  %v7547_v12 = vld [vmem:[#allocation2 + $0x188] sm:$0xff] }
 0x179   : > { %v1307_v49 = vadd.f32 %v1233_v51, %v1029_v17  ;;  %v722_v51 = vadd.f32 %v7311_v11, %v7307_v6  ;;  %v10317_v11 = vld [vmem:[#allocation41_spill] sm:$0xff] }
 0x17a   : > { %6087 = vmatmul.msk.f32.gmra.mxu1 %vm204_vm1, %v7495_v44 }
 0x17b   : > { %v7501_v59 = vadd.f32 %v1511_v1, %v1307_v49  ;;  %5986 = vmatmul.msk.f32.gmra.mxu2 %vm204_vm1, %v7474_v31  ;;  %v7559_v49 = vld [vmem:[#allocation2 + $0x18a] sm:$0xff] }
 0x17d   : > { %v1514_v13 = vpop.f32.mrf.mxu0  ;;  %6020 = vmatmul.msk.f32.gmra.mxu3 %vm204_vm1, %v10313_v3 }
 0x17e   : > { %v958_v50 = vpop.f32.mrf.mxu2 }
 0x17f   : > { %v1030_v53 = vadd.f32 %v958_v50, %v713_v45  ;;  %v1885_v50 = vld [vmem:[#allocation2 + $0x30] sm:$0xff] }
 0x180   : > { %6054 = vmatmul.msk.f32.gmra.mxu0 %vm204_vm1, %v10314_v37  ;;  %v1236_v36 = vpop.f32.mrf.mxu3 }
 0x181   : > { %v1308_v27 = vadd.f32 %v1236_v36, %v1030_v53  ;;  %v2163_v53 = vld [vmem:[#allocation2 + $0x31] sm:$0xff] }
 0x182   : > { %6088 = vmatmul.msk.f32.gmra.mxu1 %vm204_vm1, %v7509_v22 }
 0x183   : > { %v7515_v57 = vadd.f32 %v1514_v13, %v1308_v27  ;;  %5987 = vmatmul.msk.f32.gmra.mxu2 %vm204_vm1, %v7495_v44 }
 0x185   : > { %v1517_v56 = vpop.f32.mrf.mxu0  ;;  %6021 = vmatmul.msk.f32.gmra.mxu3 %vm204_vm1, %v10315_v10 }
 0x186   : > { %v961_v55 = vpop.f32.mrf.mxu2 }
 0x187   : > { %v1031_v8 = vadd.f32 %v961_v55, %v716_v5  ;;  %v1886_v55 = vld [vmem:[#allocation2 + $0x38] sm:$0xff] }
 0x188   : > { %6055 = vmatmul.msk.f32.gmra.mxu0 %vm204_vm1, %v10316_v38  ;;  %v1239_v14 = vpop.f32.mrf.mxu3 }
 0x189   : > { %v1309_v15 = vadd.f32 %v1239_v14, %v1031_v8  ;;  %v2164_v8 = vld [vmem:[#allocation2 + $0x39] sm:$0xff] }
 0x18a   : > { %6089 = vmatmul.msk.f32.gmra.mxu1 %vm204_vm1, %v7523_v47 }
 0x18b   : > { %v7531_v9 = vadd.f32 %v1517_v56, %v1309_v15  ;;  %5988 = vmatmul.msk.f32.gmra.mxu2 %vm204_vm1, %v7509_v22  ;;  %v10318_v56 = vld [vmem:[#allocation39_spill] sm:$0xff] }
 0x18d   : > { %v1520_v29 = vpop.f32.mrf.mxu0  ;;  %6022 = vmatmul.msk.f32.gmra.mxu3 %vm204_vm1, %v7529_v43 }
 0x18e   : > { %v964_v41 = vpop.f32.mrf.mxu2 }
 0x18f   : > { %v1032_v1 = vadd.f32 %v964_v41, %v719_v42  ;;  %v10319_v42 = vld [vmem:[#allocation43_spill] sm:$0xff]  ;;  %v10320_v41 = vld [vmem:[#allocation40_spill] sm:$0xff] }
 0x190   : > { %6056 = vmatmul.msk.f32.gmra.mxu0 %vm204_vm1, %v7535_v39  ;;  %v1242_v61 = vpop.f32.mrf.mxu3 }
 0x191   : > { %v1310_v25 = vadd.f32 %v1242_v61, %v1032_v1 }
 0x192   : > { %6090 = vmatmul.msk.f32.gmra.mxu1 %vm204_vm1, %v7541_v32 }
 0x193   : > { %v7549_v17 = vadd.f32 %v1520_v29, %v1310_v25  ;;  %5989 = vmatmul.msk.f32.gmra.mxu2 %vm204_vm1, %v7523_v47  ;;  %v1887_v25 = vld [vmem:[#allocation2 + $0x48] sm:$0xff] }
 0x195   : > { %v1523_v35 = vpop.f32.mrf.mxu0  ;;  %6023 = vmatmul.msk.f32.gmra.mxu3 %vm204_vm1, %v7547_v12 }
 0x196   : > { %v967_v13 = vpop.f32.mrf.mxu2 }
 0x197   : > { %v1033_v3 = vadd.f32 %v967_v13, %v722_v51  ;;  %v2165_v51 = vld [vmem:[#allocation2 + $0x49] sm:$0xff] }
 0x198   : > { %6057 = vmatmul.msk.f32.gmra.mxu0 %vm204_vm1, %v7553_v33  ;;  %v1245_v45 = vpop.f32.mrf.mxu3 }
 0x199   : > { %v1311_v37 = vadd.f32 %v1245_v45, %v1033_v3 }
 0x19a   : > { %6091 = vmatmul.msk.f32.gmra.mxu1 %vm204_vm1, %v7559_v49 }
 0x19b   : > { %v7565_v36 = vadd.f32 %v1523_v35, %v1311_v37  ;;  %6094 = vmatmul.msk.f32.vlgmr.msra.gmra.mxu2 %vm204_vm1, %v1885_v50  ;;  %v10321_v50 = vld [vmem:[#allocation45_spill] sm:$0xff]  ;;  %v10322_v37 = vld [vmem:[#allocation42_spill] sm:$0xff] }
 0x19d   : > { %v1526_v27 = vpop.f32.mrf.mxu0  ;;  %6128 = vmatmul.msk.f32.vlgmr.msra.gmra.mxu3 %vm204_vm1, %v2163_v53 }
 0x19e   : > { %v970_v6 = vpop.f32.mrf.mxu2 }
 0x19f   : > { %v1034_v10 = vadd.f32 %v970_v6, %v10318_v56  ;;  %v1888_v6 = vld [vmem:[#allocation2 + $0x50] sm:$0xff] }
 0x1a0   : > { %6162 = vmatmul.msk.f32.vlgmr.msra.gmra.mxu0 %vm204_vm1, %v10317_v11  ;;  %v1248_v5 = vpop.f32.mrf.mxu3  ;;  %v2166_v56 = vld [vmem:[#allocation2 + $0x51] sm:$0xff] }
 0x1a1   : > { %v1312_v38 = vadd.f32 %v1248_v5, %v1034_v10 }
 0x1a3   : > { %v7572_v14 = vadd.f32 %v1526_v27, %v1312_v38  ;;  %6095 = vmatmul.msk.f32.gmra.mxu2 %vm204_vm1, %v1886_v55  ;;  %v10323_v38 = vld [vmem:[#allocation47_spill] sm:$0xff] }
 0x1a5   : > { %v1529_v15 = vpop.f32.mrf.mxu0  ;;  %6129 = vmatmul.msk.f32.gmra.mxu3 %vm204_vm1, %v2164_v8  ;;  %v10324_v8 = vld [vmem:[#allocation44_spill] sm:$0xff] }
 0x1a6   : > { %v973_v29 = vpop.f32.mrf.mxu2 }
 0x1a7   : > { %v1035_v1 = vadd.f32 %v973_v29, %v10320_v41 }
 0x1a8   : > { %6163 = vmatmul.msk.f32.gmra.mxu0 %vm204_vm1, %v10319_v42  ;;  %v1251_v61 = vpop.f32.mrf.mxu3  ;;  %v1889_v42 = vld [vmem:[#allocation2 + $0x60] sm:$0xff] }
 0x1a9   : > { %v1313_v35 = vadd.f32 %v1251_v61, %v1035_v1  ;;  %v2167_v1 = vld [vmem:[#allocation2 + $0x61] sm:$0xff] }
 0x1ab   : > { %v7579_v13 = vadd.f32 %v1529_v15, %v1313_v35  ;;  %6096 = vmatmul.msk.f32.gmra.mxu2 %vm204_vm1, %v1887_v25 }
 0x1ad   : > { %v1532_v3 = vpop.f32.mrf.mxu0  ;;  %6130 = vmatmul.msk.f32.gmra.mxu3 %vm204_vm1, %v2165_v51  ;;  %v10326_v51 = vld [vmem:[#allocation49_spill] sm:$0xff] }
 0x1ae   : > { %v976_v45 = vpop.f32.mrf.mxu2 }
 0x1af   : > { %v1036_v53 = vadd.f32 %v976_v45, %v10322_v37  ;;  %v1890_v37 = vld [vmem:[#allocation2 + $0x68] sm:$0xff] }
 0x1b0   : > { %6164 = vmatmul.msk.f32.gmra.mxu0 %vm204_vm1, %v10321_v50  ;;  %v1254_v27 = vpop.f32.mrf.mxu3 }
 0x1b1   : > { %v1314_v11 = vadd.f32 %v1254_v27, %v1036_v53  ;;  %v2168_v27 = vld [vmem:[#allocation2 + $0x69] sm:$0xff] }
 0x1b3   : > { %v7586_v10 = vadd.f32 %v1532_v3, %v1314_v11  ;;  %6097 = vmatmul.msk.f32.gmra.mxu2 %vm204_vm1, %v1888_v6  ;;  %v10327_v3 = vld [vmem:[#allocation46_spill] sm:$0xff] }
 0x1b5   : > { %v1535_v5 = vpop.f32.mrf.mxu0  ;;  %6131 = vmatmul.msk.f32.gmra.mxu3 %vm204_vm1, %v2166_v56 }
 0x1b6   : > { %v979_v55 = vpop.f32.mrf.mxu2 }
 0x1b7   : > { %v1037_v15 = vadd.f32 %v979_v55, %v10324_v8  ;;  %v10330_v55 = vld [vmem:[#allocation48_spill] sm:$0xff] }
 0x1b8   : > { %6165 = vmatmul.msk.f32.gmra.mxu0 %vm204_vm1, %v10323_v38  ;;  %v1257_v29 = vpop.f32.mrf.mxu3 }
 0x1b9   : > { %v1315_v41 = vadd.f32 %v1257_v29, %v1037_v15  ;;  %v1891_v15 = vld [vmem:[#allocation2 + $0x78] sm:$0xff] }
 0x1bb   : > { %v7593_v61 = vadd.f32 %v1535_v5, %v1315_v41  ;;  %6098 = vmatmul.msk.f32.gmra.mxu2 %vm204_vm1, %v1889_v42  ;;  %v10329_v5 = vld [vmem:[#allocation51_spill] sm:$0xff]  ;;  %v2169_v42 = vld [vmem:[#allocation2 + $0x79] sm:$0xff] }
 0x1bd   : > { %10325 = vst [vmem:[#allocation33_spill] sm:$0xff] %v7593_v61  ;;  %v1538_v25 = vpop.f32.mrf.mxu0  ;;  %6132 = vmatmul.msk.f32.gmra.mxu3 %vm204_vm1, %v2167_v1 }
 0x1be   : > { %v982_v35 = vpop.f32.mrf.mxu2 }
 0x1bf   : > { %v1038_v45 = vadd.f32 %v982_v35, %v10327_v3  ;;  %v10332_v35 = vld [vmem:[#allocation53_spill] sm:$0xff] }
 0x1c0   : > { %6166 = vmatmul.msk.f32.gmra.mxu0 %vm204_vm1, %v10326_v51  ;;  %v1260_v50 = vpop.f32.mrf.mxu3  ;;  %v10333_v51 = vld [vmem:[#allocation50_spill] sm:$0xff] }
 0x1c1   : > { %v1316_v53 = vadd.f32 %v1260_v50, %v1038_v45  ;;  %v1892_v50 = vld [vmem:[#allocation2 + $0x80] sm:$0xff] }
 0x1c3   : > { %v7600_v6 = vadd.f32 %v1538_v25, %v1316_v53  ;;  %6099 = vmatmul.msk.f32.gmra.mxu2 %vm204_vm1, %v1890_v37  ;;  %v2170_v53 = vld [vmem:[#allocation2 + $0x81] sm:$0xff] }
 0x1c5   : > { %10328 = vst [vmem:[#allocation34_spill] sm:$0xff] %v7600_v6  ;;  %v1541_v11 = vpop.f32.mrf.mxu0  ;;  %6133 = vmatmul.msk.f32.gmra.mxu3 %vm204_vm1, %v2168_v27 }
 0x1c6   : > { %v985_v56 = vpop.f32.mrf.mxu2 }
 0x1c7   : > { %v1039_v38 = vadd.f32 %v985_v56, %v10330_v55  ;;  %v10336_v55 = vld [vmem:[#allocation52_spill] sm:$0xff] }
 0x1c8   : > { %6167 = vmatmul.msk.f32.gmra.mxu0 %vm204_vm1, %v10329_v5  ;;  %v1263_v8 = vpop.f32.mrf.mxu3  ;;  %v10335_v5 = vld [vmem:[#allocation55_spill] sm:$0xff] }
 0x1c9   : > { %v1317_v29 = vadd.f32 %v1263_v8, %v1039_v38 }
 0x1cb   : > { %v7607_v41 = vadd.f32 %v1541_v11, %v1317_v29  ;;  %6100 = vmatmul.msk.f32.gmra.mxu2 %vm204_vm1, %v1891_v15  ;;  %v1893_v15 = vld [vmem:[#allocation2 + $0x90] sm:$0xff] }
 0x1cd   : > { %10331 = vst [vmem:[#allocation36_spill] sm:$0xff] %v7607_v41  ;;  %v1544_v1 = vpop.f32.mrf.mxu0  ;;  %6134 = vmatmul.msk.f32.gmra.mxu3 %vm204_vm1, %v2169_v42  ;;  %v2171_v42 = vld [vmem:[#allocation2 + $0x91] sm:$0xff] }
 0x1ce   : > { %v988_v25 = vpop.f32.mrf.mxu2 }
 0x1cf   : > { %v1040_v3 = vadd.f32 %v988_v25, %v10333_v51  ;;  %v10338_v51 = vld [vmem:[#allocation57_spill] sm:$0xff] }
 0x1d0   : > { %6168 = vmatmul.msk.f32.gmra.mxu0 %vm204_vm1, %v10332_v35  ;;  %v1266_v45 = vpop.f32.mrf.mxu3 }
 0x1d1   : > { %v1318_v37 = vadd.f32 %v1266_v45, %v1040_v3  ;;  %v10339_v3 = vld [vmem:[#allocation54_spill] sm:$0xff] }
 0x1d3   : > { %v7614_v27 = vadd.f32 %v1544_v1, %v1318_v37  ;;  %6101 = vmatmul.msk.f32.gmra.mxu2 %vm204_vm1, %v1892_v50  ;;  %v1894_v37 = vld [vmem:[#allocation2 + $0x98] sm:$0xff] }
 0x1d5   : > { %10334 = vst [vmem:[#allocation35_spill] sm:$0xff] %v7614_v27  ;;  %v1547_v11 = vpop.f32.mrf.mxu0  ;;  %6135 = vmatmul.msk.f32.gmra.mxu3 %vm204_vm1, %v2170_v53 }
 0x1d6   : > { %v991_v56 = vpop.f32.mrf.mxu2 }
 0x1d7   : > { %v1041_v38 = vadd.f32 %v991_v56, %v10336_v55  ;;  %v2172_v56 = vld [vmem:[#allocation2 + $0x99] sm:$0xff] }
 0x1d8   : > { %6169 = vmatmul.msk.f32.gmra.mxu0 %vm204_vm1, %v10335_v5  ;;  %v1269_v8 = vpop.f32.mrf.mxu3 }
 0x1d9   : > { %v1319_v29 = vadd.f32 %v1269_v8, %v1041_v38  ;;  %v10341_v38 = vld [vmem:[#allocation59_spill] sm:$0xff]  ;;  %v10342_v8 = vld [vmem:[#allocation56_spill] sm:$0xff] }
 0x1db   : > { %v7621_v25 = vadd.f32 %v1547_v11, %v1319_v29  ;;  %6102 = vmatmul.msk.f32.gmra.mxu2 %vm204_vm1, %v1893_v15 }
 0x1dd   : > { %10337 = vst [vmem:[#allocation38_spill] sm:$0xff] %v7621_v25  ;;  %v1550_v1 = vpop.f32.mrf.mxu0  ;;  %6136 = vmatmul.msk.f32.gmra.mxu3 %vm204_vm1, %v2171_v42  ;;  %v1895_v42 = vld [vmem:[#allocation2 + $0xa8] sm:$0xff] }
 0x1de   : > { %v994_v35 = vpop.f32.mrf.mxu2 }
 0x1df   : > { %v1042_v45 = vadd.f32 %v994_v35, %v10339_v3 }
 0x1e0   : > { %6170 = vmatmul.msk.f32.gmra.mxu0 %vm204_vm1, %v10338_v51  ;;  %v1272_v50 = vpop.f32.mrf.mxu3  ;;  %v2173_v51 = vld [vmem:[#allocation2 + $0xa9] sm:$0xff] }
 0x1e1   : > { %v1320_v53 = vadd.f32 %v1272_v50, %v1042_v45  ;;  %v10344_v50 = vld [vmem:[#allocation61_spill] sm:$0xff] }
 0x1e3   : > { %v7628_v5 = vadd.f32 %v1550_v1, %v1320_v53  ;;  %6103 = vmatmul.msk.f32.gmra.mxu2 %vm204_vm1, %v1894_v37  ;;  %v10345_v37 = vld [vmem:[#allocation58_spill] sm:$0xff] }
 0x1e5   : > { %10340 = vst [vmem:[#allocation37_spill] sm:$0xff] %v7628_v5  ;;  %v1553_v11 = vpop.f32.mrf.mxu0  ;;  %6137 = vmatmul.msk.f32.gmra.mxu3 %vm204_vm1, %v2172_v56 }
 0x1e6   : > { %v997_v55 = vpop.f32.mrf.mxu2 }
 0x1e7   : > { %v1043_v15 = vadd.f32 %v997_v55, %v10342_v8  ;;  %v2174_v8 = vld [vmem:[#allocation2 + $0xb1] sm:$0xff] }
 0x1e8   : > { %6171 = vmatmul.msk.f32.gmra.mxu0 %vm204_vm1, %v10341_v38  ;;  %v1275_v29 = vpop.f32.mrf.mxu3  ;;  %v1896_v38 = vld [vmem:[#allocation2 + $0xb0] sm:$0xff] }
 0x1e9   : > { %v1321_v35 = vadd.f32 %v1275_v29, %v1043_v15  ;;  %v10347_v29 = vld [vmem:[#allocation63_spill] sm:$0xff] }
 0x1eb   : > { %v7635_v3 = vadd.f32 %v1553_v11, %v1321_v35  ;;  %6104 = vmatmul.msk.f32.gmra.mxu2 %vm204_vm1, %v1895_v42  ;;  %v10348_v42 = vld [vmem:[#allocation60_spill] sm:$0xff] }
 0x1ed   : > { %10343 = vst [vmem:[#allocation41_spill] sm:$0xff] %v7635_v3  ;;  %v1556_v1 = vpop.f32.mrf.mxu0  ;;  %6138 = vmatmul.msk.f32.gmra.mxu3 %vm204_vm1, %v2173_v51 }
 0x1ee   : > { %v1000_v45 = vpop.f32.mrf.mxu2 }
 0x1ef   : > { %v1044_v53 = vadd.f32 %v1000_v45, %v10345_v37  ;;  %v2175_v37 = vld [vmem:[#allocation2 + $0xc1] sm:$0xff] }
 0x1f0   : > { %6172 = vmatmul.msk.f32.gmra.mxu0 %vm204_vm1, %v10344_v50  ;;  %v1278_v56 = vpop.f32.mrf.mxu3  ;;  %v1897_v50 = vld [vmem:[#allocation2 + $0xc0] sm:$0xff] }
 0x1f1   : > { %v1322_v55 = vadd.f32 %v1278_v56, %v1044_v53  ;;  %v10350_v56 = vld [vmem:[#allocation65_spill] sm:$0xff] }
 0x1f3   : > { %v7642_v20 = vadd.f32 %v1556_v1, %v1322_v55  ;;  %6105 = vmatmul.msk.f32.gmra.mxu2 %vm204_vm1, %v1896_v38  ;;  %v10351_v38 = vld [vmem:[#allocation62_spill] sm:$0xff] }
 0x1f5   : > { %10346 = vst [vmem:[#allocation39_spill] sm:$0xff] %v7642_v20  ;;  %v1559_v11 = vpop.f32.mrf.mxu0  ;;  %6139 = vmatmul.msk.f32.gmra.mxu3 %vm204_vm1, %v2174_v8 }
 0x1f6   : > { %v1003_v15 = vpop.f32.mrf.mxu2 }
 0x1f7   : > { %v1045_v35 = vadd.f32 %v1003_v15, %v10348_v42  ;;  %v2176_v42 = vld [vmem:[#allocation2 + $0xc9] sm:$0xff] }
 0x1f8   : > { %6173 = vmatmul.msk.f32.gmra.mxu0 %vm204_vm1, %v10347_v29  ;;  %v1281_v51 = vpop.f32.mrf.mxu3  ;;  %v1898_v29 = vld [vmem:[#allocation2 + $0xc8] sm:$0xff] }
 0x1f9   : > { %v1323_v45 = vadd.f32 %v1281_v51, %v1045_v35  ;;  %v10353_v51 = vld [vmem:[#allocation64_spill] sm:$0xff] }
 0x1fb   : > { %v7649_v23 = vadd.f32 %v1559_v11, %v1323_v45  ;;  %6106 = vmatmul.msk.f32.gmra.mxu2 %vm204_vm1, %v1897_v50 }
 0x1fd   : > { %10349 = vst [vmem:[#allocation43_spill] sm:$0xff] %v7649_v23  ;;  %v1562_v1 = vpop.f32.mrf.mxu0  ;;  %6140 = vmatmul.msk.f32.gmra.mxu3 %vm204_vm1, %v2175_v37  ;;  %v1899_v37 = vld [vmem:[#allocation2 + $0xd8] sm:$0xff] }
 0x1fe   : > { %v1006_v53 = vpop.f32.mrf.mxu2 }
 0x1ff   : > { %v1046_v55 = vadd.f32 %v1006_v53, %v10351_v38 }
 0x200   : > { %6174 = vmatmul.msk.f32.gmra.mxu0 %vm204_vm1, %v10350_v56  ;;  %v1284_v8 = vpop.f32.mrf.mxu3  ;;  %v2177_v56 = vld [vmem:[#allocation2 + $0xd9] sm:$0xff] }
 0x201   : > { %v1324_v15 = vadd.f32 %v1284_v8, %v1046_v55  ;;  %v10355_v8 = vld [vmem:[#allocation66_spill] sm:$0xff] }
 0x203   : > { %v7656_v20 = vadd.f32 %v1562_v1, %v1324_v15  ;;  %6107 = vmatmul.msk.f32.gmra.mxu2 %vm204_vm1, %v1898_v29  ;;  %v1900_v15 = vld [vmem:[#allocation2 + $0xe0] sm:$0xff] }
 0x205   : > { %10352 = vst [vmem:[#allocation40_spill] sm:$0xff] %v7656_v20  ;;  %v1565_v11 = vpop.f32.mrf.mxu0  ;;  %6141 = vmatmul.msk.f32.gmra.mxu3 %vm204_vm1, %v2176_v42  ;;  %v2194_v20 = vld [vmem:[#allocation2 + $0x1a1] sm:$0xff] }
 0x206   : > { %v1009_v35 = vpop.f32.mrf.mxu2 }
 0x207   : > { %v1047_v50 = vadd.f32 %v1009_v35, %v10353_v51  ;;  %v2178_v35 = vld [vmem:[#allocation2 + $0xe1] sm:$0xff] }
 0x208   : > { %6175 = vmatmul.msk.f32.gmra.mxu0 %vm204_vm1, %v7313_v26  ;;  %v1287_v45 = vpop.f32.mrf.mxu3 }
 0x209   : > { %v1325_v53 = vadd.f32 %v1287_v45, %v1047_v50  ;;  %v10357_v45 = vld [vmem:[#allocation67_spill] sm:$0xff] }
 0x20b   : > { %v7663_v38 = vadd.f32 %v1565_v11, %v1325_v53  ;;  %6108 = vmatmul.msk.f32.gmra.mxu2 %vm204_vm1, %v1899_v37  ;;  %v1901_v53 = vld [vmem:[#allocation2 + $0xf0] sm:$0xff] }
 0x20d   : > { %10354 = vst [vmem:[#allocation45_spill] sm:$0xff] %v7663_v38  ;;  %v1568_v1 = vpop.f32.mrf.mxu0  ;;  %6142 = vmatmul.msk.f32.gmra.mxu3 %vm204_vm1, %v2177_v56 }
 0x20e   : > { %v1012_v55 = vpop.f32.mrf.mxu2 }
 0x20f   : > { %v1048_v29 = vadd.f32 %v1012_v55, %v10355_v8  ;;  %v2179_v55 = vld [vmem:[#allocation2 + $0xf1] sm:$0xff] }
 0x210   : > { %6176 = vmatmul.msk.f32.gmra.mxu0 %vm204_vm1, %v7327_v7  ;;  %v1290_v26 = vpop.f32.mrf.mxu3 }
 0x211   : > { %v1326_v42 = vadd.f32 %v1290_v26, %v1048_v29 }
 0x213   : > { %v7670_v51 = vadd.f32 %v1568_v1, %v1326_v42  ;;  %6109 = vmatmul.msk.f32.gmra.mxu2 %vm204_vm1, %v1900_v15  ;;  %v1902_v15 = vld [vmem:[#allocation2 + $0xf8] sm:$0xff] }
 0x215   : > { %10356 = vst [vmem:[#allocation42_spill] sm:$0xff] %v7670_v51  ;;  %v1571_v11 = vpop.f32.mrf.mxu0  ;;  %6143 = vmatmul.msk.f32.gmra.mxu3 %vm204_vm1, %v2178_v35  ;;  %v2180_v35 = vld [vmem:[#allocation2 + $0xf9] sm:$0xff] }
 0x216   : > { %v1015_v50 = vpop.f32.mrf.mxu2 }
 0x217   : > { %v1049_v37 = vadd.f32 %v1015_v50, %v10357_v45 }
 0x218   : > { %6177 = vmatmul.msk.f32.gmra.mxu0 %vm204_vm1, %v7341_v19  ;;  %v1293_v7 = vpop.f32.mrf.mxu3 }
 0x219   : > { %v1327_v56 = vadd.f32 %v1293_v7, %v1049_v37  ;;  %v1903_v7 = vld [vmem:[#allocation2 + $0x108] sm:$0xff] }
 0x21b   : > { %v7677_v8 = vadd.f32 %v1571_v11, %v1327_v56  ;;  %6110 = vmatmul.msk.f32.gmra.mxu2 %vm204_vm1, %v1901_v53  ;;  %v2181_v53 = vld [vmem:[#allocation2 + $0x109] sm:$0xff] }
 0x21d   : > { %10358 = vst [vmem:[#allocation47_spill] sm:$0xff] %v7677_v8  ;;  %v2591_v1 = vpop.f32.mrf.mxu0  ;;  %6144 = vmatmul.msk.f32.gmra.mxu3 %vm204_vm1, %v2179_v55  ;;  %v2193_v8 = vld [vmem:[#allocation2 + $0x199] sm:$0xff] }
 0x21e   : > { %v2035_v29 = vpop.f32.mrf.mxu2 }
 0x21f   : > { %v2131_v26 = vadd.f32 %v2035_v29, %v7339_v21 }
 0x220   : > { %6178 = vmatmul.msk.f32.gmra.mxu0 %vm204_vm1, %v7355_v63  ;;  %v2313_v19 = vpop.f32.mrf.mxu3 }
 0x221   : > { %v2409_v42 = vadd.f32 %v2313_v19, %v2131_v26  ;;  %v1904_v26 = vld [vmem:[#allocation2 + $0x110] sm:$0xff] }
 0x223   : > { %v7684_v50 = vadd.f32 %v2591_v1, %v2409_v42  ;;  %6111 = vmatmul.msk.f32.gmra.mxu2 %vm204_vm1, %v1902_v15  ;;  %v7694_v1 = vpop.f32.mrf.mxu1  ;;  %v2182_v15 = vld [vmem:[#allocation2 + $0x111] sm:$0xff] }
 0x225   : > { %10359 = vst [vmem:[#allocation44_spill] sm:$0xff] %v7684_v50  ;;  %v2594_v11 = vpop.f32.mrf.mxu0  ;;  %6145 = vmatmul.msk.f32.gmra.mxu3 %vm204_vm1, %v2180_v35 }
 0x226   : > { %v2038_v45 = vpop.f32.mrf.mxu2 }
 0x227   : > { %v2132_v37 = vadd.f32 %v2038_v45, %v7353_v28 }
 0x228   : > { %6179 = vmatmul.msk.f32.gmra.mxu0 %vm204_vm1, %v7369_v24  ;;  %v2316_v63 = vpop.f32.mrf.mxu3 }
 0x229   : > { %v2410_v21 = vadd.f32 %v2316_v63, %v2132_v37  ;;  %v1905_v37 = vld [vmem:[#allocation2 + $0x120] sm:$0xff] }
 0x22b   : > { %v7691_v56 = vadd.f32 %v2594_v11, %v2410_v21  ;;  %6112 = vmatmul.msk.f32.gmra.mxu2 %vm204_vm1, %v1903_v7  ;;  %v7704_v11 = vpop.f32.mrf.mxu1  ;;  %v2183_v7 = vld [vmem:[#allocation2 + $0x121] sm:$0xff] }
 0x22d   : > { %10360 = vst [vmem:[#allocation49_spill] sm:$0xff] %v7691_v56  ;;  %v2597_v55 = vpop.f32.mrf.mxu0  ;;  %6146 = vmatmul.msk.f32.gmra.mxu3 %vm204_vm1, %v2181_v53 }
 0x22e   : > { %v2041_v29 = vpop.f32.mrf.mxu2 }
 0x22f   : > { %v2133_v24 = vadd.f32 %v2041_v29, %v7367_v34 }
 0x230   : > { %6180 = vmatmul.msk.f32.gmra.mxu0 %vm204_vm1, %v7383_v30  ;;  %v2319_v28 = vpop.f32.mrf.mxu3 }
 0x231   : > { %v2411_v19 = vadd.f32 %v2319_v28, %v2133_v24 }
 0x233   : > { %v7700_v42 = vadd.f32 %v2597_v55, %v2411_v19  ;;  %6113 = vmatmul.msk.f32.gmra.mxu2 %vm204_vm1, %v1904_v26  ;;  %v7716_v24 = vpop.f32.mrf.mxu1  ;;  %v2184_v26 = vld [vmem:[#allocation2 + $0x129] sm:$0xff] }
 0x235   : > { %v2600_v35 = vpop.f32.mrf.mxu0  ;;  %6147 = vmatmul.msk.f32.gmra.mxu3 %vm204_vm1, %v2182_v15 }
 0x236   : > { %v2044_v45 = vpop.f32.mrf.mxu2 }
 0x237   : > { %v2134_v30 = vadd.f32 %v2044_v45, %v7381_v40  ;;  %v1906_v40 = vld [vmem:[#allocation2 + $0x128] sm:$0xff]  ;;  %v1907_v45 = vld [vmem:[#allocation2 + $0x138] sm:$0xff] }
 0x238   : > { %6181 = vmatmul.msk.f32.gmra.mxu0 %vm204_vm1, %v7397_v48  ;;  %v2322_v34 = vpop.f32.mrf.mxu3 }
 0x239   : > { %v2412_v63 = vadd.f32 %v2322_v34, %v2134_v30  ;;  %v2185_v34 = vld [vmem:[#allocation2 + $0x139] sm:$0xff] }
 0x23b   : > { %v7709_v21 = vadd.f32 %v2600_v35, %v2412_v63  ;;  %6114 = vmatmul.msk.f32.gmra.mxu2 %vm204_vm1, %v1905_v37  ;;  %v7725_v37 = vpop.f32.mrf.mxu1 }
 0x23d   : > { %v2603_v53 = vpop.f32.mrf.mxu0  ;;  %6148 = vmatmul.msk.f32.gmra.mxu3 %vm204_vm1, %v2183_v7 }
 0x23e   : > { %v2047_v55 = vpop.f32.mrf.mxu2 }
 0x23f   : > { %v2135_v29 = vadd.f32 %v2047_v55, %v7395_v46  ;;  %v1908_v55 = vld [vmem:[#allocation2 + $0x140] sm:$0xff] }
 0x240   : > { %6182 = vmatmul.msk.f32.gmra.mxu0 %vm204_vm1, %v7411_v54  ;;  %v2325_v48 = vpop.f32.mrf.mxu3 }
 0x241   : > { %v2413_v28 = vadd.f32 %v2325_v48, %v2135_v29  ;;  %v2186_v48 = vld [vmem:[#allocation2 + $0x141] sm:$0xff] }
 0x243   : > { %v7718_v19 = vadd.f32 %v2603_v53, %v2413_v28  ;;  %6115 = vmatmul.msk.f32.gmra.mxu2 %vm204_vm1, %v1906_v40 }
 0x245   : > { %v2606_v15 = vpop.f32.mrf.mxu0  ;;  %6149 = vmatmul.msk.f32.gmra.mxu3 %vm204_vm1, %v2184_v26  ;;  %v7737_v26 = vpop.f32.mrf.mxu1 }
 0x246   : > { %v2050_v35 = vpop.f32.mrf.mxu2 }
 0x247   : > { %v2136_v54 = vadd.f32 %v2050_v35, %v7409_v52  ;;  %v1909_v35 = vld [vmem:[#allocation2 + $0x150] sm:$0xff] }
 0x248   : > { %6183 = vmatmul.msk.f32.gmra.mxu0 %vm204_vm1, %v7425_v60  ;;  %v2328_v46 = vpop.f32.mrf.mxu3 }
 0x249   : > { %v2414_v30 = vadd.f32 %v2328_v46, %v2136_v54  ;;  %v2187_v46 = vld [vmem:[#allocation2 + $0x151] sm:$0xff] }
 0x24b   : > { %v7727_v63 = vadd.f32 %v2606_v15, %v2414_v30  ;;  %6116 = vmatmul.msk.f32.gmra.mxu2 %vm204_vm1, %v1907_v45 }
 0x24d   : > { %v2609_v7 = vpop.f32.mrf.mxu0  ;;  %6150 = vmatmul.msk.f32.gmra.mxu3 %vm204_vm1, %v2185_v34  ;;  %v7749_v34 = vpop.f32.mrf.mxu1 }
 0x24e   : > { %v2053_v53 = vpop.f32.mrf.mxu2 }
 0x24f   : > { %v2137_v60 = vadd.f32 %v2053_v53, %v7423_v58  ;;  %v2188_v53 = vld [vmem:[#allocation2 + $0x159] sm:$0xff] }
 0x250   : > { %6184 = vmatmul.msk.f32.gmra.mxu0 %vm204_vm1, %v7439_v0  ;;  %v2331_v52 = vpop.f32.mrf.mxu3 }
 0x251   : > { %v2415_v29 = vadd.f32 %v2331_v52, %v2137_v60 }
 0x253   : > { %v7734_v40 = vadd.f32 %v2609_v7, %v2415_v29  ;;  %6117 = vmatmul.msk.f32.gmra.mxu2 %vm204_vm1, %v1908_v55 }
 0x255   : > { %v2612_v28 = vpop.f32.mrf.mxu0  ;;  %6151 = vmatmul.msk.f32.gmra.mxu3 %vm204_vm1, %v2186_v48  ;;  %v7767_v29 = vpop.f32.mrf.mxu1  ;;  %v2189_v48 = vld [vmem:[#allocation2 + $0x169] sm:$0xff] }
 0x256   : > { %v2056_v15 = vpop.f32.mrf.mxu2 }
 0x257   : > { %v2138_v0 = vadd.f32 %v2056_v15, %v7437_v2 }
 0x258   : > { %6185 = vmatmul.msk.f32.gmra.mxu0 %vm204_vm1, %v7453_v16  ;;  %v2334_v58 = vpop.f32.mrf.mxu3  ;;  %v1910_v16 = vld [vmem:[#allocation2 + $0x158] sm:$0xff] }
 0x259   : > { %v2416_v54 = vadd.f32 %v2334_v58, %v2138_v0  ;;  %v2190_v58 = vld [vmem:[#allocation2 + $0x171] sm:$0xff] }
 0x25b   : > { %v7743_v45 = vadd.f32 %v2612_v28, %v2416_v54  ;;  %6118 = vmatmul.msk.f32.gmra.mxu2 %vm204_vm1, %v1909_v35 }
 0x25d   : > { %v7746_v30 = vpop.f32.mrf.mxu0  ;;  %6152 = vmatmul.msk.f32.gmra.mxu3 %vm204_vm1, %v2187_v46  ;;  %v7779_v35 = vpop.f32.mrf.mxu1 }
 0x25e   : > { %v7751_v7 = vpop.f32.mrf.mxu2 }
 0x260   : > { %6186 = vmatmul.msk.f32.gmra.mxu0 %vm204_vm1, %v7474_v31  ;;  %v7755_v2 = vpop.f32.mrf.mxu3  ;;  %v1911_v31 = vld [vmem:[#allocation2 + $0x168] sm:$0xff] }
 0x263   : > { %6119 = vmatmul.msk.f32.gmra.mxu2 %vm204_vm1, %v1910_v16 }
 0x265   : > { %v7758_v60 = vpop.f32.mrf.mxu0  ;;  %6153 = vmatmul.msk.f32.gmra.mxu3 %vm204_vm1, %v2188_v53  ;;  %v7795_v53 = vpop.f32.mrf.mxu1 }
 0x266   : > { %v7761_v52 = vpop.f32.mrf.mxu2 }
 0x268   : > { %6187 = vmatmul.msk.f32.gmra.mxu0 %vm204_vm1, %v7495_v44  ;;  %v7765_v55 = vpop.f32.mrf.mxu3  ;;  %v1912_v44 = vld [vmem:[#allocation2 + $0x170] sm:$0xff] }
 0x26b   : > { %6120 = vmatmul.msk.f32.gmra.mxu2 %vm204_vm1, %v1911_v31 }
 0x26d   : > { %v7770_v28 = vpop.f32.mrf.mxu0  ;;  %6154 = vmatmul.msk.f32.gmra.mxu3 %vm204_vm1, %v2189_v48 }
 0x26e   : > { %v7773_v15 = vpop.f32.mrf.mxu2 }
 0x270   : > { %6188 = vmatmul.msk.f32.gmra.mxu0 %vm204_vm1, %v7509_v22  ;;  %v7777_v0 = vpop.f32.mrf.mxu3 }
 0x273   : > { %6121 = vmatmul.msk.f32.gmra.mxu2 %vm204_vm1, %v1912_v44 }
 0x275   : > { %v7782_v54 = vpop.f32.mrf.mxu0  ;;  %6155 = vmatmul.msk.f32.gmra.mxu3 %vm204_vm1, %v2190_v58  ;;  %v1915_v58 = vld [vmem:[#allocation2 + $0x198] sm:$0xff] }
 0x276   : > { %v7785_v46 = vpop.f32.mrf.mxu2 }
 0x278   : > { %6189 = vmatmul.msk.f32.gmra.mxu0 %vm204_vm1, %v7523_v47  ;;  %v7789_v16 = vpop.f32.mrf.mxu3  ;;  %v6194_v47 = vld [vmem:[%s10126_s2 + $0x4] sm:$0xf] }
 0x279   : > { %6195 = vmatpush.msk.msra.mxu1 %vm443_vm0, %v6194_v47 }
 0x27b   : > { %6122 = vmatmul.msk.f32.gmra.mxu2 %vm204_vm1, %v7529_v43 }
 0x27d   : > { %v7793_v22 = vpop.f32.mrf.mxu0  ;;  %6156 = vmatmul.msk.f32.gmra.mxu3 %vm204_vm1, %v7535_v39  ;;  %v7815_v39 = vpop.f32.mrf.mxu1 }
 0x27e   : > { %v7799_v31 = vpop.f32.mrf.mxu2 }
 0x280   : > { %6190 = vmatmul.msk.f32.gmra.mxu0 %vm204_vm1, %v7541_v32  ;;  %v7803_v48 = vpop.f32.mrf.mxu3 }
 0x283   : > { %6123 = vmatmul.msk.f32.gmra.mxu2 %vm204_vm1, %v7547_v12  ;;  %v2471_v12 = vld [vmem:[#allocation2 + $0x19a] sm:$0xff] }
 0x285   : > { %v7811_v43 = vpop.f32.mrf.mxu0  ;;  %6157 = vmatmul.msk.f32.gmra.mxu3 %vm204_vm1, %v7553_v33  ;;  %v7832_v38 = vpop.f32.mrf.mxu1 }
 0x286   : > { %v7817_v44 = vpop.f32.mrf.mxu2 }
 0x288   : > { %6191 = vmatmul.msk.f32.gmra.mxu0 %vm204_vm1, %v7559_v49  ;;  %v7821_v32 = vpop.f32.mrf.mxu3  ;;  %v1916_v49 = vld [vmem:[#allocation2 + $0x1a0] sm:$0xff] }
 0x28b   : > { %6124 = vmatmul.msk.f32.gmra.mxu2 %vm204_vm1, %v1915_v58  ;;  %v2472_v58 = vld [vmem:[#allocation2 + $0x1a2] sm:$0xff] }
 0x28d   : > { %v7824_v47 = vpop.f32.mrf.mxu0  ;;  %6158 = vmatmul.msk.f32.gmra.mxu3 %vm204_vm1, %v2193_v8 }
 0x28e   : > { %10361 = vst [vmem:[#allocation46_spill] sm:$0xff] %v7824_v47  ;;  %v7827_v51 = vpop.f32.mrf.mxu2 }
 0x290   : > { %6192 = vmatmul.msk.f32.gmra.mxu0 %vm204_vm1, %v2471_v12  ;;  %v7830_v33 = vpop.f32.mrf.mxu3  ;;  %v7843_v12 = vpop.f32.mrf.mxu1 }
 0x291   : > { %10363 = vst [vmem:[#allocation48_spill] sm:$0xff] %v7843_v12 }
 0x293   : > { %6125 = vmatmul.msk.f32.gmra.mxu2 %vm204_vm1, %v1916_v49 }
 0x295   : > { %v7835_v23 = vpop.f32.mrf.mxu0  ;;  %6159 = vmatmul.msk.f32.gmra.mxu3 %vm204_vm1, %v2194_v20 }
 0x296   : > { %10362 = vst [vmem:[#allocation51_spill] sm:$0xff] %v7835_v23  ;;  %v7838_v3 = vpop.f32.mrf.mxu2 }
 0x298   : > { %6193 = vmatmul.msk.f32.gmra.mxu0 %vm204_vm1, %v2472_v58  ;;  %v7841_v8 = vpop.f32.mrf.mxu3  ;;  %v7853_v41 = vpop.f32.mrf.mxu1 }
 0x299   : > { %10367 = vst [vmem:[#allocation52_spill] sm:$0xff] %v7853_v41 }
 0x29d   : > { %v7845_v5 = vpop.f32.mrf.mxu0 }
 0x29e   : > { %10364 = vst [vmem:[#allocation53_spill] sm:$0xff] %v7845_v5  ;;  %v7847_v25 = vpop.f32.mrf.mxu2 }
 0x2a0   : > { %v7849_v27 = vpop.f32.mrf.mxu3  ;;  %v7861_v58 = vpop.f32.mrf.mxu1 }
 0x2a1   : > { %10365 = vst [vmem:[#allocation50_spill] sm:$0xff] %v7849_v27 }
 0x2a2   : > { %10371 = vst [vmem:[#allocation56_spill] sm:$0xff] %v7861_v58 }
 0x2a5   : > { %v7851_v49 = vpop.f32.mrf.mxu0 }
 0x2a6   : > { %10366 = vst [vmem:[#allocation55_spill] sm:$0xff] %v7851_v49  ;;  %v7855_v23 = vpop.f32.mrf.mxu2 }
 0x2a7   : > { %10368 = vst [vmem:[#allocation57_spill] sm:$0xff] %v7855_v23 }
 0x2a8   : > { %v7857_v20 = vpop.f32.mrf.mxu3  ;;  %v7873_v49 = vpop.f32.mrf.mxu1 }
 0x2a9   : > { %10369 = vst [vmem:[#allocation54_spill] sm:$0xff] %v7857_v20 }
 0x2ad   : > { %v7859_v6 = vpop.f32.mrf.mxu0 }
 0x2ae   : > { %10370 = vst [vmem:[#allocation59_spill] sm:$0xff] %v7859_v6  ;;  %v7863_v47 = vpop.f32.mrf.mxu2 }
 0x2af   : > { %10372 = vst [vmem:[#allocation61_spill] sm:$0xff] %v7863_v47 }
 0x2b0   : > { %v7865_v12 = vpop.f32.mrf.mxu3  ;;  %v7881_v6 = vpop.f32.mrf.mxu1 }
 0x2b1   : > { %10373 = vst [vmem:[#allocation58_spill] sm:$0xff] %v7865_v12 }
 0x2b2   : > { %10378 = vst [vmem:[#allocation64_spill] sm:$0xff] %v7881_v6  ;;  %v2722_v6 = vsel %vm204_vm1, %v7700_v42, 0.0 }
 0x2b5   : > { %v7867_v5 = vpop.f32.mrf.mxu0 }
 0x2b6   : > { %10374 = vst [vmem:[#allocation63_spill] sm:$0xff] %v7867_v5  ;;  %v7869_v61 = vpop.f32.mrf.mxu2  ;;  %v1860_v5 = vadd.f32 %v7694_v1, %v7445_v18  ;;  %v1862_v18 = vadd.f32 %v7716_v24, %v7487_v4  ;;  %v2724_v1 = vsel %vm204_vm1, %v7709_v21, 0.0 }
 0x2b8   : > { %v7871_v27 = vpop.f32.mrf.mxu3  ;;  %v2141_v4 = vadd.f32 %v7773_v15, %v1862_v18  ;;  %v2730_v15 = vsel %vm204_vm1, %v7734_v40, 0.0 }
 0x2b9   : > { %10375 = vst [vmem:[#allocation60_spill] sm:$0xff] %v7871_v27  ;;  %v2720_v27 = vsel %vm204_vm1, %v7691_v56, 0.0 }
 0x2bd   : > { %v7875_v41 = vpop.f32.mrf.mxu0 }
 0x2be   : > { %10376 = vst [vmem:[#allocation65_spill] sm:$0xff] %v7875_v41  ;;  %v7877_v23 = vpop.f32.mrf.mxu2  ;;  %v1861_v41 = vadd.f32 %v7704_v11, %v7466_v62  ;;  %v7907_v62 = vpop.f32.mrf.mxu1 }
 0x2c0   : > { %v7879_v20 = vpop.f32.mrf.mxu3  ;;  %v2140_v56 = vadd.f32 %v7761_v52, %v1861_v41  ;;  %v1864_v41 = vadd.f32 %v7737_v26, %v7515_v57  ;;  %v2728_v52 = vsel %vm204_vm1, %v7727_v63, 0.0  ;;  %v2419_v57 = vadd.f32 %v7777_v0, %v2141_v4 }
 0x2c1   : > { %10377 = vst [vmem:[#allocation62_spill] sm:$0xff] %v7879_v20  ;;  %v2719_v20 = vsel %vm204_vm1, %v7684_v50, 0.0  ;;  %v1863_v50 = vadd.f32 %v7725_v37, %v7501_v59  ;;  %v1867_v0 = vadd.f32 %v7779_v35, %v7565_v36 }
 0x2c2   : > { %v2143_v26 = vadd.f32 %v7799_v31, %v1864_v41 }
 0x2c3   : > { %v2142_v59 = vadd.f32 %v7785_v46, %v1863_v50 }
 0x2c5   : > { %v7883_v58 = vpop.f32.mrf.mxu0 }
 0x2c6   : > { %10379 = vst [vmem:[#allocation66_spill] sm:$0xff] %v7883_v58  ;;  %v7885_v47 = vpop.f32.mrf.mxu2  ;;  %v2139_v58 = vadd.f32 %v7751_v7, %v1860_v5  ;;  %v2726_v5 = vsel %vm204_vm1, %v7718_v19, 0.0 }
 0x2c7   : > { %10380 = vst [vmem:[#allocation67_spill] sm:$0xff] %v7885_v47  ;;  %v2721_v47 = vadd.f32 %v2720_v27, %v2719_v20 }
 0x2c8   : > { %v7891_v12 = vpop.f32.mrf.mxu3  ;;  %v2417_v27 = vadd.f32 %v7755_v2, %v2139_v58  ;;  %v1865_v2 = vadd.f32 %v7749_v34, %v7531_v9  ;;  %v2420_v34 = vadd.f32 %v7789_v16, %v2142_v59  ;;  %v2421_v58 = vadd.f32 %v7803_v48, %v2143_v26 }
 0x2c9   : > { %10381 = vst [vmem:[#allocation70_spill] sm:$0xff] %v7891_v12  ;;  %v2723_v11 = vadd.f32 %v2722_v6, %v2721_v47  ;;  %v2418_v6 = vadd.f32 %v7765_v55, %v2140_v56  ;;  %v1866_v56 = vadd.f32 %v7767_v29, %v7549_v17  ;;  %v2732_v55 = vsel %vm204_vm1, %v7743_v45, 0.0 }
 0x2ca   : > { %v7930_v20 = vadd.f32 %v7746_v30, %v2417_v27  ;;  %v2144_v46 = vadd.f32 %v7817_v44, %v1865_v2  ;;  %v7950_v29 = vadd.f32 %v7770_v28, %v2419_v57  ;;  %v1868_v16 = vadd.f32 %v7795_v53, %v7572_v14  ;;  %v7956_v44 = vpop.f32.mrf.mxu1  ;;  %v10386_v2 = vld [vmem:[#allocation50_spill] sm:$0xff] }
 0x2cb   : > { %v2725_v24 = vadd.f32 %v2724_v1, %v2723_v11  ;;  %v7939_v9 = vadd.f32 %v7758_v60, %v2418_v6  ;;  %v2145_v60 = vadd.f32 %v7827_v51, %v1866_v56  ;;  %v7961_v35 = vadd.f32 %v7782_v54, %v2420_v34  ;;  %v10388_v57 = vld [vmem:[#allocation34_spill] sm:$0xff]  ;;  %v10390_v34 = vld [vmem:[#allocation51_spill] sm:$0xff] }
 0x2cc   : > { %v2734_v17 = vsel %vm204_vm1, %v7930_v20, 0.0  ;;  %v2422_v28 = vadd.f32 %v7821_v32, %v2144_v46  ;;  %v2146_v11 = vadd.f32 %v7838_v3, %v1867_v0  ;;  %v1869_v51 = vadd.f32 %v7815_v39, %v7579_v13  ;;  %v10391_v0 = vld [vmem:[#allocation54_spill] sm:$0xff] }
 0x2cd   : > { %v7905_v12 = vpop.f32.mrf.mxu0  ;;  %v2727_v47 = vadd.f32 %v2726_v5, %v2725_v24  ;;  %v2736_v36 = vsel %vm204_vm1, %v7939_v9, 0.0  ;;  %v2738_v53 = vsel %vm204_vm1, %v7950_v29, 0.0  ;;  %v7972_v5 = vadd.f32 %v7793_v22, %v2421_v58  ;;  %v10382_v24 = vld [vmem:[#allocation57_spill] sm:$0xff] }
 0x2ce   : > { %v7915_v7 = vpop.f32.mrf.mxu2  ;;  %v2423_v27 = vadd.f32 %v7830_v33, %v2145_v60  ;;  %v2147_v54 = vadd.f32 %v7847_v25, %v1868_v16  ;;  %v1870_v32 = vadd.f32 %v7832_v38, %v7586_v10  ;;  %v2740_v4 = vsel %vm204_vm1, %v7961_v35, 0.0  ;;  %v10384_v33 = vld [vmem:[#allocation48_spill] sm:$0xff]  ;;  %v10385_v38 = vld [vmem:[#allocation46_spill] sm:$0xff] }
 0x2cf   : > { %v2729_v50 = vadd.f32 %v2728_v52, %v2727_v47  ;;  %v7981_v13 = vadd.f32 %v7811_v43, %v2422_v28  ;;  %v2424_v39 = vadd.f32 %v7841_v8, %v2146_v11  ;;  %v2148_v41 = vadd.f32 %v10382_v24, %v1869_v51  ;;  %v10383_v52 = vld [vmem:[#allocation33_spill] sm:$0xff]  ;;  %v10389_v8 = vld [vmem:[#allocation52_spill] sm:$0xff] }
 0x2d0   : > { %v7923_v37 = vpop.f32.mrf.mxu3  ;;  %v1871_v6 = vadd.f32 %v10384_v33, %v10383_v52  ;;  %v2742_v10 = vsel %vm204_vm1, %v7972_v5, 0.0  ;;  %v7992_v59 = vadd.f32 %v10385_v38, %v2423_v27  ;;  %v2425_v47 = vadd.f32 %v10386_v2, %v2147_v54  ;;  %v10387_v43 = vld [vmem:[#allocation61_spill] sm:$0xff]  ;;  %v10392_v60 = vld [vmem:[#allocation36_spill] sm:$0xff]  ;;  %v10399_v33 = vld [vmem:[#allocation67_spill] sm:$0xff] }
 0x2d1   : > { %v2731_v31 = vadd.f32 %v2730_v15, %v2729_v50  ;;  %v2149_v15 = vadd.f32 %v10387_v43, %v1870_v32  ;;  %v1872_v26 = vadd.f32 %v10389_v8, %v10388_v57  ;;  %v8001_v46 = vadd.f32 %v10390_v34, %v2424_v39  ;;  %v10393_v16 = vld [vmem:[#allocation56_spill] sm:$0xff]  ;;  %v10394_v51 = vld [vmem:[#allocation53_spill] sm:$0xff]  ;;  %v10396_v32 = vld [vmem:[#allocation35_spill] sm:$0xff] }
 0x2d2   : > { %v2746_v11 = vsel %vm204_vm1, %v7992_v59, 0.0  ;;  %v10397_v39 = vld [vmem:[#allocation55_spill] sm:$0xff]  ;;  %v10401_v38 = vld [vmem:[#allocation64_spill] sm:$0xff] }
 0x2d3   : > { %v2733_v18 = vadd.f32 %v2732_v55, %v2731_v31  ;;  %v2744_v55 = vsel %vm204_vm1, %v7981_v13, 0.0  ;;  %v2426_v31 = vadd.f32 %v10391_v0, %v2148_v41  ;;  %v2151_v54 = vadd.f32 %v7877_v23, %v1872_v26  ;;  %v10398_v41 = vld [vmem:[#allocation60_spill] sm:$0xff]  ;;  %v10404_v26 = vld [vmem:[#allocation37_spill] sm:$0xff] }
 0x2d5   : > { %v7943_v30 = vpop.f32.mrf.mxu0  ;;  %v2735_v14 = vadd.f32 %v2734_v17, %v2733_v18  ;;  %v2150_v17 = vadd.f32 %v7869_v61, %v1871_v6  ;;  %v1873_v18 = vadd.f32 %v10393_v16, %v10392_v60  ;;  %v8019_v24 = vadd.f32 %v10397_v39, %v2426_v31  ;;  %v10405_v31 = vld [vmem:[#allocation63_spill] sm:$0xff]  ;;  %v10406_v60 = vld [vmem:[#allocation70_spill] sm:$0xff] }
 0x2d6   : > { %v2104_v1 = vpop.f32.mrf.mxu2 }
 0x2d7   : > { %v2737_v3 = vadd.f32 %v2736_v36, %v2735_v14  ;;  %v1834_v36 = vpop.f32.mrf.mxu1  ;;  %v8010_v14 = vadd.f32 %v10394_v51, %v2425_v47  ;;  %v2428_v52 = vadd.f32 %v10398_v41, %v2150_v17  ;;  %v2152_v6 = vadd.f32 %v10399_v33, %v1873_v18 }
 0x2d8   : > { %v7965_v48 = vpop.f32.mrf.mxu3  ;;  %v2752_v0 = vsel %vm204_vm1, %v8019_v24, 0.0 }
 0x2d9   : > { %v2739_v25 = vadd.f32 %v2738_v53, %v2737_v3  ;;  %v10395_v53 = vld [vmem:[#allocation58_spill] sm:$0xff]  ;;  %v1874_v3 = vadd.f32 %v7873_v49, %v10396_v32  ;;  %v2750_v23 = vsel %vm204_vm1, %v8010_v14, 0.0  ;;  %v10402_v49 = vld [vmem:[#allocation59_spill] sm:$0xff]  ;;  %v8037_v17 = vadd.f32 %v10405_v31, %v2428_v52 }
 0x2da   : > { %v2427_v27 = vadd.f32 %v10395_v53, %v2149_v15  ;;  %v10403_v15 = vld [vmem:[#allocation62_spill] sm:$0xff]  ;;  %v2430_v16 = vadd.f32 %v10406_v60, %v2152_v6  ;;  %v10410_v6 = vld [vmem:[#allocation39_spill] sm:$0xff] }
 0x2db   : > { %v2741_v56 = vadd.f32 %v2740_v4, %v2739_v25  ;;  %v2748_v4 = vsel %vm204_vm1, %v8001_v46, 0.0  ;;  %v2429_v57 = vadd.f32 %v10403_v15, %v2151_v54  ;;  %v2153_v8 = vadd.f32 %v7915_v7, %v1874_v3  ;;  %v10411_v31 = vld [vmem:[#allocation43_spill] sm:$0xff] }
 0x2dc   : > { %v8028_v43 = vadd.f32 %v10402_v49, %v2427_v27 }
 0x2dd   : > { %v7985_v22 = vpop.f32.mrf.mxu0  ;;  %v2743_v28 = vadd.f32 %v2742_v10, %v2741_v56  ;;  %v10400_v10 = vld [vmem:[#allocation38_spill] sm:$0xff]  ;;  %v1876_v56 = vadd.f32 %v7907_v62, %v10404_v26  ;;  %v10408_v62 = vld [vmem:[#allocation65_spill] sm:$0xff]  ;;  %v2431_v54 = vadd.f32 %v7923_v37, %v2153_v8 }
 0x2de   : > { %v2107_v50 = vpop.f32.mrf.mxu2  ;;  %v1875_v2 = vadd.f32 %v10401_v38, %v10400_v10  ;;  %v2754_v7 = vsel %vm204_vm1, %v8028_v43, 0.0  ;;  %v8045_v27 = vadd.f32 %v10408_v62, %v2429_v57  ;;  %v1878_v10 = vadd.f32 %v1834_v36, %v10410_v6 }
 0x2df   : > { %v2745_v61 = vadd.f32 %v2744_v55, %v2743_v28  ;;  %v2155_v32 = vadd.f32 %v2107_v50, %v1876_v56  ;;  %v1837_v3 = vpop.f32.mrf.mxu1  ;;  %v8058_v37 = vadd.f32 %v7905_v12, %v2431_v54 }
 0x2e0   : > { %v2385_v58 = vpop.f32.mrf.mxu3  ;;  %v2154_v18 = vadd.f32 %v2104_v1, %v1875_v2  ;;  %v10409_v1 = vld [vmem:[#allocation66_spill] sm:$0xff]  ;;  %v2758_v38 = vsel %vm204_vm1, %v8045_v27, 0.0  ;;  %v1879_v60 = vadd.f32 %v1837_v3, %v10411_v31 }
 0x2e1   : > { %v2747_v47 = vadd.f32 %v2746_v11, %v2745_v61  ;;  %v10407_v11 = vld [vmem:[#allocation41_spill] sm:$0xff]  ;;  %v8051_v39 = vadd.f32 %v10409_v1, %v2430_v16  ;;  %v2433_v50 = vadd.f32 %v2385_v58, %v2155_v32  ;;  %v2762_v36 = vsel %vm204_vm1, %v8058_v37, 0.0 }
 0x2e2   : > { %v1877_v51 = vadd.f32 %v7956_v44, %v10407_v11  ;;  %v2432_v44 = vadd.f32 %v7965_v48, %v2154_v18 }
 0x2e3   : > { %v2749_v55 = vadd.f32 %v2748_v4, %v2747_v47  ;;  %v2756_v4 = vsel %vm204_vm1, %v8037_v17, 0.0  ;;  %v8068_v26 = vadd.f32 %v7985_v22, %v2433_v50 }
 0x2e4   : > { %v8063_v49 = vadd.f32 %v7943_v30, %v2432_v44 }
 0x2e5   : > { %v2666_v25 = vpop.f32.mrf.mxu0  ;;  %v2751_v53 = vadd.f32 %v2750_v23, %v2749_v55  ;;  %v2760_v23 = vsel %vm204_vm1, %v8051_v39, 0.0  ;;  %v2766_v16 = vsel %vm204_vm1, %v8068_v26, 0.0 }
 0x2e6   : > { %v2110_v34 = vpop.f32.mrf.mxu2  ;;  %v2764_v56 = vsel %vm204_vm1, %v8063_v49, 0.0 }
 0x2e7   : > { %v2753_v61 = vadd.f32 %v2752_v0, %v2751_v53  ;;  %v2156_v41 = vadd.f32 %v2110_v34, %v1877_v51  ;;  %v1840_v30 = vpop.f32.mrf.mxu1 }
 0x2e8   : > { %v2388_v28 = vpop.f32.mrf.mxu3 }
 0x2e9   : > { %v2755_v33 = vadd.f32 %v2754_v7, %v2753_v61  ;;  %v2434_v48 = vadd.f32 %v2388_v28, %v2156_v41 }
 0x2eb   : > { %v2757_v2 = vadd.f32 %v2756_v4, %v2755_v33  ;;  %v8072_v55 = vadd.f32 %v2666_v25, %v2434_v48  ;;  %v10412_v4 = vld [vmem:[#allocation40_spill] sm:$0xff] }
 0x2ec   : > { %v1880_v1 = vadd.f32 %v1840_v30, %v10412_v4 }
 0x2ed   : > { %v2669_v52 = vpop.f32.mrf.mxu0  ;;  %v2759_v8 = vadd.f32 %v2758_v38, %v2757_v2  ;;  %v2768_v11 = vsel %vm204_vm1, %v8072_v55, 0.0 }
 0x2ee   : > { %v2113_v47 = vpop.f32.mrf.mxu2 }
 0x2ef   : > { %v2157_v15 = vadd.f32 %v2113_v47, %v1878_v10  ;;  %v2761_v58 = vadd.f32 %v2760_v23, %v2759_v8  ;;  %v1843_v41 = vpop.f32.mrf.mxu1  ;;  %v10413_v47 = vld [vmem:[#allocation45_spill] sm:$0xff] }
 0x2f0   : > { %v2391_v57 = vpop.f32.mrf.mxu3  ;;  %v1881_v23 = vadd.f32 %v1843_v41, %v10413_v47 }
 0x2f1   : > { %v2435_v12 = vadd.f32 %v2391_v57, %v2157_v15  ;;  %v2763_v0 = vadd.f32 %v2762_v36, %v2761_v58 }
 0x2f3   : > { %v8077_v18 = vadd.f32 %v2669_v52, %v2435_v12  ;;  %v2765_v28 = vadd.f32 %v2764_v56, %v2763_v0 }
 0x2f5   : > { %v2672_v34 = vpop.f32.mrf.mxu0  ;;  %v2767_v7 = vadd.f32 %v2766_v16, %v2765_v28  ;;  %v2770_v25 = vsel %vm204_vm1, %v8077_v18, 0.0 }
 0x2f6   : > { %v2116_v22 = vpop.f32.mrf.mxu2 }
 0x2f7   : > { %v2158_v51 = vadd.f32 %v2116_v22, %v1879_v60  ;;  %v2769_v54 = vadd.f32 %v2768_v11, %v2767_v7  ;;  %v1846_v12 = vpop.f32.mrf.mxu1  ;;  %v6528_v7 = vmov 256.0  }
 0x2f8   : > { %v2394_v53 = vpop.f32.mrf.mxu3  ;;  %6514 = vrcp.f32 %v6528_v7 }
 0x2f9   : > { %v2436_v62 = vadd.f32 %v2394_v53, %v2158_v51  ;;  %v2771_v61 = vadd.f32 %v2770_v25, %v2769_v54  ;;  %v10415_v25 = vld [vmem:[#allocation47_spill] sm:$0xff] }
 0x2fb   : > { %v2714_v32 = vadd.f32 %v2672_v34, %v2436_v62  ;;  %v10414_v34 = vld [vmem:[#allocation42_spill] sm:$0xff] }
 0x2fc   : > { %v1882_v30 = vadd.f32 %v1846_v12, %v10414_v34 }
 0x2fd   : > { %v2675_v3 = vpop.f32.mrf.mxu0  ;;  %v2772_v44 = vsel %vm204_vm1, %v2714_v32, 0.0 }
 0x2fe   : > { %v2773_v52 = vadd.f32 %v2772_v44, %v2771_v61  ;;  %v2119_v33 = vpop.f32.mrf.mxu2 }
 0x2ff   : > { %v2159_v6 = vadd.f32 %v2119_v33, %v1880_v1  ;;  %v1849_v51 = vpop.f32.mrf.mxu1 }
 0x300   : > { %v2397_v10 = vpop.f32.mrf.mxu3  ;;  %v1883_v62 = vadd.f32 %v1849_v51, %v10415_v25 }
 0x301   : > { %v2437_v38 = vadd.f32 %v2397_v10, %v2159_v6 }
 0x303   : > { %v2715_v50 = vadd.f32 %v2675_v3, %v2437_v38 }
 0x305   : > { %v2678_v2 = vpop.f32.mrf.mxu0  ;;  %v2774_v48 = vsel %vm204_vm1, %v2715_v50, 0.0 }
 0x306   : > { %v2775_v15 = vadd.f32 %v2774_v48, %v2773_v52  ;;  %v2122_v57 = vpop.f32.mrf.mxu2  ;;  %v6515_v52 = vpop.eup %6514 }
 0x307   : > { %v2160_v8 = vadd.f32 %v2122_v57, %v1881_v23  ;;  %v2789_v10 = vmul.f32 256.0, %v6515_v52  ;;  %vm2793_vm4 = vweird.f32 %v6515_v52 }
 0x308   : > { %v2400_v36 = vpop.f32.mrf.mxu3 }
 0x309   : > { %v2438_v58 = vadd.f32 %v2400_v36, %v2160_v8  ;;  %v2790_v47 = vsub.f32 1.0, %v2789_v10 }
 0x30b   : > { %v2716_v56 = vadd.f32 %v2678_v2, %v2438_v58 }
 0x30d   : > { %v2776_v0 = vsel %vm204_vm1, %v2716_v56, 0.0  ;;  %v2681_v16 = vpop.f32.mrf.mxu0 }
 0x30e   : > { %v2777_v31 = vadd.f32 %v2776_v0, %v2775_v15  ;;  %v2125_v60 = vpop.f32.mrf.mxu2  ;;  %v2791_v15 = vmul.f32 %v6515_v52, %v2790_v47 }
 0x30f   : > { %v2161_v28 = vadd.f32 %v2125_v60, %v1882_v30 }
 0x310   : > { %v2403_v22 = vpop.f32.mrf.mxu3  ;;  %v2792_v36 = vadd.f32 %v6515_v52, %v2791_v15 }
 0x311   : > { %v2439_v11 = vadd.f32 %v2403_v22, %v2161_v28  ;;  %v10417_v22 = vld [vmem:[#allocation44_spill] sm:$0xff] }
 0x312   : > { %v8092_v58 = vsel %vm2793_vm4, %v6515_v52, %v2792_v36 }
 0x313   : > { %v2717_v53 = vadd.f32 %v2681_v16, %v2439_v11  ;;  %10416 = vst [vmem:[#allocation57_spill] sm:$0xff] %v8092_v58 }
 0x315   : > { %v2778_v54 = vsel %vm204_vm1, %v2717_v53, 0.0  ;;  %v2684_v44 = vpop.f32.mrf.mxu0 }
 0x316   : > { %v2779_v3 = vadd.f32 %v2778_v54, %v2777_v31  ;;  %v2128_v61 = vpop.f32.mrf.mxu2 }
 0x317   : > { %v2162_v4 = vadd.f32 %v2128_v61, %v1883_v62 }
 0x318   : > { %v2406_v1 = vpop.f32.mrf.mxu3 }
 0x319   : > { %v2440_v41 = vadd.f32 %v2406_v1, %v2162_v4 }
 0x31b   : > { %v2718_v33 = vadd.f32 %v2684_v44, %v2440_v41 }
 0x31d   : > { %v2780_v6 = vsel %vm204_vm1, %v2718_v33, 0.0 }
 0x31e   : > { %v2781_v38 = vadd.f32 %v2780_v6, %v2779_v3 }
 0x320   : > { %v2782_v2 = vrot.slane %v2781_v38, 4 }
 0x322   : > { %v2783_v23 = vadd.f32 %v2782_v2, %v2781_v38 }
 0x324   : > { %v2784_v48 = vrot.slane %v2783_v23, 2 }
 0x326   : > { %v2785_v57 = vadd.f32 %v2784_v48, %v2783_v23 }
 0x328   : > { %v2786_v8 = vrot.slane %v2785_v57, 1 }
 0x32a   : > { %v2787_v12 = vadd.f32 %v2786_v8, %v2785_v57 }
 0x32c   : > { %v8095_v34 = vmul.f32 %v8092_v58, %v2787_v12 }
 0x32e   : > { %v8099_v30 = vsub.f32 %v8077_v18, %v8095_v34  ;;  %v8102_v0 = vsub.f32 %v2714_v32, %v8095_v34  ;;  %v8105_v31 = vsub.f32 %v2715_v50, %v8095_v34  ;;  %v8108_v60 = vsub.f32 %v2716_v56, %v8095_v34  ;;  %v10418_v18 = vld [vmem:[#allocation49_spill] sm:$0xff] }
 0x32f   : > { %v8111_v16 = vsub.f32 %v2717_v53, %v8095_v34  ;;  %v8114_v28 = vsub.f32 %v2718_v33, %v8095_v34  ;;  %v8118_v11 = vsub.f32 %v10417_v22, %v8095_v34  ;;  %v8122_v32 = vsub.f32 %v10418_v18, %v8095_v34 }
 0x330   : > { %v8126_v50 = vsub.f32 %v7700_v42, %v8095_v34  ;;  %v8130_v56 = vsub.f32 %v7709_v21, %v8095_v34  ;;  %v8138_v7 = vsub.f32 %v7718_v19, %v8095_v34  ;;  %v8144_v42 = vsub.f32 %v7727_v63, %v8095_v34 }
 0x331   : > { %v2828_v51 = vmul.f32 %v8118_v11, %v8118_v11  ;;  %v2829_v53 = vmul.f32 %v8122_v32, %v8122_v32  ;;  %v8152_v61 = vsub.f32 %v7734_v40, %v8095_v34  ;;  %v8159_v63 = vsub.f32 %v7743_v45, %v8095_v34 }
 0x332   : > { %v2830_v25 = vmul.f32 %v8126_v50, %v8126_v50  ;;  %v2831_v21 = vmul.f32 %v8130_v56, %v8130_v56  ;;  %v2832_v19 = vmul.f32 %v8138_v7, %v8138_v7  ;;  %v2833_v44 = vmul.f32 %v8144_v42, %v8144_v42 }
 0x333   : > { %v2860_v62 = vsel %vm204_vm1, %v2828_v51, 0.0  ;;  %v2861_v54 = vsel %vm204_vm1, %v2829_v53, 0.0  ;;  %v8166_v40 = vsub.f32 %v7930_v20, %v8095_v34  ;;  %v2834_v33 = vmul.f32 %v8152_v61, %v8152_v61 }
 0x334   : > { %v2862_v3 = vadd.f32 %v2861_v54, %v2860_v62  ;;  %v2863_v4 = vsel %vm204_vm1, %v2830_v25, 0.0  ;;  %v2865_v41 = vsel %vm204_vm1, %v2831_v21, 0.0  ;;  %v2867_v6 = vsel %vm204_vm1, %v2832_v19, 0.0 }
 0x335   : > { %v8173_v45 = vsub.f32 %v7939_v9, %v8095_v34  ;;  %v2835_v38 = vmul.f32 %v8159_v63, %v8159_v63  ;;  %v2869_v2 = vsel %vm204_vm1, %v2833_v44, 0.0  ;;  %v8180_v20 = vsub.f32 %v7950_v29, %v8095_v34 }
 0x336   : > { %v2864_v1 = vadd.f32 %v2863_v4, %v2862_v3  ;;  %v2836_v23 = vmul.f32 %v8166_v40, %v8166_v40  ;;  %v2871_v48 = vsel %vm204_vm1, %v2834_v33, 0.0  ;;  %v8187_v9 = vsub.f32 %v7961_v35, %v8095_v34 }
 0x337   : > { %v2837_v57 = vmul.f32 %v8173_v45, %v8173_v45  ;;  %v2873_v8 = vsel %vm204_vm1, %v2835_v38, 0.0  ;;  %v8194_v29 = vsub.f32 %v7972_v5, %v8095_v34  ;;  %v2838_v12 = vmul.f32 %v8180_v20, %v8180_v20 }
 0x338   : > { %v2866_v52 = vadd.f32 %v2865_v41, %v2864_v1  ;;  %v2875_v22 = vsel %vm204_vm1, %v2836_v23, 0.0  ;;  %v8201_v35 = vsub.f32 %v7981_v13, %v8095_v34  ;;  %v2839_v51 = vmul.f32 %v8187_v9, %v8187_v9 }
 0x339   : > { %v2877_v53 = vsel %vm204_vm1, %v2837_v57, 0.0  ;;  %v8208_v5 = vsub.f32 %v7992_v59, %v8095_v34  ;;  %v2840_v21 = vmul.f32 %v8194_v29, %v8194_v29  ;;  %v2879_v62 = vsel %vm204_vm1, %v2838_v12, 0.0 }
 0x33a   : > { %v2868_v10 = vadd.f32 %v2867_v6, %v2866_v52  ;;  %v8215_v13 = vsub.f32 %v8001_v46, %v8095_v34  ;;  %v2841_v3 = vmul.f32 %v8201_v35, %v8201_v35  ;;  %v2881_v19 = vsel %vm204_vm1, %v2839_v51, 0.0 }
 0x33b   : > { %v8222_v59 = vsub.f32 %v8010_v14, %v8095_v34  ;;  %v2842_v1 = vmul.f32 %v8208_v5, %v8208_v5  ;;  %v2883_v44 = vsel %vm204_vm1, %v2840_v21, 0.0  ;;  %v8229_v46 = vsub.f32 %v8019_v24, %v8095_v34 }
 0x33c   : > { %v2870_v47 = vadd.f32 %v2869_v2, %v2868_v10  ;;  %v2843_v52 = vmul.f32 %v8215_v13, %v8215_v13  ;;  %v2885_v33 = vsel %vm204_vm1, %v2841_v3, 0.0  ;;  %v8236_v14 = vsub.f32 %v8028_v43, %v8095_v34 }
 0x33d   : > { %v2844_v10 = vmul.f32 %v8222_v59, %v8222_v59  ;;  %v2887_v38 = vsel %vm204_vm1, %v2842_v1, 0.0  ;;  %v8243_v24 = vsub.f32 %v8037_v17, %v8095_v34  ;;  %v8250_v43 = vsub.f32 %v8045_v27, %v8095_v34 }
 0x33e   : > { %v2872_v15 = vadd.f32 %v2871_v48, %v2870_v47  ;;  %v2845_v47 = vmul.f32 %v8229_v46, %v8229_v46  ;;  %v2889_v23 = vsel %vm204_vm1, %v2843_v52, 0.0  ;;  %v8257_v17 = vsub.f32 %v8051_v39, %v8095_v34 }
 0x33f   : > { %v2891_v57 = vsel %vm204_vm1, %v2844_v10, 0.0  ;;  %v8264_v27 = vsub.f32 %v8058_v37, %v8095_v34  ;;  %v8271_v39 = vsub.f32 %v8063_v49, %v8095_v34  ;;  %v8278_v37 = vsub.f32 %v8068_v26, %v8095_v34 }
 0x340   : > { %v2874_v36 = vadd.f32 %v2873_v8, %v2872_v15  ;;  %v2846_v15 = vmul.f32 %v8236_v14, %v8236_v14  ;;  %v2893_v12 = vsel %vm204_vm1, %v2845_v47, 0.0  ;;  %v8285_v49 = vsub.f32 %v8072_v55, %v8095_v34 }
 0x341   : > { %v2852_v26 = vmul.f32 %v8278_v37, %v8278_v37  ;;  %v2854_v55 = vmul.f32 %v8099_v30, %v8099_v30 }
 0x342   : > { %v2876_v18 = vadd.f32 %v2875_v22, %v2874_v36  ;;  %v2847_v36 = vmul.f32 %v8243_v24, %v8243_v24  ;;  %v2895_v51 = vsel %vm204_vm1, %v2846_v15, 0.0 }
 0x343   : > { %v2907_v34 = vsel %vm204_vm1, %v2852_v26, 0.0  ;;  %v2911_v15 = vsel %vm204_vm1, %v2854_v55, 0.0  ;;  %v6261_v55 = vld [vmem:[%s10126_s2 + $0x8] sm:$0xf] }
 0x344   : > { %v2878_v25 = vadd.f32 %v2877_v53, %v2876_v18  ;;  %v2848_v18 = vmul.f32 %v8250_v43, %v8250_v43  ;;  %v2897_v21 = vsel %vm204_vm1, %v2847_v36, 0.0  ;;  %6262 = vmatpush.msk.msrb.mxu3 %vm443_vm0, %v6261_v55 }
 0x346   : > { %v2880_v54 = vadd.f32 %v2879_v62, %v2878_v25  ;;  %v2849_v25 = vmul.f32 %v8257_v17, %v8257_v17  ;;  %v2899_v3 = vsel %vm204_vm1, %v2848_v18, 0.0 }
 0x348   : > { %v2882_v4 = vadd.f32 %v2881_v19, %v2880_v54  ;;  %v2850_v54 = vmul.f32 %v8264_v27, %v8264_v27  ;;  %v2901_v1 = vsel %vm204_vm1, %v2849_v25, 0.0 }
 0x34a   : > { %v2884_v41 = vadd.f32 %v2883_v44, %v2882_v4  ;;  %v2851_v4 = vmul.f32 %v8271_v39, %v8271_v39 }
 0x34c   : > { %v2886_v6 = vadd.f32 %v2885_v33, %v2884_v41  ;;  %v2903_v41 = vsel %vm204_vm1, %v2850_v54, 0.0  ;;  %v2853_v33 = vmul.f32 %v8285_v49, %v8285_v49 }
 0x34e   : > { %v2888_v2 = vadd.f32 %v2887_v38, %v2886_v6  ;;  %v2905_v6 = vsel %vm204_vm1, %v2851_v4, 0.0  ;;  %v2909_v47 = vsel %vm204_vm1, %v2853_v33, 0.0  ;;  %v3109_v33 = vld [vmem:[%s10126_s2] sm:$0xf] }
 0x34f   : > { %6228 = vmatpush.msk.msrb.mxu2 %vm443_vm0, %v3109_v33 }
 0x350   : > { %v2890_v48 = vadd.f32 %v2889_v23, %v2888_v2  ;;  %v2855_v2 = vmul.f32 %v8102_v0, %v8102_v0 }
 0x352   : > { %v2892_v8 = vadd.f32 %v2891_v57, %v2890_v48  ;;  %v2856_v48 = vmul.f32 %v8105_v31, %v8105_v31  ;;  %v2913_v36 = vsel %vm204_vm1, %v2855_v2, 0.0 }
 0x354   : > { %v2894_v22 = vadd.f32 %v2893_v12, %v2892_v8  ;;  %v2857_v8 = vmul.f32 %v8108_v60, %v8108_v60  ;;  %v2915_v18 = vsel %vm204_vm1, %v2856_v48, 0.0 }
 0x356   : > { %v2896_v53 = vadd.f32 %v2895_v51, %v2894_v22  ;;  %v2858_v22 = vmul.f32 %v8111_v16, %v8111_v16  ;;  %v2917_v25 = vsel %vm204_vm1, %v2857_v8, 0.0 }
 0x358   : > { %v2898_v62 = vadd.f32 %v2897_v21, %v2896_v53  ;;  %v2859_v53 = vmul.f32 %v8114_v28, %v8114_v28 }
 0x35a   : > { %v2900_v19 = vadd.f32 %v2899_v3, %v2898_v62  ;;  %v2919_v62 = vsel %vm204_vm1, %v2858_v22, 0.0  ;;  %v2921_v3 = vsel %vm204_vm1, %v2859_v53, 0.0 }
 0x35c   : > { %v2902_v44 = vadd.f32 %v2901_v1, %v2900_v19 }
 0x35e   : > { %v2904_v52 = vadd.f32 %v2903_v41, %v2902_v44 }
 0x360   : > { %v2906_v10 = vadd.f32 %v2905_v6, %v2904_v52 }
 0x362   : > { %v2908_v38 = vadd.f32 %v2907_v34, %v2906_v10 }
 0x364   : > { %v2910_v23 = vadd.f32 %v2909_v47, %v2908_v38 }
 0x366   : > { %v2912_v57 = vadd.f32 %v2911_v15, %v2910_v23 }
 0x368   : > { %v2914_v12 = vadd.f32 %v2913_v36, %v2912_v57 }
 0x36a   : > { %v2916_v51 = vadd.f32 %v2915_v18, %v2914_v12 }
 0x36c   : > { %v2918_v21 = vadd.f32 %v2917_v25, %v2916_v51 }
 0x36e   : > { %v2920_v54 = vadd.f32 %v2919_v62, %v2918_v21 }
 0x370   : > { %v2922_v19 = vadd.f32 %v2921_v3, %v2920_v54 }
 0x372   : > { %v2923_v4 = vrot.slane %v2922_v19, 4 }
 0x374   : > { %v2924_v1 = vadd.f32 %v2923_v4, %v2922_v19 }
 0x376   : > { %v2925_v44 = vrot.slane %v2924_v1, 2 }
 0x378   : > { %v2926_v26 = vadd.f32 %v2925_v44, %v2924_v1 }
 0x37a   : > { %v2927_v41 = vrot.slane %v2926_v26, 1 }
 0x37c   : > { %v2928_v52 = vadd.f32 %v2927_v41, %v2926_v26 }
 0x37e   : > { %v2929_v6 = vmul.f32 %v2928_v52, %v8092_v58 }
 0x380   : > { %v2930_v10 = vadd.f32 1e-05, %v2929_v6 }
 0x382   : > { %6516 = vrsqrt.f32 %v2930_v10  ;;  %vm2937_vm6 = vweird.f32 %v2930_v10 }
 0x388   : > { %v6517_v34 = vpop.eup %6516 }
 0x389   : > { %v2932_v38 = vmul.f32 %v6517_v34, %v2930_v10  ;;  %vm2938_vm5 = vweird.f32 %v6517_v34 }
 0x38a   : > { %vm2939_vm7 = vmor %vm2937_vm6, %vm2938_vm5 }
 0x38b   : > { %v2933_v2 = vmul.f32 %v6517_v34, %v2932_v38 }
 0x38d   : > { %v2934_v47 = vmul.f32 0.5, %v2933_v2 }
 0x38f   : > { %v2935_v23 = vsub.f32 1.5, %v2934_v47 }
 0x391   : > { %v2936_v48 = vmul.f32 %v6517_v34, %v2935_v23 }
 0x393   : > { %v8325_v15 = vsel %vm2939_vm7, %v6517_v34, %v2936_v48 }
 0x394   : > { %v2972_v57 = vmul.f32 %v8325_v15, %v8114_v28  ;;  %v8332_v36 = vmul.f32 %v8325_v15, %v8118_v11  ;;  %v8336_v12 = vmul.f32 %v8325_v15, %v8122_v32  ;;  %v2943_v22 = vmul.f32 %v8325_v15, %v8126_v50 }
 0x395   : > { %v2944_v18 = vmul.f32 %v8325_v15, %v8130_v56  ;;  %v8345_v28 = vmul.f32 %v8325_v15, %v8138_v7  ;;  %v8349_v11 = vmul.f32 %v8325_v15, %v8144_v42  ;;  %v8353_v32 = vmul.f32 %v8325_v15, %v8152_v61 }
 0x396   : > { %v3004_v8 = vmax.f32 %v2972_v57, 0.0  ;;  %v2973_v51 = vmax.f32 %v8332_v36, 0.0  ;;  %v2974_v50 = vmax.f32 %v8336_v12, 0.0  ;;  %v8357_v53 = vmax.f32 %v2943_v22, 0.0 }
 0x397   : > { %v8361_v56 = vmul.f32 %v8325_v15, %v8159_v63  ;;  %v8363_v7 = vmax.f32 %v2944_v18, 0.0  ;;  %v8367_v42 = vmul.f32 %v8325_v15, %v8166_v40  ;;  %v2977_v25 = vmax.f32 %v8345_v28, 0.0 }
 0x398   : > { %3075 = vst.msk [vmem:[#allocation2 + $0x18b] sm:$0x40] %vm261_vm3, %v3004_v8  ;;  %v8375_v61 = vmul.f32 %v8325_v15, %v8173_v45  ;;  %v2978_v21 = vmax.f32 %v8349_v11, 0.0  ;;  %v8383_v63 = vmul.f32 %v8325_v15, %v8180_v20  ;;  %v2979_v40 = vmax.f32 %v8353_v32, 0.0 }
 0x399   : > { %3036 = vst.msk [vmem:[#allocation2 + $0x189] sm:$0xff] %vm204_vm1, %v3004_v8  ;;  %v8390_v62 = vmul.f32 %v8325_v15, %v8187_v9  ;;  %v2980_v45 = vmax.f32 %v8361_v56, 0.0  ;;  %v8397_v54 = vmul.f32 %v8325_v15, %v8194_v29  ;;  %v2981_v20 = vmax.f32 %v8367_v42, 0.0 }
 0x39a   : > { %3005 = vst.msk [vmem:[#allocation2 + $0x19] sm:$0xff] %vm204_vm1, %v2973_v51  ;;  %v8405_v3 = vmul.f32 %v8325_v15, %v8201_v35  ;;  %v2982_v9 = vmax.f32 %v8375_v61, 0.0  ;;  %v8413_v29 = vmul.f32 %v8325_v15, %v8208_v5  ;;  %v2983_v19 = vmax.f32 %v8383_v63, 0.0 }
 0x39b   : > { %3006 = vst.msk [vmem:[#allocation2 + $0x21] sm:$0xff] %vm204_vm1, %v2974_v50  ;;  %v8421_v35 = vmul.f32 %v8325_v15, %v8215_v13  ;;  %v2984_v4 = vmax.f32 %v8390_v62, 0.0  ;;  %v8429_v5 = vmul.f32 %v8325_v15, %v8222_v59  ;;  %v2985_v1 = vmax.f32 %v8397_v54, 0.0 }
 0x39c   : > { %3007 = vst.msk [vmem:[#allocation2 + $0x31] sm:$0xff] %vm204_vm1, %v8357_v53  ;;  %v8437_v13 = vmul.f32 %v8325_v15, %v8229_v46  ;;  %v2986_v44 = vmax.f32 %v8405_v3, 0.0  ;;  %v8445_v59 = vmul.f32 %v8325_v15, %v8236_v14  ;;  %v2987_v26 = vmax.f32 %v8413_v29, 0.0 }
 0x39d   : > { %3008 = vst.msk [vmem:[#allocation2 + $0x39] sm:$0xff] %vm204_vm1, %v8363_v7  ;;  %v8453_v46 = vmul.f32 %v8325_v15, %v8243_v24  ;;  %v2988_v41 = vmax.f32 %v8421_v35, 0.0  ;;  %v8461_v14 = vmul.f32 %v8325_v15, %v8250_v43  ;;  %v2989_v52 = vmax.f32 %v8429_v5, 0.0 }
 0x39e   : > { %3009 = vst.msk [vmem:[#allocation2 + $0x49] sm:$0xff] %vm204_vm1, %v2977_v25  ;;  %v8469_v24 = vmul.f32 %v8325_v15, %v8257_v17  ;;  %v2990_v33 = vmax.f32 %v8437_v13, 0.0  ;;  %v8477_v43 = vmul.f32 %v8325_v15, %v8264_v27  ;;  %v2991_v6 = vmax.f32 %v8445_v59, 0.0 }
 0x39f   : > { %3010 = vst.msk [vmem:[#allocation2 + $0x51] sm:$0xff] %vm204_vm1, %v2978_v21  ;;  %v8485_v17 = vmul.f32 %v8325_v15, %v8271_v39  ;;  %v2992_v10 = vmax.f32 %v8453_v46, 0.0  ;;  %v8493_v27 = vmul.f32 %v8325_v15, %v8278_v37  ;;  %v2993_v55 = vmax.f32 %v8461_v14, 0.0 }
 0x3a0   : > { %3011 = vst.msk [vmem:[#allocation2 + $0x61] sm:$0xff] %vm204_vm1, %v2979_v40  ;;  %v8501_v39 = vmul.f32 %v8325_v15, %v8285_v49  ;;  %v2994_v34 = vmax.f32 %v8469_v24, 0.0  ;;  %v2967_v37 = vmul.f32 %v8325_v15, %v8099_v30  ;;  %v2995_v38 = vmax.f32 %v8477_v43, 0.0 }
 0x3a1   : > { %3012 = vst.msk [vmem:[#allocation2 + $0x69] sm:$0xff] %vm204_vm1, %v2980_v45  ;;  %v8515_v2 = vmul.f32 %v8325_v15, %v8102_v0  ;;  %v2996_v49 = vmax.f32 %v8485_v17, 0.0  ;;  %v2969_v47 = vmul.f32 %v8325_v15, %v8105_v31  ;;  %v2997_v30 = vmax.f32 %v8493_v27, 0.0 }
 0x3a2   : > { %3013 = vst.msk [vmem:[#allocation2 + $0x79] sm:$0xff] %vm204_vm1, %v2981_v20  ;;  %v2970_v23 = vmul.f32 %v8325_v15, %v8108_v60  ;;  %v2998_v48 = vmax.f32 %v8501_v39, 0.0  ;;  %v2971_v0 = vmul.f32 %v8325_v15, %v8111_v16  ;;  %v2999_v57 = vmax.f32 %v2967_v37, 0.0  ;;  %v6295_v16 = vld [vmem:[%s10126_s2 + $0xc] sm:$0xf]  ;;  %v3847_v42 = vld [vmem:[#allocation2 + $0x20] sm:$0xff] }
 0x3a3   : > { %3014 = vst.msk [vmem:[#allocation2 + $0x81] sm:$0xff] %vm204_vm1, %v2982_v9  ;;  %v3000_v31 = vmax.f32 %v8515_v2, 0.0  ;;  %v3001_v8 = vmax.f32 %v2969_v47, 0.0  ;;  %v6329_v15 = vld [vmem:[%s10126_s2 + $0x10] sm:$0xf]  ;;  %6296 = vmatpush.msk.msrb.mxu0 %vm443_vm0, %v6295_v16 }
 0x3a4   : > { %3015 = vst.msk [vmem:[#allocation2 + $0x91] sm:$0xff] %vm204_vm1, %v2983_v19  ;;  %v8539_v60 = vmax.f32 %v2970_v23, 0.0  ;;  %v3003_v22 = vmax.f32 %v2971_v0, 0.0  ;;  %6330 = vmatpush.msk.msrb.mxu1 %vm443_vm0, %v6329_v15  ;;  %v8670_v56 = vld [vmem:[#allocation2 + $0x38] sm:$0xff] }
 0x3a5   : > { %3016 = vst.msk [vmem:[#allocation2 + $0x99] sm:$0xff] %vm204_vm1, %v2984_v4  ;;  %v8682_v61 = vld [vmem:[#allocation2 + $0x31] sm:$0xff]  ;;  %v8710_v54 = vld [vmem:[#allocation2 + $0x49] sm:$0xff] }
 0x3a6   : > { %3017 = vst.msk [vmem:[#allocation2 + $0xa9] sm:$0xff] %vm204_vm1, %v2985_v1  ;;  %v8702_v62 = vld [vmem:[#allocation2 + $0x50] sm:$0xff] }
 0x3a7   : > { %3018 = vst.msk [vmem:[#allocation2 + $0xb1] sm:$0xff] %vm204_vm1, %v2986_v44  ;;  %v8738_v35 = vld [vmem:[#allocation2 + $0x61] sm:$0xff] }
 0x3a8   : > { %3019 = vst.msk [vmem:[#allocation2 + $0xc1] sm:$0xff] %vm204_vm1, %v2987_v26  ;;  %v8730_v29 = vld [vmem:[#allocation2 + $0x68] sm:$0xff] }
 0x3a9   : > { %3020 = vst.msk [vmem:[#allocation2 + $0xc9] sm:$0xff] %vm204_vm1, %v2988_v41  ;;  %v8766_v59 = vld [vmem:[#allocation2 + $0x79] sm:$0xff] }
 0x3aa   : > { %3021 = vst.msk [vmem:[#allocation2 + $0xd9] sm:$0xff] %vm204_vm1, %v2989_v52  ;;  %v8758_v13 = vld [vmem:[#allocation2 + $0x80] sm:$0xff] }
 0x3ab   : > { %3022 = vst.msk [vmem:[#allocation2 + $0xe1] sm:$0xff] %vm204_vm1, %v2990_v33  ;;  %v8794_v24 = vld [vmem:[#allocation2 + $0x91] sm:$0xff] }
 0x3ac   : > { %3023 = vst.msk [vmem:[#allocation2 + $0xf1] sm:$0xff] %vm204_vm1, %v2991_v6  ;;  %v8786_v14 = vld [vmem:[#allocation2 + $0x98] sm:$0xff] }
 0x3ad   : > { %3024 = vst.msk [vmem:[#allocation2 + $0xf9] sm:$0xff] %vm204_vm1, %v2992_v10  ;;  %v8822_v27 = vld [vmem:[#allocation2 + $0xa9] sm:$0xff] }
 0x3ae   : > { %3025 = vst.msk [vmem:[#allocation2 + $0x109] sm:$0xff] %vm204_vm1, %v2993_v55  ;;  %v8814_v17 = vld [vmem:[#allocation2 + $0xb0] sm:$0xff] }
 0x3af   : > { %3026 = vst.msk [vmem:[#allocation2 + $0x111] sm:$0xff] %vm204_vm1, %v2994_v34 }
 0x3b0   : > { %3027 = vst.msk [vmem:[#allocation2 + $0x121] sm:$0xff] %vm204_vm1, %v2995_v38  ;;  %v8842_v37 = vld [vmem:[#allocation2 + $0xc8] sm:$0xff] }
 0x3b1   : > { %3028 = vst.msk [vmem:[#allocation2 + $0x129] sm:$0xff] %vm204_vm1, %v2996_v49  ;;  %v8872_v15 = vld [vmem:[#allocation2 + $0xc2] sm:$0xff] }
 0x3b2   : > { %3029 = vst.msk [vmem:[#allocation2 + $0x139] sm:$0xff] %vm204_vm1, %v2997_v30  ;;  %v8870_v16 = vld [vmem:[#allocation2 + $0xe0] sm:$0xff] }
 0x3b3   : > { %3030 = vst.msk [vmem:[#allocation2 + $0x141] sm:$0xff] %vm204_vm1, %v2998_v48 }
 0x3b4   : > { %3031 = vst.msk [vmem:[#allocation2 + $0x151] sm:$0xff] %vm204_vm1, %v2999_v57 }
 0x3b5   : > { %3032 = vst.msk [vmem:[#allocation2 + $0x159] sm:$0xff] %vm204_vm1, %v3000_v31 }
 0x3b6   : > { %3033 = vst.msk [vmem:[#allocation2 + $0x169] sm:$0xff] %vm204_vm1, %v3001_v8 }
 0x3b7   : > { %3034 = vst.msk [vmem:[#allocation2 + $0x171] sm:$0xff] %vm204_vm1, %v8539_v60 }
 0x3b8   : > { %3035 = vst.msk [vmem:[#allocation2 + $0x181] sm:$0xff] %vm204_vm1, %v3003_v22 }
 0x3b9   : > { %3037 = vst.msk [vmem:[#allocation2 + $0x1] sm:$0xff] %vm204_vm1, %v8357_v53 }
 0x3ba   : > { %3038 = vst.msk [vmem:[#allocation2 + $0x9] sm:$0xff] %vm204_vm1, %v8363_v7 }
 0x3bb   : > { %3039 = vst.msk [vmem:[#allocation2 + $0x199] sm:$0xff] %vm204_vm1, %v3001_v8 }
 0x3bc   : > { %3040 = vst.msk [vmem:[#allocation2 + $0x1a1] sm:$0xff] %vm204_vm1, %v8539_v60 }
 0x3bd   : > { %3041 = vst.msk [vmem:[#allocation2 - $0x1] sm:$0x2] %vm242_vm2, %v8357_v53 }
 0x3be   : > { %3042 = vst.msk [vmem:[#allocation2 + $0x17] sm:$0x2] %vm242_vm2, %v2973_v51 }
 0x3bf   : > { %3043 = vst.msk [vmem:[#allocation2 + $0x2f] sm:$0x2] %vm242_vm2, %v8357_v53 }
 0x3c0   : > { %3044 = vst.msk [vmem:[#allocation2 + $0x47] sm:$0x2] %vm242_vm2, %v2977_v25  ;;  %v3110_v36 = vld [vmem:[#allocation2 + $0x1] sm:$0xff]  ;;  %v8617_v25 = vld [vmem:[#allocation2 + $0x19] sm:$0xff] }
 0x3c1   : > { %3045 = vst.msk [vmem:[#allocation2 + $0x5f] sm:$0x2] %vm242_vm2, %v2979_v40  ;;  %6196 = vmatmul.msk.f32.vlgmr.msra.gmra.mxu1 %vm204_vm1, %v3110_v36  ;;  %v3568_v18 = vld [vmem:[#allocation2 + $0x2] sm:$0xff]  ;;  %v8696_v40 = vld [vmem:[#allocation2 + $0x39] sm:$0xff] }
 0x3c2   : > { %3046 = vst.msk [vmem:[#allocation2 + $0x77] sm:$0x2] %vm242_vm2, %v2981_v20  ;;  %6263 = vmatmul.msk.f32.vlgmr.msrb.gmra.mxu3 %vm204_vm1, %v3568_v18  ;;  %v3111_v51 = vld [vmem:[#allocation2 + $0x9] sm:$0xff] }
 0x3c3   : > { %3047 = vst.msk [vmem:[#allocation2 + $0x8f] sm:$0x2] %vm242_vm2, %v2983_v19  ;;  %v3078_v53 = vld [vmem:[#allocation2 + $0x8] sm:$0xff] }
 0x3c4   : > { %3048 = vst.msk [vmem:[#allocation2 + $0xa7] sm:$0x2] %vm242_vm2, %v2985_v1  ;;  %v3077_v28 = vld [vmem:[#allocation2] sm:$0xff]  ;;  %v8732_v19 = vld [vmem:[#allocation2 + $0x4a] sm:$0xff] }
 0x3c5   : > { %3049 = vst.msk [vmem:[#allocation2 + $0xbf] sm:$0x2] %vm242_vm2, %v2987_v26  ;;  %6229 = vmatmul.msk.f32.vlgmr.msrb.gmra.mxu2 %vm204_vm1, %v3077_v28  ;;  %v3846_v32 = vld [vmem:[#allocation2 + $0x18] sm:$0xff]  ;;  %v8752_v1 = vld [vmem:[#allocation2 + $0x69] sm:$0xff] }
 0x3c6   : > { %3050 = vst.msk [vmem:[#allocation2 + $0xd7] sm:$0x2] %vm242_vm2, %v2989_v52  ;;  %6297 = vmatmul.msk.f32.vlgmr.msrb.gmra.mxu0 %vm204_vm1, %v3846_v32  ;;  %v8636_v12 = vld [vmem:[#allocation2 + $0x30] sm:$0xff]  ;;  %v8788_v52 = vld [vmem:[#allocation2 + $0x7a] sm:$0xff] }
 0x3c7   : > { %3051 = vst.msk [vmem:[#allocation2 + $0xef] sm:$0x2] %vm242_vm2, %v2991_v6  ;;  %v8808_v6 = vld [vmem:[#allocation2 + $0x99] sm:$0xff] }
 0x3c8   : > { %3052 = vst.msk [vmem:[#allocation2 + $0x107] sm:$0x2] %vm242_vm2, %v2993_v55  ;;  %v8716_v20 = vld [vmem:[#allocation2 + $0x60] sm:$0xff] }
 0x3c9   : > { %3053 = vst.msk [vmem:[#allocation2 + $0x11f] sm:$0x2] %vm242_vm2, %v2995_v38  ;;  %6197 = vmatmul.msk.f32.gmra.mxu1 %vm204_vm1, %v3111_v51  ;;  %v8844_v38 = vld [vmem:[#allocation2 + $0xaa] sm:$0xff] }
 0x3ca   : > { %3054 = vst.msk [vmem:[#allocation2 + $0x137] sm:$0x2] %vm242_vm2, %v2997_v30  ;;  %v8772_v26 = vld [vmem:[#allocation2 + $0x90] sm:$0xff] }
 0x3cb   : > { %3055 = vst.msk [vmem:[#allocation2 + $0x14f] sm:$0x2] %vm242_vm2, %v2999_v57  ;;  %v8864_v57 = vld [vmem:[#allocation2 + $0xc9] sm:$0xff] }
 0x3cc   : > { %3056 = vst.msk [vmem:[#allocation2 + $0x167] sm:$0x2] %vm242_vm2, %v3001_v8  ;;  %v8828_v55 = vld [vmem:[#allocation2 + $0xc0] sm:$0xff] }
 0x3cd   : > { %3057 = vst.msk [vmem:[#allocation2 + $0x17f] sm:$0x2] %vm242_vm2, %v3003_v22  ;;  %6230 = vmatmul.msk.f32.gmra.mxu2 %vm204_vm1, %v3078_v53  ;;  %v8856_v30 = vld [vmem:[#allocation2 + $0xd8] sm:$0xff] }
 0x3ce   : > { %3058 = vst.msk [vmem:[#allocation2 + $0x197] sm:$0x2] %vm242_vm2, %v3001_v8  ;;  %6298 = vmatmul.msk.f32.gmra.mxu0 %vm204_vm1, %v3847_v42 }
 0x3cf   : > { %3059 = vst.msk [vmem:[#allocation2 + $0xb] sm:$0x40] %vm261_vm3, %v8363_v7 }
 0x3d0   : > { %3060 = vst.msk [vmem:[#allocation2 + $0x23] sm:$0x40] %vm261_vm3, %v2974_v50  ;;  %v8650_v50 = vld [vmem:[#allocation2 + $0x21] sm:$0xff] }
 0x3d1   : > { %3061 = vst.msk [vmem:[#allocation2 + $0x3b] sm:$0x40] %vm261_vm3, %v8363_v7  ;;  %6198 = vmatmul.msk.f32.gmra.mxu1 %vm204_vm1, %v8617_v25  ;;  %v8674_v7 = vld [vmem:[#allocation2 + $0x1a] sm:$0xff] }
 0x3d2   : > { %3062 = vst.msk [vmem:[#allocation2 + $0x53] sm:$0x40] %vm261_vm3, %v2978_v21  ;;  %v8688_v21 = vld [vmem:[#allocation2 + $0x48] sm:$0xff] }
 0x3d3   : > { %3063 = vst.msk [vmem:[#allocation2 + $0x6b] sm:$0x40] %vm261_vm3, %v2980_v45  ;;  %v8704_v45 = vld [vmem:[#allocation2 + $0x32] sm:$0xff] }
 0x3d4   : > { %3064 = vst.msk [vmem:[#allocation2 + $0x83] sm:$0x40] %vm261_vm3, %v2982_v9  ;;  %v8724_v9 = vld [vmem:[#allocation2 + $0x51] sm:$0xff] }
 0x3d5   : > { %3065 = vst.msk [vmem:[#allocation2 + $0x9b] sm:$0x40] %vm261_vm3, %v2984_v4  ;;  %6231 = vmatmul.msk.f32.gmra.mxu2 %vm204_vm1, %v3846_v32  ;;  %v8744_v4 = vld [vmem:[#allocation2 + $0x78] sm:$0xff] }
 0x3d6   : > { %3066 = vst.msk [vmem:[#allocation2 + $0xb3] sm:$0x40] %vm261_vm3, %v2986_v44  ;;  %v3569_v11 = vld [vmem:[#allocation2 + $0xa] sm:$0xff]  ;;  %6299 = vmatmul.msk.f32.gmra.mxu0 %vm204_vm1, %v8636_v12  ;;  %v8760_v44 = vld [vmem:[#allocation2 + $0x62] sm:$0xff]  ;;  %v8880_v32 = vld [vmem:[#allocation2 + $0xd9] sm:$0xff] }
 0x3d7   : > { %3067 = vst.msk [vmem:[#allocation2 + $0xcb] sm:$0x40] %vm261_vm3, %v2988_v41  ;;  %6264 = vmatmul.msk.f32.gmra.mxu3 %vm204_vm1, %v3569_v11  ;;  %v8690_v63 = vld [vmem:[#allocation2 + $0x22] sm:$0xff] }
 0x3d8   : > { %3068 = vst.msk [vmem:[#allocation2 + $0xe3] sm:$0x40] %vm261_vm3, %v2990_v33  ;;  %v8718_v3 = vld [vmem:[#allocation2 + $0x3a] sm:$0xff]  ;;  %v8800_v33 = vld [vmem:[#allocation2 + $0xa8] sm:$0xff] }
 0x3d9   : > { %3069 = vst.msk [vmem:[#allocation2 + $0xfb] sm:$0x40] %vm261_vm3, %v2992_v10  ;;  %6199 = vmatmul.msk.f32.gmra.mxu1 %vm204_vm1, %v8650_v50  ;;  %v8746_v5 = vld [vmem:[#allocation2 + $0x52] sm:$0xff]  ;;  %v8780_v41 = vld [vmem:[#allocation2 + $0x81] sm:$0xff] }
 0x3da   : > { %3070 = vst.msk [vmem:[#allocation2 + $0x113] sm:$0x40] %vm261_vm3, %v2994_v34  ;;  %v8774_v46 = vld [vmem:[#allocation2 + $0x6a] sm:$0xff]  ;;  %v8816_v10 = vld [vmem:[#allocation2 + $0x92] sm:$0xff] }
 0x3db   : > { %3071 = vst.msk [vmem:[#allocation2 + $0x12b] sm:$0x40] %vm261_vm3, %v2996_v49  ;;  %v8802_v43 = vld [vmem:[#allocation2 + $0x82] sm:$0xff]  ;;  %v8836_v34 = vld [vmem:[#allocation2 + $0xb1] sm:$0xff] }
 0x3dc   : > { %3072 = vst.msk [vmem:[#allocation2 + $0x143] sm:$0x40] %vm261_vm3, %v2998_v48  ;;  %v8830_v39 = vld [vmem:[#allocation2 + $0x9a] sm:$0xff] }
 0x3dd   : > { %3073 = vst.msk [vmem:[#allocation2 + $0x15b] sm:$0x40] %vm261_vm3, %v3000_v31  ;;  %6232 = vmatmul.msk.f32.gmra.mxu2 %vm204_vm1, %v3847_v42  ;;  %v8850_v49 = vld [vmem:[#allocation2 + $0xc1] sm:$0xff]  ;;  %v8858_v23 = vld [vmem:[#allocation2 + $0xb2] sm:$0xff] }
 0x3de   : > { %3074 = vst.msk [vmem:[#allocation2 + $0x173] sm:$0x40] %vm261_vm3, %v8539_v60  ;;  %6300 = vmatmul.msk.f32.gmra.mxu0 %vm204_vm1, %v8670_v56  ;;  %v8886_v42 = vld [vmem:[#allocation2 + $0xf0] sm:$0xff] }
 0x3df   : > { %3076 = vst.msk [vmem:[#allocation2 + $0x1a3] sm:$0x40] %vm261_vm3, %v8539_v60  ;;  %6265 = vmatmul.msk.f32.gmra.mxu3 %vm204_vm1, %v8674_v7  ;;  %v8888_v11 = vld [vmem:[#allocation2 + $0xca] sm:$0xff] }
 0x3e0   : > { %10419 = vst [vmem:[#allocation33_spill] sm:$0xff] %v8856_v30 }
 0x3e1   : > { %6200 = vmatmul.msk.f32.gmra.mxu1 %vm204_vm1, %v8682_v61  ;;  %10420 = vst [vmem:[#allocation48_spill] sm:$0xff] %v8870_v16 }
 0x3e2   : > { %10422 = vst [vmem:[#allocation50_spill] sm:$0xff] %v8886_v42 }
 0x3e5   : > { %6233 = vmatmul.msk.f32.gmra.mxu2 %vm204_vm1, %v8636_v12 }
 0x3e6   : > { %6301 = vmatmul.msk.f32.gmra.mxu0 %vm204_vm1, %v8688_v21 }
 0x3e7   : > { %6266 = vmatmul.msk.f32.gmra.mxu3 %vm204_vm1, %v8690_v63 }
 0x3e9   : > { %6201 = vmatmul.msk.f32.gmra.mxu1 %vm204_vm1, %v8696_v40 }
 0x3ed   : > { %6234 = vmatmul.msk.f32.gmra.mxu2 %vm204_vm1, %v8670_v56 }
 0x3ee   : > { %6302 = vmatmul.msk.f32.gmra.mxu0 %vm204_vm1, %v8702_v62 }
 0x3ef   : > { %6267 = vmatmul.msk.f32.gmra.mxu3 %vm204_vm1, %v8704_v45 }
 0x3f1   : > { %6202 = vmatmul.msk.f32.gmra.mxu1 %vm204_vm1, %v8710_v54 }
 0x3f5   : > { %6235 = vmatmul.msk.f32.gmra.mxu2 %vm204_vm1, %v8688_v21 }
 0x3f6   : > { %6303 = vmatmul.msk.f32.gmra.mxu0 %vm204_vm1, %v8716_v20 }
 0x3f7   : > { %6268 = vmatmul.msk.f32.gmra.mxu3 %vm204_vm1, %v8718_v3 }
 0x3f9   : > { %6203 = vmatmul.msk.f32.gmra.mxu1 %vm204_vm1, %v8724_v9 }
 0x3fd   : > { %6236 = vmatmul.msk.f32.gmra.mxu2 %vm204_vm1, %v8702_v62 }
 0x3fe   : > { %6304 = vmatmul.msk.f32.gmra.mxu0 %vm204_vm1, %v8730_v29 }
 0x3ff   : > { %6269 = vmatmul.msk.f32.gmra.mxu3 %vm204_vm1, %v8732_v19 }
 0x401   : > { %6204 = vmatmul.msk.f32.gmra.mxu1 %vm204_vm1, %v8738_v35 }
 0x405   : > { %6237 = vmatmul.msk.f32.gmra.mxu2 %vm204_vm1, %v8716_v20 }
 0x406   : > { %6305 = vmatmul.msk.f32.gmra.mxu0 %vm204_vm1, %v8744_v4 }
 0x407   : > { %6270 = vmatmul.msk.f32.gmra.mxu3 %vm204_vm1, %v8746_v5 }
 0x409   : > { %6205 = vmatmul.msk.f32.gmra.mxu1 %vm204_vm1, %v8752_v1 }
 0x40d   : > { %6238 = vmatmul.msk.f32.gmra.mxu2 %vm204_vm1, %v8730_v29 }
 0x40e   : > { %6306 = vmatmul.msk.f32.gmra.mxu0 %vm204_vm1, %v8758_v13 }
 0x40f   : > { %6271 = vmatmul.msk.f32.gmra.mxu3 %vm204_vm1, %v8760_v44 }
 0x411   : > { %6206 = vmatmul.msk.f32.gmra.mxu1 %vm204_vm1, %v8766_v59 }
 0x415   : > { %6239 = vmatmul.msk.f32.gmra.mxu2 %vm204_vm1, %v8744_v4 }
 0x416   : > { %6307 = vmatmul.msk.f32.gmra.mxu0 %vm204_vm1, %v8772_v26 }
 0x417   : > { %6272 = vmatmul.msk.f32.gmra.mxu3 %vm204_vm1, %v8774_v46 }
 0x419   : > { %6207 = vmatmul.msk.f32.gmra.mxu1 %vm204_vm1, %v8780_v41 }
 0x41d   : > { %6240 = vmatmul.msk.f32.gmra.mxu2 %vm204_vm1, %v8758_v13 }
 0x41e   : > { %6308 = vmatmul.msk.f32.gmra.mxu0 %vm204_vm1, %v8786_v14 }
 0x41f   : > { %6273 = vmatmul.msk.f32.gmra.mxu3 %vm204_vm1, %v8788_v52 }
 0x421   : > { %6208 = vmatmul.msk.f32.gmra.mxu1 %vm204_vm1, %v8794_v24 }
 0x425   : > { %6241 = vmatmul.msk.f32.gmra.mxu2 %vm204_vm1, %v8772_v26 }
 0x426   : > { %6309 = vmatmul.msk.f32.gmra.mxu0 %vm204_vm1, %v8800_v33 }
 0x427   : > { %6274 = vmatmul.msk.f32.gmra.mxu3 %vm204_vm1, %v8802_v43 }
 0x429   : > { %6209 = vmatmul.msk.f32.gmra.mxu1 %vm204_vm1, %v8808_v6 }
 0x42d   : > { %6242 = vmatmul.msk.f32.gmra.mxu2 %vm204_vm1, %v8786_v14 }
 0x42e   : > { %6310 = vmatmul.msk.f32.gmra.mxu0 %vm204_vm1, %v8814_v17 }
 0x42f   : > { %6275 = vmatmul.msk.f32.gmra.mxu3 %vm204_vm1, %v8816_v10 }
 0x431   : > { %6210 = vmatmul.msk.f32.gmra.mxu1 %vm204_vm1, %v8822_v27 }
 0x435   : > { %6243 = vmatmul.msk.f32.gmra.mxu2 %vm204_vm1, %v8800_v33 }
 0x436   : > { %6311 = vmatmul.msk.f32.gmra.mxu0 %vm204_vm1, %v8828_v55 }
 0x437   : > { %6276 = vmatmul.msk.f32.gmra.mxu3 %vm204_vm1, %v8830_v39 }
 0x439   : > { %6211 = vmatmul.msk.f32.gmra.mxu1 %vm204_vm1, %v8836_v34 }
 0x43d   : > { %6244 = vmatmul.msk.f32.gmra.mxu2 %vm204_vm1, %v8814_v17 }
 0x43e   : > { %6312 = vmatmul.msk.f32.gmra.mxu0 %vm204_vm1, %v8842_v37  ;;  %v3260_v2 = vpop.f32.mrf.mxu1 }
 0x43f   : > { %6277 = vmatmul.msk.f32.gmra.mxu3 %vm204_vm1, %v8844_v38 }
 0x441   : > { %6212 = vmatmul.msk.f32.gmra.mxu1 %vm204_vm1, %v8850_v49 }
 0x443   : > { %v3996_v47 = vpop.f32.mrf.mxu0 }
 0x445   : > { %6245 = vmatmul.msk.f32.gmra.mxu2 %vm204_vm1, %v8828_v55  ;;  %v3718_v8 = vpop.f32.mrf.mxu3 }
 0x446   : > { %6313 = vmatmul.msk.f32.gmra.mxu0 %vm204_vm1, %v8856_v30  ;;  %v3263_v48 = vpop.f32.mrf.mxu1 }
 0x447   : > { %6278 = vmatmul.msk.f32.gmra.mxu3 %vm204_vm1, %v8858_v23 }
 0x448   : > { %v3472_v0 = vpop.f32.mrf.mxu2 }
 0x449   : > { %v3473_v31 = vadd.f32 %v3472_v0, %v3260_v2  ;;  %6213 = vmatmul.msk.f32.gmra.mxu1 %vm204_vm1, %v8864_v57 }
 0x44b   : > { %v3814_v60 = vadd.f32 %v3718_v8, %v3473_v31  ;;  %v3999_v22 = vpop.f32.mrf.mxu0 }
 0x44d   : > { %6246 = vmatmul.msk.f32.gmra.mxu2 %vm204_vm1, %v8842_v37  ;;  %v8878_v18 = vadd.f32 %v3996_v47, %v3814_v60 }
 0x44e   : > { %6314 = vmatmul.msk.f32.gmra.mxu0 %vm204_vm1, %v8870_v16  ;;  %v3266_v36 = vpop.f32.mrf.mxu1 }
 0x44f   : > { %6279 = vmatmul.msk.f32.gmra.mxu3 %vm204_vm1, %v8872_v15  ;;  %10421 = vst [vmem:[#allocation46_spill] sm:$0xff] %v8878_v18  ;;  %v8904_v18 = vld [vmem:[#allocation2 + $0xda] sm:$0xff] }
 0x450   : > { %v3475_v28 = vpop.f32.mrf.mxu2  ;;  %10426 = vst [vmem:[#allocation51_spill] sm:$0xff] %v8904_v18 }
 0x451   : > { %v3476_v51 = vadd.f32 %v3475_v28, %v3263_v48  ;;  %6214 = vmatmul.msk.f32.gmra.mxu1 %vm204_vm1, %v8880_v32  ;;  %v8894_v48 = vld [vmem:[#allocation2 + $0xe1] sm:$0xff]  ;;  %v8900_v28 = vld [vmem:[#allocation2 + $0xf8] sm:$0xff] }
 0x452   : > { %10423 = vst [vmem:[#allocation61_spill] sm:$0xff] %v8894_v48 }
 0x453   : > { %v4002_v53 = vpop.f32.mrf.mxu0  ;;  %10424 = vst [vmem:[#allocation34_spill] sm:$0xff] %v8900_v28 }
 0x455   : > { %6247 = vmatmul.msk.f32.gmra.mxu2 %vm204_vm1, %v8856_v30 }
 0x456   : > { %6315 = vmatmul.msk.f32.gmra.mxu0 %vm204_vm1, %v8886_v42  ;;  %v3269_v2 = vpop.f32.mrf.mxu1 }
 0x457   : > { %6280 = vmatmul.msk.f32.gmra.mxu3 %vm204_vm1, %v8888_v11 }
 0x458   : > { %v3478_v47 = vpop.f32.mrf.mxu2 }
 0x459   : > { %v3479_v0 = vadd.f32 %v3478_v47, %v3266_v36  ;;  %6215 = vmatmul.msk.f32.gmra.mxu1 %vm204_vm1, %v8894_v48  ;;  %v8910_v47 = vld [vmem:[#allocation2 + $0xf1] sm:$0xff]  ;;  %v8920_v48 = vld [vmem:[#allocation2 + $0xe2] sm:$0xff] }
 0x45a   : > { %v3721_v31 = vpop.f32.mrf.mxu3  ;;  %10427 = vst [vmem:[#allocation54_spill] sm:$0xff] %v8910_v47 }
 0x45b   : > { %v3815_v8 = vadd.f32 %v3721_v31, %v3476_v51  ;;  %v4005_v60 = vpop.f32.mrf.mxu0  ;;  %10430 = vst [vmem:[#allocation53_spill] sm:$0xff] %v8920_v48 }
 0x45d   : > { %6248 = vmatmul.msk.f32.gmra.mxu2 %vm204_vm1, %v8870_v16  ;;  %v8902_v58 = vadd.f32 %v3999_v22, %v3815_v8  ;;  %v8916_v8 = vld [vmem:[#allocation2 + $0x108] sm:$0xff] }
 0x45e   : > { %6316 = vmatmul.msk.f32.gmra.mxu0 %vm204_vm1, %v8900_v28  ;;  %v3272_v30 = vpop.f32.mrf.mxu1  ;;  %10428 = vst [vmem:[#allocation36_spill] sm:$0xff] %v8916_v8 }
 0x45f   : > { %10425 = vst [vmem:[#allocation52_spill] sm:$0xff] %v8902_v58  ;;  %6281 = vmatmul.msk.f32.gmra.mxu3 %vm204_vm1, %v8904_v18 }
 0x460   : > { %v3481_v36 = vpop.f32.mrf.mxu2 }
 0x461   : > { %v3482_v51 = vadd.f32 %v3481_v36, %v3269_v2  ;;  %6216 = vmatmul.msk.f32.gmra.mxu1 %vm204_vm1, %v8910_v47  ;;  %v8926_v36 = vld [vmem:[#allocation2 + $0xf9] sm:$0xff] }
 0x462   : > { %v3724_v31 = vpop.f32.mrf.mxu3  ;;  %10431 = vst [vmem:[#allocation58_spill] sm:$0xff] %v8926_v36  ;;  %v8936_v47 = vld [vmem:[#allocation2 + $0xf2] sm:$0xff] }
 0x463   : > { %v3816_v16 = vadd.f32 %v3724_v31, %v3479_v0  ;;  %v4008_v22 = vpop.f32.mrf.mxu0  ;;  %10434 = vst [vmem:[#allocation60_spill] sm:$0xff] %v8936_v47 }
 0x465   : > { %6249 = vmatmul.msk.f32.gmra.mxu2 %vm204_vm1, %v8886_v42  ;;  %v8918_v58 = vadd.f32 %v4002_v53, %v3816_v16  ;;  %v8932_v53 = vld [vmem:[#allocation2 + $0x110] sm:$0xff] }
 0x466   : > { %6317 = vmatmul.msk.f32.gmra.mxu0 %vm204_vm1, %v8916_v8  ;;  %v3275_v18 = vpop.f32.mrf.mxu1  ;;  %10432 = vst [vmem:[#allocation35_spill] sm:$0xff] %v8932_v53 }
 0x467   : > { %10429 = vst [vmem:[#allocation56_spill] sm:$0xff] %v8918_v58  ;;  %6282 = vmatmul.msk.f32.gmra.mxu3 %vm204_vm1, %v8920_v48 }
 0x468   : > { %v3484_v2 = vpop.f32.mrf.mxu2 }
 0x469   : > { %v3485_v0 = vadd.f32 %v3484_v2, %v3272_v30  ;;  %6217 = vmatmul.msk.f32.gmra.mxu1 %vm204_vm1, %v8926_v36  ;;  %v8942_v2 = vld [vmem:[#allocation2 + $0x109] sm:$0xff]  ;;  %v8952_v36 = vld [vmem:[#allocation2 + $0xfa] sm:$0xff] }
 0x46a   : > { %v3727_v31 = vpop.f32.mrf.mxu3  ;;  %10435 = vst [vmem:[#allocation67_spill] sm:$0xff] %v8942_v2 }
 0x46b   : > { %v3817_v42 = vadd.f32 %v3727_v31, %v3482_v51  ;;  %v4011_v16 = vpop.f32.mrf.mxu0  ;;  %10438 = vst [vmem:[#allocation59_spill] sm:$0xff] %v8952_v36 }
 0x46d   : > { %6250 = vmatmul.msk.f32.gmra.mxu2 %vm204_vm1, %v8900_v28  ;;  %v8934_v58 = vadd.f32 %v4005_v60, %v3817_v42  ;;  %v8948_v60 = vld [vmem:[#allocation2 + $0x120] sm:$0xff] }
 0x46e   : > { %6318 = vmatmul.msk.f32.gmra.mxu0 %vm204_vm1, %v8932_v53  ;;  %v3278_v48 = vpop.f32.mrf.mxu1  ;;  %10436 = vst [vmem:[#allocation38_spill] sm:$0xff] %v8948_v60 }
 0x46f   : > { %10433 = vst [vmem:[#allocation55_spill] sm:$0xff] %v8934_v58  ;;  %6283 = vmatmul.msk.f32.gmra.mxu3 %vm204_vm1, %v8936_v47 }
 0x470   : > { %v3487_v30 = vpop.f32.mrf.mxu2 }
 0x471   : > { %v3488_v51 = vadd.f32 %v3487_v30, %v3275_v18  ;;  %6218 = vmatmul.msk.f32.gmra.mxu1 %vm204_vm1, %v8942_v2  ;;  %v8958_v30 = vld [vmem:[#allocation2 + $0x111] sm:$0xff] }
 0x472   : > { %v3730_v31 = vpop.f32.mrf.mxu3  ;;  %10439 = vst [vmem:[#allocation62_spill] sm:$0xff] %v8958_v30  ;;  %v8968_v2 = vld [vmem:[#allocation2 + $0x10a] sm:$0xff] }
 0x473   : > { %v3818_v28 = vadd.f32 %v3730_v31, %v3485_v0  ;;  %v4014_v42 = vpop.f32.mrf.mxu0  ;;  %10442 = vst [vmem:[#allocation70_spill] sm:$0xff] %v8968_v2 }
 0x475   : > { %6251 = vmatmul.msk.f32.gmra.mxu2 %vm204_vm1, %v8916_v8  ;;  %v8950_v58 = vadd.f32 %v4008_v22, %v3818_v28  ;;  %v8964_v22 = vld [vmem:[#allocation2 + $0x128] sm:$0xff] }
 0x476   : > { %6319 = vmatmul.msk.f32.gmra.mxu0 %vm204_vm1, %v8948_v60  ;;  %v3281_v47 = vpop.f32.mrf.mxu1  ;;  %10440 = vst [vmem:[#allocation37_spill] sm:$0xff] %v8964_v22 }
 0x477   : > { %10437 = vst [vmem:[#allocation64_spill] sm:$0xff] %v8950_v58  ;;  %6284 = vmatmul.msk.f32.gmra.mxu3 %vm204_vm1, %v8952_v36 }
 0x478   : > { %v3490_v18 = vpop.f32.mrf.mxu2 }
 0x479   : > { %v3491_v0 = vadd.f32 %v3490_v18, %v3278_v48  ;;  %6219 = vmatmul.msk.f32.gmra.mxu1 %vm204_vm1, %v8958_v30  ;;  %v8974_v18 = vld [vmem:[#allocation2 + $0x121] sm:$0xff]  ;;  %v8984_v30 = vld [vmem:[#allocation2 + $0x112] sm:$0xff] }
 0x47a   : > { %v3733_v31 = vpop.f32.mrf.mxu3  ;;  %10443 = vst [vmem:[#allocation41_spill] sm:$0xff] %v8974_v18 }
 0x47b   : > { %v3819_v8 = vadd.f32 %v3733_v31, %v3488_v51  ;;  %v4017_v28 = vpop.f32.mrf.mxu0  ;;  %10446 = vst [vmem:[#allocation39_spill] sm:$0xff] %v8984_v30 }
 0x47d   : > { %6252 = vmatmul.msk.f32.gmra.mxu2 %vm204_vm1, %v8932_v53  ;;  %v8966_v58 = vadd.f32 %v4011_v16, %v3819_v8  ;;  %v8980_v16 = vld [vmem:[#allocation2 + $0x138] sm:$0xff] }
 0x47e   : > { %6320 = vmatmul.msk.f32.gmra.mxu0 %vm204_vm1, %v8964_v22  ;;  %v3284_v36 = vpop.f32.mrf.mxu1  ;;  %10444 = vst [vmem:[#allocation65_spill] sm:$0xff] %v8980_v16 }
 0x47f   : > { %10441 = vst [vmem:[#allocation63_spill] sm:$0xff] %v8966_v58  ;;  %6285 = vmatmul.msk.f32.gmra.mxu3 %vm204_vm1, %v8968_v2 }
 0x480   : > { %v3493_v48 = vpop.f32.mrf.mxu2 }
 0x481   : > { %v3494_v51 = vadd.f32 %v3493_v48, %v3281_v47  ;;  %6220 = vmatmul.msk.f32.gmra.mxu1 %vm204_vm1, %v8974_v18  ;;  %v8990_v48 = vld [vmem:[#allocation2 + $0x129] sm:$0xff] }
 0x482   : > { %v3736_v31 = vpop.f32.mrf.mxu3  ;;  %10447 = vst [vmem:[#allocation43_spill] sm:$0xff] %v8990_v48  ;;  %v9000_v18 = vld [vmem:[#allocation2 + $0x122] sm:$0xff] }
 0x483   : > { %v3820_v53 = vadd.f32 %v3736_v31, %v3491_v0  ;;  %v4020_v8 = vpop.f32.mrf.mxu0  ;;  %10450 = vst [vmem:[#allocation42_spill] sm:$0xff] %v9000_v18 }
 0x485   : > { %6253 = vmatmul.msk.f32.gmra.mxu2 %vm204_vm1, %v8948_v60  ;;  %v8982_v58 = vadd.f32 %v4014_v42, %v3820_v53  ;;  %v8996_v42 = vld [vmem:[#allocation2 + $0x140] sm:$0xff] }
 0x486   : > { %6321 = vmatmul.msk.f32.gmra.mxu0 %vm204_vm1, %v8980_v16  ;;  %v3287_v2 = vpop.f32.mrf.mxu1  ;;  %10448 = vst [vmem:[#allocation40_spill] sm:$0xff] %v8996_v42 }
 0x487   : > { %10445 = vst [vmem:[#allocation66_spill] sm:$0xff] %v8982_v58  ;;  %6286 = vmatmul.msk.f32.gmra.mxu3 %vm204_vm1, %v8984_v30 }
 0x488   : > { %v3496_v47 = vpop.f32.mrf.mxu2 }
 0x489   : > { %v3497_v0 = vadd.f32 %v3496_v47, %v3284_v36  ;;  %6221 = vmatmul.msk.f32.gmra.mxu1 %vm204_vm1, %v8990_v48  ;;  %v9006_v47 = vld [vmem:[#allocation2 + $0x139] sm:$0xff]  ;;  %v9016_v48 = vld [vmem:[#allocation2 + $0x12a] sm:$0xff] }
 0x48a   : > { %v3739_v31 = vpop.f32.mrf.mxu3  ;;  %10451 = vst [vmem:[#allocation47_spill] sm:$0xff] %v9006_v47 }
 0x48b   : > { %v3821_v60 = vadd.f32 %v3739_v31, %v3494_v51  ;;  %v4023_v53 = vpop.f32.mrf.mxu0  ;;  %10454 = vst [vmem:[#allocation71_spill] sm:$0xff] %v9016_v48 }
 0x48d   : > { %6254 = vmatmul.msk.f32.gmra.mxu2 %vm204_vm1, %v8964_v22  ;;  %v8998_v58 = vadd.f32 %v4017_v28, %v3821_v60  ;;  %v9012_v28 = vld [vmem:[#allocation2 + $0x150] sm:$0xff] }
 0x48e   : > { %6322 = vmatmul.msk.f32.gmra.mxu0 %vm204_vm1, %v8996_v42  ;;  %v3290_v30 = vpop.f32.mrf.mxu1  ;;  %10452 = vst [vmem:[#allocation44_spill] sm:$0xff] %v9012_v28 }
 0x48f   : > { %10449 = vst [vmem:[#allocation45_spill] sm:$0xff] %v8998_v58  ;;  %6287 = vmatmul.msk.f32.gmra.mxu3 %vm204_vm1, %v9000_v18 }
 0x490   : > { %v3499_v36 = vpop.f32.mrf.mxu2 }
 0x491   : > { %v3500_v51 = vadd.f32 %v3499_v36, %v3287_v2  ;;  %6222 = vmatmul.msk.f32.gmra.mxu1 %vm204_vm1, %v9006_v47  ;;  %v9022_v36 = vld [vmem:[#allocation2 + $0x141] sm:$0xff] }
 0x492   : > { %v3742_v31 = vpop.f32.mrf.mxu3  ;;  %10455 = vst [vmem:[#allocation72_spill] sm:$0xff] %v9022_v36  ;;  %v9032_v47 = vld [vmem:[#allocation2 + $0x13a] sm:$0xff] }
 0x493   : > { %v3822_v22 = vadd.f32 %v3742_v31, %v3497_v0  ;;  %v4026_v60 = vpop.f32.mrf.mxu0  ;;  %10458 = vst [vmem:[#allocation75_spill] sm:$0xff] %v9032_v47 }
 0x495   : > { %6255 = vmatmul.msk.f32.gmra.mxu2 %vm204_vm1, %v8980_v16  ;;  %v9014_v58 = vadd.f32 %v4020_v8, %v3822_v22  ;;  %v9028_v8 = vld [vmem:[#allocation2 + $0x158] sm:$0xff] }
 0x496   : > { %6323 = vmatmul.msk.f32.gmra.mxu0 %vm204_vm1, %v9012_v28  ;;  %v3293_v18 = vpop.f32.mrf.mxu1  ;;  %10456 = vst [vmem:[#allocation73_spill] sm:$0xff] %v9028_v8 }
 0x497   : > { %10453 = vst [vmem:[#allocation49_spill] sm:$0xff] %v9014_v58  ;;  %6288 = vmatmul.msk.f32.gmra.mxu3 %vm204_vm1, %v9016_v48 }
 0x498   : > { %v3502_v2 = vpop.f32.mrf.mxu2 }
 0x499   : > { %v3503_v0 = vadd.f32 %v3502_v2, %v3290_v30  ;;  %6223 = vmatmul.msk.f32.gmra.mxu1 %vm204_vm1, %v9022_v36  ;;  %v9038_v2 = vld [vmem:[#allocation2 + $0x151] sm:$0xff]  ;;  %v9096_v36 = vld [vmem:[#allocation2 + $0x15a] sm:$0xff] }
 0x49a   : > { %v3745_v31 = vpop.f32.mrf.mxu3  ;;  %10459 = vst [vmem:[#allocation76_spill] sm:$0xff] %v9038_v2 }
 0x49b   : > { %v3823_v16 = vadd.f32 %v3745_v31, %v3500_v51  ;;  %v4029_v22 = vpop.f32.mrf.mxu0  ;;  %10469 = vst [vmem:[#allocation86_spill] sm:$0xff] %v9096_v36 }
 0x49d   : > { %6256 = vmatmul.msk.f32.gmra.mxu2 %vm204_vm1, %v8996_v42  ;;  %v9030_v58 = vadd.f32 %v4023_v53, %v3823_v16  ;;  %v6363_v53 = vld [vmem:[%s10126_s2 + $0x14] sm:$0xf] }
 0x49e   : > { %6324 = vmatmul.msk.f32.gmra.mxu0 %vm204_vm1, %v9028_v8  ;;  %v3296_v48 = vpop.f32.mrf.mxu1  ;;  %6364 = vmatpush.msk.msra.mxu2 %vm443_vm0, %v6363_v53  ;;  %v9062_v53 = vld [vmem:[#allocation2 + $0x159] sm:$0xff] }
 0x49f   : > { %10457 = vst [vmem:[#allocation74_spill] sm:$0xff] %v9030_v58  ;;  %6289 = vmatmul.msk.f32.gmra.mxu3 %vm204_vm1, %v9032_v47  ;;  %v6397_v58 = vld [vmem:[%s10126_s2 + $0x18] sm:$0xf] }
 0x4a0   : > { %v3505_v30 = vpop.f32.mrf.mxu2  ;;  %6398 = vmatpush.msk.msra.mxu3 %vm443_vm0, %v6397_v58  ;;  %10463 = vst [vmem:[#allocation80_spill] sm:$0xff] %v9062_v53 }
 0x4a1   : > { %v3506_v51 = vadd.f32 %v3505_v30, %v3293_v18  ;;  %6224 = vmatmul.msk.f32.gmra.mxu1 %vm204_vm1, %v9038_v2  ;;  %v9052_v18 = vld [vmem:[#allocation2 + $0x168] sm:$0xff] }
 0x4a2   : > { %v3748_v31 = vpop.f32.mrf.mxu3  ;;  %10460 = vst [vmem:[#allocation77_spill] sm:$0xff] %v9052_v18 }
 0x4a3   : > { %v3824_v42 = vadd.f32 %v3748_v31, %v3503_v0  ;;  %v4032_v16 = vpop.f32.mrf.mxu0  ;;  %v9056_v0 = vld [vmem:[#allocation2 + $0x142] sm:$0xff] }
 0x4a4   : > { %10462 = vst [vmem:[#allocation79_spill] sm:$0xff] %v9056_v0 }
 0x4a5   : > { %6257 = vmatmul.msk.f32.gmra.mxu2 %vm204_vm1, %v9012_v28  ;;  %v9054_v30 = vadd.f32 %v4026_v60, %v3824_v42  ;;  %v6431_v60 = vld [vmem:[%s10126_s2 + $0x1c] sm:$0xf] }
 0x4a6   : > { %6325 = vmatmul.msk.f32.gmra.mxu0 %vm204_vm1, %v9052_v18  ;;  %v3299_v31 = vpop.f32.mrf.mxu1 }
 0x4a7   : > { %10461 = vst [vmem:[#allocation78_spill] sm:$0xff] %v9054_v30  ;;  %6290 = vmatmul.msk.f32.gmra.mxu3 %vm204_vm1, %v9056_v0  ;;  %6432 = vmatpush.msk.msra.mxu0 %vm443_vm0, %v6431_v60  ;;  %v9072_v30 = vld [vmem:[#allocation2 + $0x170] sm:$0xff] }
 0x4a8   : > { %v3508_v2 = vpop.f32.mrf.mxu2  ;;  %10464 = vst [vmem:[#allocation81_spill] sm:$0xff] %v9072_v30  ;;  %v9085_v60 = vld [vmem:[#allocation2 + $0x169] sm:$0xff] }
 0x4a9   : > { %v3509_v58 = vadd.f32 %v3508_v2, %v3296_v48  ;;  %6225 = vmatmul.msk.f32.gmra.mxu1 %vm204_vm1, %v9062_v53  ;;  %v9076_v48 = vld [vmem:[#allocation2 + $0x152] sm:$0xff]  ;;  %v6465_v2 = vld [vmem:[%s10126_s2 + $0x20] sm:$0xf] }
 0x4aa   : > { %v3751_v28 = vpop.f32.mrf.mxu3  ;;  %10466 = vst [vmem:[#allocation83_spill] sm:$0xff] %v9076_v48  ;;  %6466 = vmatpush.msk.msra.mxu1 %vm443_vm0, %v6465_v2 }
 0x4ab   : > { %v3825_v47 = vadd.f32 %v3751_v28, %v3506_v51  ;;  %v4035_v42 = vpop.f32.mrf.mxu0 }
 0x4ad   : > { %6258 = vmatmul.msk.f32.gmra.mxu2 %vm204_vm1, %v9028_v8  ;;  %v9074_v0 = vadd.f32 %v4029_v22, %v3825_v47 }
 0x4ae   : > { %6326 = vmatmul.msk.f32.gmra.mxu0 %vm204_vm1, %v9072_v30  ;;  %v3302_v28 = vpop.f32.mrf.mxu1 }
 0x4af   : > { %10465 = vst [vmem:[#allocation82_spill] sm:$0xff] %v9074_v0  ;;  %6291 = vmatmul.msk.f32.gmra.mxu3 %vm204_vm1, %v9076_v48  ;;  %v9092_v48 = vld [vmem:[#allocation2 + $0x180] sm:$0xff] }
 0x4b0   : > { %v3511_v51 = vpop.f32.mrf.mxu2  ;;  %10467 = vst [vmem:[#allocation84_spill] sm:$0xff] %v9092_v48 }
 0x4b1   : > { %v3512_v47 = vadd.f32 %v3511_v51, %v3299_v31  ;;  %6226 = vmatmul.msk.f32.gmra.mxu1 %vm204_vm1, %v9085_v60  ;;  %v9102_v51 = vld [vmem:[#allocation2 + $0x171] sm:$0xff] }
 0x4b2   : > { %v3754_v22 = vpop.f32.mrf.mxu3 }
 0x4b3   : > { %v3826_v0 = vadd.f32 %v3754_v22, %v3509_v58  ;;  %v4038_v8 = vpop.f32.mrf.mxu0 }
 0x4b5   : > { %6259 = vmatmul.msk.f32.gmra.mxu2 %vm204_vm1, %v9052_v18  ;;  %v9094_v53 = vadd.f32 %v4032_v16, %v3826_v0  ;;  %v9108_v0 = vld [vmem:[#allocation2 + $0x188] sm:$0xff] }
 0x4b6   : > { %6327 = vmatmul.msk.f32.gmra.mxu0 %vm204_vm1, %v9092_v48  ;;  %v3305_v2 = vpop.f32.mrf.mxu1  ;;  %10470 = vst [vmem:[#allocation87_spill] sm:$0xff] %v9108_v0 }
 0x4b7   : > { %10468 = vst [vmem:[#allocation85_spill] sm:$0xff] %v9094_v53  ;;  %6292 = vmatmul.msk.f32.gmra.mxu3 %vm204_vm1, %v9096_v36  ;;  %v9112_v53 = vld [vmem:[#allocation2 + $0x16a] sm:$0xff] }
 0x4b8   : > { %v3514_v31 = vpop.f32.mrf.mxu2 }
 0x4b9   : > { %v3515_v58 = vadd.f32 %v3514_v31, %v3302_v28  ;;  %6227 = vmatmul.msk.f32.gmra.mxu1 %vm204_vm1, %v9102_v51 }
 0x4ba   : > { %v3757_v22 = vpop.f32.mrf.mxu3 }
 0x4bb   : > { %v3827_v18 = vadd.f32 %v3757_v22, %v3512_v47  ;;  %v4041_v16 = vpop.f32.mrf.mxu0 }
 0x4bd   : > { %6260 = vmatmul.msk.f32.gmra.mxu2 %vm204_vm1, %v9072_v30  ;;  %v9110_v48 = vadd.f32 %v4035_v42, %v3827_v18  ;;  %v9124_v42 = vld [vmem:[#allocation2 + $0x172] sm:$0xff] }
 0x4be   : > { %6328 = vmatmul.msk.f32.gmra.mxu0 %vm204_vm1, %v9108_v0  ;;  %v3308_v36 = vpop.f32.mrf.mxu1 }
 0x4bf   : > { %6293 = vmatmul.msk.f32.gmra.mxu3 %vm204_vm1, %v9112_v53 }
 0x4c0   : > { %v3517_v28 = vpop.f32.mrf.mxu2 }
 0x4c1   : > { %v3518_v31 = vadd.f32 %v3517_v28, %v3305_v2  ;;  %6331 = vmatmul.msk.f32.vlgmr.msrb.gmra.mxu1 %vm204_vm1, %v8617_v25 }
 0x4c2   : > { %v3760_v47 = vpop.f32.mrf.mxu3 }
 0x4c3   : > { %v3828_v22 = vadd.f32 %v3760_v47, %v3515_v58  ;;  %v4044_v30 = vpop.f32.mrf.mxu0 }
 0x4c5   : > { %6365 = vmatmul.msk.f32.vlgmr.msra.gmra.mxu2 %vm204_vm1, %v8674_v7  ;;  %v9122_v18 = vadd.f32 %v4038_v8, %v3828_v22 }
 0x4c6   : > { %6433 = vmatmul.msk.f32.vlgmr.msra.gmra.mxu0 %vm204_vm1, %v8682_v61  ;;  %v3311_v0 = vpop.f32.mrf.mxu1 }
 0x4c7   : > { %6294 = vmatmul.msk.f32.gmra.mxu3 %vm204_vm1, %v9124_v42 }
 0x4c8   : > { %v3520_v2 = vpop.f32.mrf.mxu2 }
 0x4c9   : > { %v3521_v28 = vadd.f32 %v3520_v2, %v3308_v36  ;;  %6332 = vmatmul.msk.f32.gmra.mxu1 %vm204_vm1, %v8650_v50 }
 0x4ca   : > { %v3763_v25 = vpop.f32.mrf.mxu3 }
 0x4cb   : > { %v3829_v58 = vadd.f32 %v3763_v25, %v3518_v31  ;;  %v4047_v47 = vpop.f32.mrf.mxu0 }
 0x4cd   : > { %6366 = vmatmul.msk.f32.gmra.mxu2 %vm204_vm1, %v8690_v63  ;;  %v9134_v7 = vadd.f32 %v4041_v16, %v3829_v58 }
 0x4ce   : > { %6434 = vmatmul.msk.f32.gmra.mxu0 %vm204_vm1, %v8696_v40  ;;  %v3314_v8 = vpop.f32.mrf.mxu1 }
 0x4cf   : > { %6399 = vmatmul.msk.f32.vlgmr.msra.gmra.mxu3 %vm204_vm1, %v8636_v12 }
 0x4d0   : > { %v3523_v22 = vpop.f32.mrf.mxu2 }
 0x4d1   : > { %v3524_v36 = vadd.f32 %v3523_v22, %v3311_v0  ;;  %6333 = vmatmul.msk.f32.gmra.mxu1 %vm204_vm1, %v8682_v61 }
 0x4d2   : > { %v3766_v50 = vpop.f32.mrf.mxu3 }
 0x4d3   : > { %v3830_v31 = vadd.f32 %v3766_v50, %v3521_v28  ;;  %v4050_v2 = vpop.f32.mrf.mxu0 }
 0x4d5   : > { %6367 = vmatmul.msk.f32.gmra.mxu2 %vm204_vm1, %v8704_v45  ;;  %v9144_v63 = vadd.f32 %v4044_v30, %v3830_v31 }
 0x4d6   : > { %6435 = vmatmul.msk.f32.gmra.mxu0 %vm204_vm1, %v8710_v54  ;;  %v3317_v16 = vpop.f32.mrf.mxu1 }
 0x4d7   : > { %6400 = vmatmul.msk.f32.gmra.mxu3 %vm204_vm1, %v8670_v56 }
 0x4d8   : > { %v3526_v12 = vpop.f32.mrf.mxu2 }
 0x4d9   : > { %v3527_v0 = vadd.f32 %v3526_v12, %v3314_v8  ;;  %6334 = vmatmul.msk.f32.gmra.mxu1 %vm204_vm1, %v8696_v40 }
 0x4da   : > { %v3769_v61 = vpop.f32.mrf.mxu3 }
 0x4db   : > { %v3831_v28 = vadd.f32 %v3769_v61, %v3524_v36  ;;  %v4053_v25 = vpop.f32.mrf.mxu0 }
 0x4dd   : > { %6368 = vmatmul.msk.f32.gmra.mxu2 %vm204_vm1, %v8718_v3  ;;  %v9154_v45 = vadd.f32 %v4047_v47, %v3831_v28 }
 0x4de   : > { %6436 = vmatmul.msk.f32.gmra.mxu0 %vm204_vm1, %v8724_v9  ;;  %v3320_v30 = vpop.f32.mrf.mxu1 }
 0x4df   : > { %6401 = vmatmul.msk.f32.gmra.mxu3 %vm204_vm1, %v8688_v21 }
 0x4e0   : > { %v3529_v56 = vpop.f32.mrf.mxu2 }
 0x4e1   : > { %v3530_v58 = vadd.f32 %v3529_v56, %v3317_v16  ;;  %6335 = vmatmul.msk.f32.gmra.mxu1 %vm204_vm1, %v8710_v54 }
 0x4e2   : > { %v3772_v40 = vpop.f32.mrf.mxu3 }
 0x4e3   : > { %v3832_v8 = vadd.f32 %v3772_v40, %v3527_v0  ;;  %v4056_v22 = vpop.f32.mrf.mxu0 }
 0x4e5   : > { %6369 = vmatmul.msk.f32.gmra.mxu2 %vm204_vm1, %v8732_v19  ;;  %v9164_v3 = vadd.f32 %v4050_v2, %v3832_v8 }
 0x4e6   : > { %6437 = vmatmul.msk.f32.gmra.mxu0 %vm204_vm1, %v8738_v35  ;;  %v3323_v47 = vpop.f32.mrf.mxu1 }
 0x4e7   : > { %6402 = vmatmul.msk.f32.gmra.mxu3 %vm204_vm1, %v8702_v62 }
 0x4e8   : > { %v3532_v21 = vpop.f32.mrf.mxu2 }
 0x4e9   : > { %v3533_v36 = vadd.f32 %v3532_v21, %v3320_v30  ;;  %6336 = vmatmul.msk.f32.gmra.mxu1 %vm204_vm1, %v8724_v9 }
 0x4ea   : > { %v3775_v54 = vpop.f32.mrf.mxu3 }
 0x4eb   : > { %v3833_v50 = vadd.f32 %v3775_v54, %v3530_v58  ;;  %v4059_v31 = vpop.f32.mrf.mxu0 }
 0x4ed   : > { %6370 = vmatmul.msk.f32.gmra.mxu2 %vm204_vm1, %v8746_v5  ;;  %v9174_v19 = vadd.f32 %v4053_v25, %v3833_v50 }
 0x4ee   : > { %6438 = vmatmul.msk.f32.gmra.mxu0 %vm204_vm1, %v8752_v1  ;;  %v3326_v2 = vpop.f32.mrf.mxu1 }
 0x4ef   : > { %6403 = vmatmul.msk.f32.gmra.mxu3 %vm204_vm1, %v8716_v20 }
 0x4f0   : > { %v3535_v62 = vpop.f32.mrf.mxu2 }
 0x4f1   : > { %v3536_v16 = vadd.f32 %v3535_v62, %v3323_v47  ;;  %6337 = vmatmul.msk.f32.gmra.mxu1 %vm204_vm1, %v8738_v35 }
 0x4f2   : > { %v3778_v9 = vpop.f32.mrf.mxu3 }
 0x4f3   : > { %v3834_v12 = vadd.f32 %v3778_v9, %v3533_v36  ;;  %v4062_v0 = vpop.f32.mrf.mxu0 }
 0x4f5   : > { %6371 = vmatmul.msk.f32.gmra.mxu2 %vm204_vm1, %v8760_v44  ;;  %v9184_v5 = vadd.f32 %v4056_v22, %v3834_v12 }
 0x4f6   : > { %6439 = vmatmul.msk.f32.gmra.mxu0 %vm204_vm1, %v8766_v59  ;;  %v3329_v61 = vpop.f32.mrf.mxu1 }
 0x4f7   : > { %6404 = vmatmul.msk.f32.gmra.mxu3 %vm204_vm1, %v8730_v29 }
 0x4f8   : > { %v3538_v20 = vpop.f32.mrf.mxu2 }
 0x4f9   : > { %v3539_v28 = vadd.f32 %v3538_v20, %v3326_v2  ;;  %6338 = vmatmul.msk.f32.gmra.mxu1 %vm204_vm1, %v8752_v1 }
 0x4fa   : > { %v3781_v35 = vpop.f32.mrf.mxu3 }
 0x4fb   : > { %v3835_v25 = vadd.f32 %v3781_v35, %v3536_v16  ;;  %v4065_v30 = vpop.f32.mrf.mxu0 }
 0x4fd   : > { %6372 = vmatmul.msk.f32.gmra.mxu2 %vm204_vm1, %v8774_v46  ;;  %v9194_v44 = vadd.f32 %v4059_v31, %v3835_v25 }
 0x4fe   : > { %6440 = vmatmul.msk.f32.gmra.mxu0 %vm204_vm1, %v8780_v41  ;;  %v3332_v56 = vpop.f32.mrf.mxu1 }
 0x4ff   : > { %6405 = vmatmul.msk.f32.gmra.mxu3 %vm204_vm1, %v8744_v4 }
 0x500   : > { %v3541_v29 = vpop.f32.mrf.mxu2 }
 0x501   : > { %v3542_v58 = vadd.f32 %v3541_v29, %v3329_v61  ;;  %6339 = vmatmul.msk.f32.gmra.mxu1 %vm204_vm1, %v8766_v59 }
 0x502   : > { %v3784_v1 = vpop.f32.mrf.mxu3 }
 0x503   : > { %v3836_v40 = vadd.f32 %v3784_v1, %v3539_v28  ;;  %v4068_v8 = vpop.f32.mrf.mxu0 }
 0x505   : > { %6373 = vmatmul.msk.f32.gmra.mxu2 %vm204_vm1, %v8788_v52  ;;  %v9204_v46 = vadd.f32 %v4062_v0, %v3836_v40 }
 0x506   : > { %6441 = vmatmul.msk.f32.gmra.mxu0 %vm204_vm1, %v8794_v24  ;;  %v3335_v22 = vpop.f32.mrf.mxu1 }
 0x507   : > { %6406 = vmatmul.msk.f32.gmra.mxu3 %vm204_vm1, %v8758_v13 }
 0x508   : > { %v3544_v4 = vpop.f32.mrf.mxu2 }
 0x509   : > { %v3545_v47 = vadd.f32 %v3544_v4, %v3332_v56  ;;  %6340 = vmatmul.msk.f32.gmra.mxu1 %vm204_vm1, %v8780_v41 }
 0x50a   : > { %v3787_v59 = vpop.f32.mrf.mxu3 }
 0x50b   : > { %v3837_v21 = vadd.f32 %v3787_v59, %v3542_v58  ;;  %v4071_v36 = vpop.f32.mrf.mxu0  ;;  %v10471_v59 = vld [vmem:[#allocation61_spill] sm:$0xff] }
 0x50d   : > { %6374 = vmatmul.msk.f32.gmra.mxu2 %vm204_vm1, %v8802_v43  ;;  %v9214_v52 = vadd.f32 %v4065_v30, %v3837_v21 }
 0x50e   : > { %6442 = vmatmul.msk.f32.gmra.mxu0 %vm204_vm1, %v8808_v6  ;;  %v3338_v54 = vpop.f32.mrf.mxu1 }
 0x50f   : > { %6407 = vmatmul.msk.f32.gmra.mxu3 %vm204_vm1, %v8772_v26 }
 0x510   : > { %v3547_v13 = vpop.f32.mrf.mxu2 }
 0x511   : > { %v3548_v50 = vadd.f32 %v3547_v13, %v3335_v22  ;;  %6341 = vmatmul.msk.f32.gmra.mxu1 %vm204_vm1, %v8794_v24 }
 0x512   : > { %v3790_v41 = vpop.f32.mrf.mxu3 }
 0x513   : > { %v3838_v31 = vadd.f32 %v3790_v41, %v3545_v47  ;;  %v4074_v2 = vpop.f32.mrf.mxu0  ;;  %v10473_v41 = vld [vmem:[#allocation51_spill] sm:$0xff] }
 0x515   : > { %6375 = vmatmul.msk.f32.gmra.mxu2 %vm204_vm1, %v8816_v10  ;;  %v9224_v43 = vadd.f32 %v4068_v8, %v3838_v31  ;;  %v10474_v31 = vld [vmem:[#allocation54_spill] sm:$0xff] }
 0x516   : > { %6443 = vmatmul.msk.f32.gmra.mxu0 %vm204_vm1, %v8822_v27  ;;  %v3341_v62 = vpop.f32.mrf.mxu1 }
 0x517   : > { %6408 = vmatmul.msk.f32.gmra.mxu3 %vm204_vm1, %v8786_v14 }
 0x518   : > { %v3550_v26 = vpop.f32.mrf.mxu2 }
 0x519   : > { %v3551_v16 = vadd.f32 %v3550_v26, %v3338_v54  ;;  %6342 = vmatmul.msk.f32.gmra.mxu1 %vm204_vm1, %v8808_v6  ;;  %v10476_v26 = vld [vmem:[#allocation46_spill] sm:$0xff] }
 0x51a   : > { %v3793_v24 = vpop.f32.mrf.mxu3 }
 0x51b   : > { %v3839_v9 = vadd.f32 %v3793_v24, %v3548_v50  ;;  %v4077_v12 = vpop.f32.mrf.mxu0 }
 0x51d   : > { %6376 = vmatmul.msk.f32.gmra.mxu2 %vm204_vm1, %v8830_v39  ;;  %v9234_v10 = vadd.f32 %v4071_v36, %v3839_v9  ;;  %v10472_v36 = vld [vmem:[#allocation33_spill] sm:$0xff] }
 0x51e   : > { %6444 = vmatmul.msk.f32.gmra.mxu0 %vm204_vm1, %v8836_v34  ;;  %v3344_v0 = vpop.f32.mrf.mxu1 }
 0x51f   : > { %6409 = vmatmul.msk.f32.gmra.mxu3 %vm204_vm1, %v8800_v33 }
 0x520   : > { %v3553_v14 = vpop.f32.mrf.mxu2 }
 0x521   : > { %v3554_v61 = vadd.f32 %v3553_v14, %v3341_v62  ;;  %6343 = vmatmul.msk.f32.gmra.mxu1 %vm204_vm1, %v8822_v27  ;;  %v10475_v62 = vld [vmem:[#allocation48_spill] sm:$0xff]  ;;  %v10477_v14 = vld [vmem:[#allocation53_spill] sm:$0xff] }
 0x522   : > { %v3796_v6 = vpop.f32.mrf.mxu3 }
 0x523   : > { %v3840_v20 = vadd.f32 %v3796_v6, %v3551_v16  ;;  %v4080_v28 = vpop.f32.mrf.mxu0  ;;  %v10479_v6 = vld [vmem:[#allocation58_spill] sm:$0xff] }
 0x525   : > { %6377 = vmatmul.msk.f32.gmra.mxu2 %vm204_vm1, %v8844_v38  ;;  %v9244_v39 = vadd.f32 %v4074_v2, %v3840_v20 }
 0x526   : > { %6445 = vmatmul.msk.f32.gmra.mxu0 %vm204_vm1, %v8850_v49  ;;  %v3347_v35 = vpop.f32.mrf.mxu1 }
 0x527   : > { %6410 = vmatmul.msk.f32.gmra.mxu3 %vm204_vm1, %v8814_v17 }
 0x528   : > { %v3556_v33 = vpop.f32.mrf.mxu2 }
 0x529   : > { %v3557_v25 = vadd.f32 %v3556_v33, %v3344_v0  ;;  %6344 = vmatmul.msk.f32.gmra.mxu1 %vm204_vm1, %v8836_v34 }
 0x52a   : > { %v3799_v27 = vpop.f32.mrf.mxu3 }
 0x52b   : > { %v3841_v30 = vadd.f32 %v3799_v27, %v3554_v61  ;;  %v4083_v56 = vpop.f32.mrf.mxu0 }
 0x52d   : > { %6378 = vmatmul.msk.f32.gmra.mxu2 %vm204_vm1, %v8858_v23  ;;  %v9254_v38 = vadd.f32 %v4077_v12, %v3841_v30 }
 0x52e   : > { %6446 = vmatmul.msk.f32.gmra.mxu0 %vm204_vm1, %v8864_v57  ;;  %v3350_v29 = vpop.f32.mrf.mxu1 }
 0x52f   : > { %6411 = vmatmul.msk.f32.gmra.mxu3 %vm204_vm1, %v8828_v55 }
 0x530   : > { %v3559_v17 = vpop.f32.mrf.mxu2 }
 0x531   : > { %v3560_v58 = vadd.f32 %v3559_v17, %v3347_v35  ;;  %6345 = vmatmul.msk.f32.gmra.mxu1 %vm204_vm1, %v8850_v49  ;;  %v10481_v35 = vld [vmem:[#allocation52_spill] sm:$0xff] }
 0x532   : > { %v3802_v34 = vpop.f32.mrf.mxu3  ;;  %v10482_v17 = vld [vmem:[#allocation60_spill] sm:$0xff] }
 0x533   : > { %v3842_v1 = vadd.f32 %v3802_v34, %v3557_v25  ;;  %v4086_v40 = vpop.f32.mrf.mxu0  ;;  %v10483_v34 = vld [vmem:[#allocation67_spill] sm:$0xff] }
 0x535   : > { %6379 = vmatmul.msk.f32.gmra.mxu2 %vm204_vm1, %v8872_v15  ;;  %v9264_v23 = vadd.f32 %v4080_v28, %v3842_v1  ;;  %v10480_v28 = vld [vmem:[#allocation50_spill] sm:$0xff] }
 0x536   : > { %6447 = vmatmul.msk.f32.gmra.mxu0 %vm204_vm1, %v8880_v32  ;;  %v3353_v8 = vpop.f32.mrf.mxu1 }
 0x537   : > { %6412 = vmatmul.msk.f32.gmra.mxu3 %vm204_vm1, %v8842_v37 }
 0x538   : > { %v3562_v55 = vpop.f32.mrf.mxu2 }
 0x539   : > { %v3563_v22 = vadd.f32 %v3562_v55, %v3350_v29  ;;  %6346 = vmatmul.msk.f32.gmra.mxu1 %vm204_vm1, %v8864_v57 }
 0x53a   : > { %v3805_v49 = vpop.f32.mrf.mxu3 }
 0x53b   : > { %v3843_v4 = vadd.f32 %v3805_v49, %v3560_v58  ;;  %v4089_v47 = vpop.f32.mrf.mxu0 }
 0x53d   : > { %6380 = vmatmul.msk.f32.gmra.mxu2 %vm204_vm1, %v8888_v11  ;;  %v9274_v15 = vadd.f32 %v4083_v56, %v3843_v4 }
 0x53e   : > { %6448 = vmatmul.msk.f32.gmra.mxu0 %vm204_vm1, %v10471_v59  ;;  %v4274_v21 = vpop.f32.mrf.mxu1 }
 0x53f   : > { %6413 = vmatmul.msk.f32.gmra.mxu3 %vm204_vm1, %v10472_v36  ;;  %v4370_v16 = vadd.f32 %v4274_v21, %v10476_v26  ;;  %v10486_v21 = vld [vmem:[#allocation59_spill] sm:$0xff] }
 0x540   : > { %v3565_v37 = vpop.f32.mrf.mxu2 }
 0x541   : > { %v3566_v54 = vadd.f32 %v3565_v37, %v3353_v8  ;;  %6347 = vmatmul.msk.f32.gmra.mxu1 %vm204_vm1, %v8880_v32  ;;  %v10485_v8 = vld [vmem:[#allocation56_spill] sm:$0xff]  ;;  %v10487_v37 = vld [vmem:[#allocation62_spill] sm:$0xff] }
 0x542   : > { %v3808_v57 = vpop.f32.mrf.mxu3 }
 0x543   : > { %v3844_v13 = vadd.f32 %v3808_v57, %v3563_v22  ;;  %v5108_v50 = vpop.f32.mrf.mxu0  ;;  %v10488_v57 = vld [vmem:[#allocation36_spill] sm:$0xff] }
 0x545   : > { %6381 = vmatmul.msk.f32.gmra.mxu2 %vm204_vm1, %v10473_v41  ;;  %v9284_v11 = vadd.f32 %v4086_v40, %v3844_v13  ;;  %v10484_v40 = vld [vmem:[#allocation34_spill] sm:$0xff]  ;;  %v10489_v13 = vld [vmem:[#allocation55_spill] sm:$0xff] }
 0x546   : > { %6449 = vmatmul.msk.f32.gmra.mxu0 %vm204_vm1, %v10474_v31  ;;  %v4277_v2 = vpop.f32.mrf.mxu1 }
 0x547   : > { %6414 = vmatmul.msk.f32.gmra.mxu3 %vm204_vm1, %v10475_v62  ;;  %v4371_v33 = vadd.f32 %v4277_v2, %v10481_v35 }
 0x548   : > { %v4552_v24 = vpop.f32.mrf.mxu2 }
 0x549   : > { %v4648_v9 = vadd.f32 %v4552_v24, %v4370_v16  ;;  %6348 = vmatmul.msk.f32.gmra.mxu1 %vm204_vm1, %v10471_v59  ;;  %v10490_v16 = vld [vmem:[#allocation70_spill] sm:$0xff] }
 0x54a   : > { %v3811_v32 = vpop.f32.mrf.mxu3 }
 0x54b   : > { %v3845_v12 = vadd.f32 %v3811_v32, %v3566_v54  ;;  %v5111_v0 = vpop.f32.mrf.mxu0 }
 0x54d   : > { %6382 = vmatmul.msk.f32.gmra.mxu2 %vm204_vm1, %v10477_v14  ;;  %v9295_v61 = vadd.f32 %v4089_v47, %v3845_v12  ;;  %v10492_v12 = vld [vmem:[#allocation35_spill] sm:$0xff] }
 0x54e   : > { %6450 = vmatmul.msk.f32.gmra.mxu0 %vm204_vm1, %v10479_v6  ;;  %v4280_v20 = vpop.f32.mrf.mxu1 }
 0x54f   : > { %10478 = vst [vmem:[#allocation61_spill] sm:$0xff] %v9295_v61  ;;  %6415 = vmatmul.msk.f32.gmra.mxu3 %vm204_vm1, %v10480_v28  ;;  %v4372_v55 = vadd.f32 %v4280_v20, %v10485_v8 }
 0x550   : > { %v4555_v25 = vpop.f32.mrf.mxu2 }
 0x551   : > { %v4649_v27 = vadd.f32 %v4555_v25, %v4371_v33  ;;  %6349 = vmatmul.msk.f32.gmra.mxu1 %vm204_vm1, %v10474_v31  ;;  %v10494_v25 = vld [vmem:[#allocation39_spill] sm:$0xff] }
 0x552   : > { %v4830_v30 = vpop.f32.mrf.mxu3 }
 0x553   : > { %v4926_v56 = vadd.f32 %v4830_v30, %v4648_v9  ;;  %v5114_v29 = vpop.f32.mrf.mxu0  ;;  %v10491_v9 = vld [vmem:[#allocation41_spill] sm:$0xff]  ;;  %v10495_v30 = vld [vmem:[#allocation43_spill] sm:$0xff] }
 0x555   : > { %6383 = vmatmul.msk.f32.gmra.mxu2 %vm204_vm1, %v10482_v17  ;;  %v9306_v58 = vadd.f32 %v5108_v50, %v4926_v56  ;;  %v10497_v17 = vld [vmem:[#allocation63_spill] sm:$0xff] }
 0x556   : > { %6451 = vmatmul.msk.f32.gmra.mxu0 %vm204_vm1, %v10483_v34  ;;  %v4283_v1 = vpop.f32.mrf.mxu1 }
 0x557   : > { %6416 = vmatmul.msk.f32.gmra.mxu3 %vm204_vm1, %v10484_v40  ;;  %v4373_v50 = vadd.f32 %v4283_v1, %v10489_v13 }
 0x558   : > { %v4558_v22 = vpop.f32.mrf.mxu2 }
 0x559   : > { %v4650_v49 = vadd.f32 %v4558_v22, %v4372_v55  ;;  %6350 = vmatmul.msk.f32.gmra.mxu1 %vm204_vm1, %v10479_v6 }
 0x55a   : > { %v4833_v4 = vpop.f32.mrf.mxu3 }
 0x55b   : > { %v4927_v47 = vadd.f32 %v4833_v4, %v4649_v27  ;;  %v5117_v59 = vpop.f32.mrf.mxu0 }
 0x55d   : > { %6384 = vmatmul.msk.f32.gmra.mxu2 %vm204_vm1, %v10486_v21  ;;  %v9317_v36 = vadd.f32 %v5111_v0, %v4927_v47  ;;  %v10493_v0 = vld [vmem:[#allocation64_spill] sm:$0xff]  ;;  %v10499_v47 = vld [vmem:[#allocation47_spill] sm:$0xff]  ;;  %v10500_v21 = vld [vmem:[#allocation37_spill] sm:$0xff] }
 0x55e   : > { %6452 = vmatmul.msk.f32.gmra.mxu0 %vm204_vm1, %v10487_v37  ;;  %v4286_v54 = vpop.f32.mrf.mxu1 }
 0x55f   : > { %6417 = vmatmul.msk.f32.gmra.mxu3 %vm204_vm1, %v10488_v57  ;;  %v4374_v14 = vadd.f32 %v4286_v54, %v10493_v0 }
 0x560   : > { %v4561_v41 = vpop.f32.mrf.mxu2 }
 0x561   : > { %v4651_v31 = vadd.f32 %v4561_v41, %v4373_v50  ;;  %6351 = vmatmul.msk.f32.gmra.mxu1 %vm204_vm1, %v10483_v34 }
 0x562   : > { %v4836_v2 = vpop.f32.mrf.mxu3 }
 0x563   : > { %v4928_v62 = vadd.f32 %v4836_v2, %v4650_v49  ;;  %v5120_v26 = vpop.f32.mrf.mxu0  ;;  %v10498_v49 = vld [vmem:[#allocation42_spill] sm:$0xff]  ;;  %v10502_v2 = vld [vmem:[#allocation71_spill] sm:$0xff] }
 0x565   : > { %6385 = vmatmul.msk.f32.gmra.mxu2 %vm204_vm1, %v10490_v16  ;;  %v9328_v24 = vadd.f32 %v5114_v29, %v4928_v62  ;;  %v10496_v29 = vld [vmem:[#allocation38_spill] sm:$0xff] }
 0x566   : > { %6453 = vmatmul.msk.f32.gmra.mxu0 %vm204_vm1, %v10491_v9  ;;  %v4289_v32 = vpop.f32.mrf.mxu1 }
 0x567   : > { %6418 = vmatmul.msk.f32.gmra.mxu3 %vm204_vm1, %v10492_v12  ;;  %v4375_v34 = vadd.f32 %v4289_v32, %v10497_v17  ;;  %v10505_v32 = vld [vmem:[#allocation45_spill] sm:$0xff] }
 0x568   : > { %v4564_v6 = vpop.f32.mrf.mxu2 }
 0x569   : > { %v4652_v20 = vadd.f32 %v4564_v6, %v4374_v14  ;;  %6352 = vmatmul.msk.f32.gmra.mxu1 %vm204_vm1, %v10487_v37  ;;  %v10501_v37 = vld [vmem:[#allocation66_spill] sm:$0xff] }
 0x56a   : > { %v4839_v28 = vpop.f32.mrf.mxu3 }
 0x56b   : > { %v4929_v35 = vadd.f32 %v4839_v28, %v4651_v31  ;;  %v5123_v33 = vpop.f32.mrf.mxu0 }
 0x56d   : > { %6386 = vmatmul.msk.f32.gmra.mxu2 %vm204_vm1, %v10494_v25  ;;  %v9339_v27 = vadd.f32 %v5117_v59, %v4929_v35  ;;  %v10506_v35 = vld [vmem:[#allocation75_spill] sm:$0xff] }
 0x56e   : > { %6454 = vmatmul.msk.f32.gmra.mxu0 %vm204_vm1, %v10495_v30  ;;  %v4292_v56 = vpop.f32.mrf.mxu1 }
 0x56f   : > { %6419 = vmatmul.msk.f32.gmra.mxu3 %vm204_vm1, %v10496_v29  ;;  %v4376_v54 = vadd.f32 %v4292_v56, %v10501_v37  ;;  %v10508_v56 = vld [vmem:[#allocation40_spill] sm:$0xff]  ;;  %v10509_v29 = vld [vmem:[#allocation49_spill] sm:$0xff]  ;;  %v10513_v37 = vld [vmem:[#allocation74_spill] sm:$0xff] }
 0x570   : > { %v4567_v1 = vpop.f32.mrf.mxu2 }
 0x571   : > { %v4653_v40 = vadd.f32 %v4567_v1, %v4375_v34  ;;  %6353 = vmatmul.msk.f32.gmra.mxu1 %vm204_vm1, %v10491_v9  ;;  %v10504_v9 = vld [vmem:[#allocation65_spill] sm:$0xff] }
 0x572   : > { %v4842_v8 = vpop.f32.mrf.mxu3 }
 0x573   : > { %v4930_v55 = vadd.f32 %v4842_v8, %v4652_v20  ;;  %v5126_v22 = vpop.f32.mrf.mxu0 }
 0x575   : > { %6387 = vmatmul.msk.f32.gmra.mxu2 %vm204_vm1, %v10498_v49  ;;  %v9350_v4 = vadd.f32 %v5120_v26, %v4930_v55  ;;  %v10503_v26 = vld [vmem:[#allocation72_spill] sm:$0xff]  ;;  %v10510_v49 = vld [vmem:[#allocation79_spill] sm:$0xff] }
 0x576   : > { %6455 = vmatmul.msk.f32.gmra.mxu0 %vm204_vm1, %v10499_v47  ;;  %v4295_v59 = vpop.f32.mrf.mxu1 }
 0x577   : > { %6420 = vmatmul.msk.f32.gmra.mxu3 %vm204_vm1, %v10500_v21  ;;  %v4377_v12 = vadd.f32 %v4295_v59, %v10505_v32  ;;  %v10512_v21 = vld [vmem:[#allocation44_spill] sm:$0xff]  ;;  %v10516_v32 = vld [vmem:[#allocation78_spill] sm:$0xff] }
 0x578   : > { %v4570_v57 = vpop.f32.mrf.mxu2 }
 0x579   : > { %v4654_v13 = vadd.f32 %v4570_v57, %v4376_v54  ;;  %6354 = vmatmul.msk.f32.gmra.mxu1 %vm204_vm1, %v10495_v30 }
 0x57a   : > { %v4845_v50 = vpop.f32.mrf.mxu3 }
 0x57b   : > { %v4931_v41 = vadd.f32 %v4845_v50, %v4653_v40  ;;  %v5129_v31 = vpop.f32.mrf.mxu0 }
 0x57d   : > { %6388 = vmatmul.msk.f32.gmra.mxu2 %vm204_vm1, %v10502_v2  ;;  %v9361_v62 = vadd.f32 %v5123_v33, %v4931_v41  ;;  %v10507_v33 = vld [vmem:[#allocation76_spill] sm:$0xff] }
 0x57e   : > { %6456 = vmatmul.msk.f32.gmra.mxu0 %vm204_vm1, %v10503_v26  ;;  %v4298_v16 = vpop.f32.mrf.mxu1 }
 0x57f   : > { %6421 = vmatmul.msk.f32.gmra.mxu3 %vm204_vm1, %v10504_v9  ;;  %v4378_v17 = vadd.f32 %v4298_v16, %v10509_v29  ;;  %v10515_v9 = vld [vmem:[#allocation73_spill] sm:$0xff] }
 0x580   : > { %v4573_v0 = vpop.f32.mrf.mxu2 }
 0x581   : > { %v4655_v14 = vadd.f32 %v4573_v0, %v4377_v12  ;;  %6355 = vmatmul.msk.f32.gmra.mxu1 %vm204_vm1, %v10499_v47  ;;  %v10511_v47 = vld [vmem:[#allocation80_spill] sm:$0xff] }
 0x582   : > { %v4848_v6 = vpop.f32.mrf.mxu3 }
 0x583   : > { %v4932_v20 = vadd.f32 %v4848_v6, %v4654_v13  ;;  %v5132_v28 = vpop.f32.mrf.mxu0 }
 0x585   : > { %6389 = vmatmul.msk.f32.gmra.mxu2 %vm204_vm1, %v10506_v35  ;;  %v9374_v30 = vadd.f32 %v5126_v22, %v4932_v20 }
 0x586   : > { %6457 = vmatmul.msk.f32.gmra.mxu0 %vm204_vm1, %v10507_v33  ;;  %v4301_v25 = vpop.f32.mrf.mxu1 }
 0x587   : > { %6422 = vmatmul.msk.f32.gmra.mxu3 %vm204_vm1, %v10508_v56  ;;  %v4379_v54 = vadd.f32 %v4301_v25, %v10513_v37  ;;  %v10518_v25 = vld [vmem:[#allocation77_spill] sm:$0xff]  ;;  %v10519_v56 = vld [vmem:[#allocation82_spill] sm:$0xff] }
 0x588   : > { %v4576_v34 = vpop.f32.mrf.mxu2 }
 0x589   : > { %v4656_v1 = vadd.f32 %v4576_v34, %v4378_v17  ;;  %6356 = vmatmul.msk.f32.gmra.mxu1 %vm204_vm1, %v10503_v26  ;;  %v10514_v26 = vld [vmem:[#allocation83_spill] sm:$0xff] }
 0x58a   : > { %v4851_v40 = vpop.f32.mrf.mxu3 }
 0x58b   : > { %v4933_v8 = vadd.f32 %v4851_v40, %v4655_v14  ;;  %v5135_v55 = vpop.f32.mrf.mxu0 }
 0x58d   : > { %6390 = vmatmul.msk.f32.gmra.mxu2 %vm204_vm1, %v10510_v49  ;;  %v9385_v59 = vadd.f32 %v5129_v31, %v4933_v8  ;;  %v4986_v49 = vld [vmem:[#allocation2 + $0x181] sm:$0xff] }
 0x58e   : > { %6458 = vmatmul.msk.f32.gmra.mxu0 %vm204_vm1, %v10511_v47  ;;  %v4304_v22 = vpop.f32.mrf.mxu1 }
 0x58f   : > { %6423 = vmatmul.msk.f32.gmra.mxu3 %vm204_vm1, %v10512_v21  ;;  %v4380_v12 = vadd.f32 %v4304_v22, %v10516_v32  ;;  %v10520_v22 = vld [vmem:[#allocation81_spill] sm:$0xff] }
 0x590   : > { %v4579_v57 = vpop.f32.mrf.mxu2  ;;  %v10521_v21 = vld [vmem:[#allocation85_spill] sm:$0xff] }
 0x591   : > { %v4657_v13 = vadd.f32 %v4579_v57, %v4379_v54  ;;  %6357 = vmatmul.msk.f32.gmra.mxu1 %vm204_vm1, %v10507_v33  ;;  %v10517_v33 = vld [vmem:[#allocation86_spill] sm:$0xff] }
 0x592   : > { %v4854_v50 = vpop.f32.mrf.mxu3 }
 0x593   : > { %v4934_v41 = vadd.f32 %v4854_v50, %v4656_v1  ;;  %v5138_v2 = vpop.f32.mrf.mxu0 }
 0x595   : > { %6391 = vmatmul.msk.f32.gmra.mxu2 %vm204_vm1, %v10514_v26  ;;  %v9396_v16 = vadd.f32 %v5132_v28, %v4934_v41  ;;  %v10522_v26 = vld [vmem:[#allocation84_spill] sm:$0xff] }
 0x596   : > { %6459 = vmatmul.msk.f32.gmra.mxu0 %vm204_vm1, %v9085_v60  ;;  %v4307_v31 = vpop.f32.mrf.mxu1 }
 0x597   : > { %6424 = vmatmul.msk.f32.gmra.mxu3 %vm204_vm1, %v10515_v9  ;;  %v4381_v29 = vadd.f32 %v4307_v31, %v10519_v56 }
 0x598   : > { %v4582_v0 = vpop.f32.mrf.mxu2 }
 0x599   : > { %v4658_v14 = vadd.f32 %v4582_v0, %v4380_v12  ;;  %6358 = vmatmul.msk.f32.gmra.mxu1 %vm204_vm1, %v10511_v47 }
 0x59a   : > { %v4857_v6 = vpop.f32.mrf.mxu3 }
 0x59b   : > { %v4935_v20 = vadd.f32 %v4857_v6, %v4657_v13  ;;  %v5141_v35 = vpop.f32.mrf.mxu0 }
 0x59d   : > { %6392 = vmatmul.msk.f32.gmra.mxu2 %vm204_vm1, %v10517_v33  ;;  %v9410_v17 = vadd.f32 %v5135_v55, %v4935_v20  ;;  %v10523_v20 = vld [vmem:[#allocation87_spill] sm:$0xff] }
 0x59e   : > { %6460 = vmatmul.msk.f32.gmra.mxu0 %vm204_vm1, %v9102_v51  ;;  %v4310_v28 = vpop.f32.mrf.mxu1 }
 0x59f   : > { %6425 = vmatmul.msk.f32.gmra.mxu3 %vm204_vm1, %v10518_v25  ;;  %v4382_v55 = vadd.f32 %v4310_v28, %v10521_v21 }
 0x5a0   : > { %v4585_v34 = vpop.f32.mrf.mxu2 }
 0x5a1   : > { %v4659_v1 = vadd.f32 %v4585_v34, %v4381_v29  ;;  %6359 = vmatmul.msk.f32.gmra.mxu1 %vm204_vm1, %v9085_v60  ;;  %v9444_v34 = vld [vmem:[#allocation2 + $0x18a] sm:$0xff] }
 0x5a2   : > { %v4860_v40 = vpop.f32.mrf.mxu3 }
 0x5a3   : > { %v4936_v8 = vadd.f32 %v4860_v40, %v4658_v14  ;;  %v5144_v37 = vpop.f32.mrf.mxu0  ;;  %v9433_v14 = vld [vmem:[#allocation2 + $0x182] sm:$0xff]  ;;  %v4710_v40 = vld [vmem:[#allocation2 + $0x198] sm:$0xff] }
 0x5a5   : > { %6393 = vmatmul.msk.f32.gmra.mxu2 %vm204_vm1, %v9112_v53  ;;  %v9420_v54 = vadd.f32 %v5138_v2, %v4936_v8  ;;  %v4987_v53 = vld [vmem:[#allocation2 + $0x189] sm:$0xff] }
 0x5a6   : > { %6461 = vmatmul.msk.f32.gmra.mxu0 %vm204_vm1, %v4986_v49  ;;  %v4313_v47 = vpop.f32.mrf.mxu1 }
 0x5a7   : > { %6426 = vmatmul.msk.f32.gmra.mxu3 %vm204_vm1, %v10520_v22  ;;  %v4383_v2 = vadd.f32 %v4313_v47, %v9110_v48  ;;  %v5236_v47 = vld [vmem:[#allocation2 + $0x32] sm:$0xff] }
 0x5a8   : > { %v4588_v57 = vpop.f32.mrf.mxu2 }
 0x5a9   : > { %v4660_v13 = vadd.f32 %v4588_v57, %v4382_v55  ;;  %6360 = vmatmul.msk.f32.gmra.mxu1 %vm204_vm1, %v9102_v51 }
 0x5aa   : > { %v4863_v60 = vpop.f32.mrf.mxu3 }
 0x5ab   : > { %v4937_v50 = vadd.f32 %v4863_v60, %v4659_v1  ;;  %v5147_v32 = vpop.f32.mrf.mxu0  ;;  %v4989_v1 = vld [vmem:[#allocation2 + $0x1a1] sm:$0xff] }
 0x5ad   : > { %6394 = vmatmul.msk.f32.gmra.mxu2 %vm204_vm1, %v9124_v42  ;;  %v9430_v31 = vadd.f32 %v5141_v35, %v4937_v50  ;;  %v4988_v42 = vld [vmem:[#allocation2 + $0x199] sm:$0xff] }
 0x5ae   : > { %6462 = vmatmul.msk.f32.gmra.mxu0 %vm204_vm1, %v4987_v53  ;;  %v4316_v41 = vpop.f32.mrf.mxu1 }
 0x5af   : > { %6427 = vmatmul.msk.f32.gmra.mxu3 %vm204_vm1, %v10522_v26  ;;  %v4384_v48 = vadd.f32 %v4316_v41, %v9122_v18  ;;  %v5237_v41 = vld [vmem:[#allocation2 + $0x3a] sm:$0xff] }
 0x5b0   : > { %v4591_v9 = vpop.f32.mrf.mxu2 }
 0x5b1   : > { %v4661_v12 = vadd.f32 %v4591_v9, %v4383_v2  ;;  %6361 = vmatmul.msk.f32.gmra.mxu1 %vm204_vm1, %v4986_v49 }
 0x5b2   : > { %v4866_v51 = vpop.f32.mrf.mxu3 }
 0x5b3   : > { %v4938_v0 = vadd.f32 %v4866_v51, %v4660_v13  ;;  %v5150_v29 = vpop.f32.mrf.mxu0  ;;  %v4711_v13 = vld [vmem:[#allocation2 + $0x1a0] sm:$0xff] }
 0x5b5   : > { %6395 = vmatmul.msk.f32.gmra.mxu2 %vm204_vm1, %v9433_v14  ;;  %v9441_v33 = vadd.f32 %v5144_v37, %v4938_v0 }
 0x5b6   : > { %6463 = vmatmul.msk.f32.gmra.mxu0 %vm204_vm1, %v4988_v42  ;;  %v4319_v6 = vpop.f32.mrf.mxu1  ;;  %v5238_v42 = vld [vmem:[#allocation2 + $0x4a] sm:$0xff] }
 0x5b7   : > { %6428 = vmatmul.msk.f32.gmra.mxu3 %vm204_vm1, %v10523_v20  ;;  %v4385_v18 = vadd.f32 %v4319_v6, %v9134_v7 }
 0x5b8   : > { %v4594_v35 = vpop.f32.mrf.mxu2 }
 0x5b9   : > { %v4662_v28 = vadd.f32 %v4594_v35, %v4384_v48  ;;  %6362 = vmatmul.msk.f32.gmra.mxu1 %vm204_vm1, %v4987_v53 }
 0x5ba   : > { %v4869_v25 = vpop.f32.mrf.mxu3 }
 0x5bb   : > { %v4939_v56 = vadd.f32 %v4869_v25, %v4661_v12  ;;  %v5153_v57 = vpop.f32.mrf.mxu0 }
 0x5bd   : > { %6396 = vmatmul.msk.f32.gmra.mxu2 %vm204_vm1, %v9444_v34  ;;  %v9451_v22 = vadd.f32 %v5147_v32, %v4939_v56  ;;  %v5239_v56 = vld [vmem:[#allocation2 + $0x52] sm:$0xff] }
 0x5be   : > { %6464 = vmatmul.msk.f32.gmra.mxu0 %vm204_vm1, %v4989_v1  ;;  %v4322_v8 = vpop.f32.mrf.mxu1 }
 0x5bf   : > { %6429 = vmatmul.msk.f32.gmra.mxu3 %vm204_vm1, %v4710_v40  ;;  %v4386_v50 = vadd.f32 %v4322_v8, %v9144_v63 }
 0x5c0   : > { %v4597_v49 = vpop.f32.mrf.mxu2 }
 0x5c1   : > { %v4663_v21 = vadd.f32 %v4597_v49, %v4385_v18  ;;  %6467 = vmatmul.msk.f32.vlgmr.msra.gmra.mxu1 %vm204_vm1, %v5236_v47 }
 0x5c2   : > { %v4872_v55 = vpop.f32.mrf.mxu3 }
 0x5c3   : > { %v4940_v37 = vadd.f32 %v4872_v55, %v4662_v28  ;;  %v5156_v12 = vpop.f32.mrf.mxu0 }
 0x5c5   : > { %v9456_v26 = vadd.f32 %v5150_v29, %v4940_v37 }
 0x5c6   : > { %v4325_v60 = vpop.f32.mrf.mxu1 }
 0x5c7   : > { %6430 = vmatmul.msk.f32.gmra.mxu3 %vm204_vm1, %v4711_v13  ;;  %v4387_v51 = vadd.f32 %v4325_v60, %v9154_v45 }
 0x5c8   : > { %v4600_v53 = vpop.f32.mrf.mxu2 }
 0x5c9   : > { %v4664_v7 = vadd.f32 %v4600_v53, %v4386_v50  ;;  %6468 = vmatmul.msk.f32.gmra.mxu1 %vm204_vm1, %v5237_v41  ;;  %v5241_v41 = vld [vmem:[#allocation2 + $0x6a] sm:$0xff] }
 0x5ca   : > { %v4875_v2 = vpop.f32.mrf.mxu3 }
 0x5cb   : > { %v4941_v9 = vadd.f32 %v4875_v2, %v4663_v21  ;;  %v5159_v1 = vpop.f32.mrf.mxu0  ;;  %v5240_v21 = vld [vmem:[#allocation2 + $0x62] sm:$0xff] }
 0x5cd   : > { %v9460_v6 = vadd.f32 %v5153_v57, %v4941_v9 }
 0x5ce   : > { %v4328_v32 = vpop.f32.mrf.mxu1 }
 0x5cf   : > { %v4388_v28 = vadd.f32 %v4328_v32, %v9164_v3 }
 0x5d0   : > { %v4603_v0 = vpop.f32.mrf.mxu2 }
 0x5d1   : > { %v4665_v20 = vadd.f32 %v4603_v0, %v4387_v51  ;;  %6469 = vmatmul.msk.f32.gmra.mxu1 %vm204_vm1, %v5238_v42  ;;  %v5242_v51 = vld [vmem:[#allocation2 + $0x7a] sm:$0xff] }
 0x5d2   : > { %v4878_v63 = vpop.f32.mrf.mxu3 }
 0x5d3   : > { %v4942_v48 = vadd.f32 %v4878_v63, %v4664_v7  ;;  %v5162_v57 = vpop.f32.mrf.mxu0 }
 0x5d5   : > { %v9464_v29 = vadd.f32 %v5156_v12, %v4942_v48  ;;  %v5243_v48 = vld [vmem:[#allocation2 + $0x82] sm:$0xff] }
 0x5d6   : > { %v4331_v35 = vpop.f32.mrf.mxu1 }
 0x5d7   : > { %v4389_v49 = vadd.f32 %v4331_v35, %v9174_v19 }
 0x5d8   : > { %v4606_v25 = vpop.f32.mrf.mxu2 }
 0x5d9   : > { %v4666_v40 = vadd.f32 %v4606_v25, %v4388_v28  ;;  %6470 = vmatmul.msk.f32.gmra.mxu1 %vm204_vm1, %v5239_v56  ;;  %v5244_v25 = vld [vmem:[#allocation2 + $0x92] sm:$0xff] }
 0x5da   : > { %v4881_v45 = vpop.f32.mrf.mxu3 }
 0x5db   : > { %v4943_v8 = vadd.f32 %v4881_v45, %v4665_v20  ;;  %v5165_v32 = vpop.f32.mrf.mxu0  ;;  %v5246_v45 = vld [vmem:[#allocation2 + $0xaa] sm:$0xff] }
 0x5dd   : > { %v9468_v55 = vadd.f32 %v5159_v1, %v4943_v8  ;;  %v5245_v1 = vld [vmem:[#allocation2 + $0x9a] sm:$0xff] }
 0x5de   : > { %v4334_v18 = vpop.f32.mrf.mxu1 }
 0x5df   : > { %v4390_v50 = vadd.f32 %v4334_v18, %v9184_v5  ;;  %v5247_v18 = vld [vmem:[#allocation2 + $0xb2] sm:$0xff] }
 0x5e0   : > { %v4609_v47 = vpop.f32.mrf.mxu2 }
 0x5e1   : > { %v4667_v37 = vadd.f32 %v4609_v47, %v4389_v49  ;;  %6471 = vmatmul.msk.f32.gmra.mxu1 %vm204_vm1, %v5240_v21  ;;  %v5248_v47 = vld [vmem:[#allocation2 + $0xc2] sm:$0xff] }
 0x5e2   : > { %v4884_v3 = vpop.f32.mrf.mxu3 }
 0x5e3   : > { %v4944_v13 = vadd.f32 %v4884_v3, %v4666_v40  ;;  %v5168_v63 = vpop.f32.mrf.mxu0 }
 0x5e5   : > { %v9474_v7 = vadd.f32 %v5162_v57, %v4944_v13  ;;  %v5250_v57 = vld [vmem:[#allocation2 + $0xda] sm:$0xff] }
 0x5e6   : > { %v9471_v60 = vpop.f32.mrf.mxu1 }
 0x5e8   : > { %v4612_v53 = vpop.f32.mrf.mxu2 }
 0x5e9   : > { %v4668_v2 = vadd.f32 %v4612_v53, %v4390_v50  ;;  %6472 = vmatmul.msk.f32.gmra.mxu1 %vm204_vm1, %v5241_v41  ;;  %v5251_v50 = vld [vmem:[#allocation2 + $0xe2] sm:$0xff]  ;;  %v5252_v41 = vld [vmem:[#allocation2 + $0xf2] sm:$0xff] }
 0x5ea   : > { %v4887_v19 = vpop.f32.mrf.mxu3 }
 0x5eb   : > { %v4945_v9 = vadd.f32 %v4887_v19, %v4667_v37  ;;  %v5249_v37 = vld [vmem:[#allocation2 + $0xca] sm:$0xff]  ;;  %v5253_v19 = vld [vmem:[#allocation2 + $0xfa] sm:$0xff] }
 0x5ed   : > { %v9479_v0 = vadd.f32 %v5165_v32, %v4945_v9  ;;  %v5254_v32 = vld [vmem:[#allocation2 + $0x10a] sm:$0xff] }
 0x5ee   : > { %v9477_v12 = vpop.f32.mrf.mxu1 }
 0x5f1   : > { %6473 = vmatmul.msk.f32.gmra.mxu1 %vm204_vm1, %v5242_v51 }
 0x5f2   : > { %v4890_v42 = vpop.f32.mrf.mxu3 }
 0x5f3   : > { %v4946_v20 = vadd.f32 %v4890_v42, %v4668_v2  ;;  %v5255_v42 = vld [vmem:[#allocation2 + $0x112] sm:$0xff] }
 0x5f5   : > { %v9484_v35 = vadd.f32 %v5168_v63, %v4946_v20  ;;  %v5256_v63 = vld [vmem:[#allocation2 + $0x122] sm:$0xff] }
 0x5f6   : > { %v9482_v5 = vpop.f32.mrf.mxu1 }
 0x5f9   : > { %6474 = vmatmul.msk.f32.gmra.mxu1 %vm204_vm1, %v5243_v48 }
 0x5fe   : > { %v9487_v28 = vpop.f32.mrf.mxu1 }
 0x601   : > { %6475 = vmatmul.msk.f32.gmra.mxu1 %vm204_vm1, %v5244_v25  ;;  %v5257_v25 = vld [vmem:[#allocation2 + $0x12a] sm:$0xff] }
 0x606   : > { %v9490_v56 = vpop.f32.mrf.mxu1 }
 0x609   : > { %6476 = vmatmul.msk.f32.gmra.mxu1 %vm204_vm1, %v5245_v1 }
 0x60e   : > { %v9493_v40 = vpop.f32.mrf.mxu1 }
 0x611   : > { %6477 = vmatmul.msk.f32.gmra.mxu1 %vm204_vm1, %v5246_v45  ;;  %v5258_v45 = vld [vmem:[#allocation2 + $0x13a] sm:$0xff] }
 0x616   : > { %v9496_v8 = vpop.f32.mrf.mxu1 }
 0x619   : > { %6478 = vmatmul.msk.f32.gmra.mxu1 %vm204_vm1, %v5247_v18 }
 0x61e   : > { %v9499_v49 = vpop.f32.mrf.mxu1 }
 0x621   : > { %6479 = vmatmul.msk.f32.gmra.mxu1 %vm204_vm1, %v5248_v47  ;;  %v5259_v47 = vld [vmem:[#allocation2 + $0x142] sm:$0xff] }
 0x626   : > { %v9502_v21 = vpop.f32.mrf.mxu1 }
 0x629   : > { %6480 = vmatmul.msk.f32.gmra.mxu1 %vm204_vm1, %v5249_v37 }
 0x62e   : > { %v9505_v3 = vpop.f32.mrf.mxu1 }
 0x631   : > { %6481 = vmatmul.msk.f32.gmra.mxu1 %vm204_vm1, %v5250_v57 }
 0x636   : > { %v9508_v13 = vpop.f32.mrf.mxu1 }
 0x637   : > { %10524 = vst [vmem:[#allocation33_spill] sm:$0xff] %v9508_v13 }
 0x639   : > { %6482 = vmatmul.msk.f32.gmra.mxu1 %vm204_vm1, %v5251_v50  ;;  %v5260_v50 = vld [vmem:[#allocation2 + $0x152] sm:$0xff] }
 0x63e   : > { %v9511_v53 = vpop.f32.mrf.mxu1 }
 0x641   : > { %6483 = vmatmul.msk.f32.gmra.mxu1 %vm204_vm1, %v5252_v41 }
 0x646   : > { %v9514_v2 = vpop.f32.mrf.mxu1 }
 0x649   : > { %6484 = vmatmul.msk.f32.gmra.mxu1 %vm204_vm1, %v5253_v19 }
 0x64e   : > { %v9517_v9 = vpop.f32.mrf.mxu1 }
 0x651   : > { %6485 = vmatmul.msk.f32.gmra.mxu1 %vm204_vm1, %v5254_v32  ;;  %v5261_v32 = vld [vmem:[#allocation2 + $0x15a] sm:$0xff] }
 0x656   : > { %v9520_v51 = vpop.f32.mrf.mxu1 }
 0x659   : > { %6486 = vmatmul.msk.f32.gmra.mxu1 %vm204_vm1, %v5255_v42 }
 0x65e   : > { %v9523_v20 = vpop.f32.mrf.mxu1 }
 0x661   : > { %6487 = vmatmul.msk.f32.gmra.mxu1 %vm204_vm1, %v5256_v63 }
 0x666   : > { %v9526_v48 = vpop.f32.mrf.mxu1 }
 0x669   : > { %6488 = vmatmul.msk.f32.gmra.mxu1 %vm204_vm1, %v5257_v25  ;;  %v5262_v25 = vld [vmem:[#allocation2 + $0x16a] sm:$0xff] }
 0x66e   : > { %v9529_v1 = vpop.f32.mrf.mxu1 }
 0x671   : > { %6489 = vmatmul.msk.f32.gmra.mxu1 %vm204_vm1, %v5258_v45 }
 0x676   : > { %v9532_v18 = vpop.f32.mrf.mxu1 }
 0x679   : > { %6490 = vmatmul.msk.f32.gmra.mxu1 %vm204_vm1, %v5259_v47  ;;  %v5263_v47 = vld [vmem:[#allocation2 + $0x172] sm:$0xff] }
 0x67e   : > { %v5410_v37 = vpop.f32.mrf.mxu1 }
 0x67f   : > { %v9536_v57 = vadd.f32 %v5410_v37, %v9396_v16 }
 0x681   : > { %6491 = vmatmul.msk.f32.gmra.mxu1 %vm204_vm1, %v5260_v50 }
 0x686   : > { %v5413_v41 = vpop.f32.mrf.mxu1 }
 0x687   : > { %v9540_v19 = vadd.f32 %v5413_v41, %v9410_v17 }
 0x689   : > { %10525 = vst [vmem:[#allocation51_spill] sm:$0xff] %v9540_v19  ;;  %6492 = vmatmul.msk.f32.gmra.mxu1 %vm204_vm1, %v5261_v32  ;;  %v5266_v32 = vld [vmem:[#allocation2 + $0x19a] sm:$0xff] }
 0x68e   : > { %v5416_v42 = vpop.f32.mrf.mxu1 }
 0x68f   : > { %v9544_v63 = vadd.f32 %v5416_v42, %v9420_v54 }
 0x691   : > { %10526 = vst [vmem:[#allocation54_spill] sm:$0xff] %v9544_v63  ;;  %6493 = vmatmul.msk.f32.gmra.mxu1 %vm204_vm1, %v5262_v25  ;;  %v5267_v25 = vld [vmem:[#allocation2 + $0x1a2] sm:$0xff] }
 0x696   : > { %v5419_v45 = vpop.f32.mrf.mxu1 }
 0x697   : > { %v9548_v16 = vadd.f32 %v5419_v45, %v9430_v31  ;;  %v4615_v45 = vpop.f32.mrf.mxu2 }
 0x699   : > { %10527 = vst [vmem:[#allocation48_spill] sm:$0xff] %v9548_v16  ;;  %6494 = vmatmul.msk.f32.gmra.mxu1 %vm204_vm1, %v5263_v47 }
 0x69e   : > { %v5422_v37 = vpop.f32.mrf.mxu1 }
 0x69f   : > { %v9552_v17 = vadd.f32 %v5422_v37, %v9441_v33 }
 0x6a1   : > { %10528 = vst [vmem:[#allocation46_spill] sm:$0xff] %v9552_v17  ;;  %6495 = vmatmul.msk.f32.gmra.mxu1 %vm204_vm1, %v9433_v14 }
 0x6a6   : > { %v5425_v50 = vpop.f32.mrf.mxu1 }
 0x6a7   : > { %v9557_v54 = vadd.f32 %v5425_v50, %v9451_v22  ;;  %v9577_v50 = vpop.f32.mrf.mxu0 }
 0x6a9   : > { %6496 = vmatmul.msk.f32.gmra.mxu1 %vm204_vm1, %v9444_v34 }
 0x6ae   : > { %v5428_v41 = vpop.f32.mrf.mxu1 }
 0x6af   : > { %v9562_v31 = vadd.f32 %v5428_v41, %v9456_v26  ;;  %v9575_v26 = vpop.f32.mrf.mxu3  ;;  %v4618_v41 = vpop.f32.mrf.mxu2 }
 0x6b1   : > { %6497 = vmatmul.msk.f32.gmra.mxu1 %vm204_vm1, %v5266_v32 }
 0x6b6   : > { %v5431_v42 = vpop.f32.mrf.mxu1 }
 0x6b7   : > { %v9566_v33 = vadd.f32 %v5431_v42, %v9460_v6  ;;  %v9582_v32 = vpop.f32.mrf.mxu3 }
 0x6b9   : > { %6498 = vmatmul.msk.f32.gmra.mxu1 %vm204_vm1, %v5267_v25  ;;  %v9587_v25 = vpop.f32.mrf.mxu0 }
 0x6be   : > { %v5434_v14 = vpop.f32.mrf.mxu1 }
 0x6bf   : > { %v9570_v22 = vadd.f32 %v5434_v14, %v9464_v29  ;;  %v4621_v14 = vpop.f32.mrf.mxu2 }
 0x6c6   : > { %v5437_v34 = vpop.f32.mrf.mxu1 }
 0x6c7   : > { %v9573_v47 = vadd.f32 %v5437_v34, %v9468_v55  ;;  %v9591_v34 = vadd.f32 %v9514_v2, %v9317_v36  ;;  %v9612_v36 = vadd.f32 %v9520_v51, %v9339_v27  ;;  %v9628_v27 = vadd.f32 %v9526_v48, %v9361_v62 }
 0x6c9   : > { %10529 = vst [vmem:[#allocation53_spill] sm:$0xff] %v9591_v34  ;;  %v5515_v61 = vsel %vm204_vm1, %v9591_v34, 0.0 }
 0x6ca   : > { %10531 = vst [vmem:[#allocation50_spill] sm:$0xff] %v9612_v36 }
 0x6cb   : > { %10533 = vst [vmem:[#allocation60_spill] sm:$0xff] %v9628_v27 }
 0x6ce   : > { %v5440_v37 = vpop.f32.mrf.mxu1 }
 0x6cf   : > { %v9580_v6 = vadd.f32 %v5440_v37, %v9474_v7  ;;  %v9596_v7 = vpop.f32.mrf.mxu3  ;;  %v9600_v37 = vadd.f32 %v9511_v53, %v9306_v58 }
 0x6d1   : > { %v5514_v2 = vsel %vm204_vm1, %v9600_v37, 0.0 }
 0x6d2   : > { %v5516_v53 = vadd.f32 %v5515_v61, %v5514_v2  ;;  %v5523_v61 = vsel %vm204_vm1, %v9628_v27, 0.0  ;;  %v9640_v2 = vadd.f32 %v9532_v18, %v9385_v59  ;;  %v5531_v59 = vsel %vm204_vm1, %v9540_v19, 0.0 }
 0x6d4   : > { %10535 = vst [vmem:[#allocation34_spill] sm:$0xff] %v9640_v2 }
 0x6d6   : > { %v5443_v42 = vpop.f32.mrf.mxu1 }
 0x6d7   : > { %v9585_v29 = vadd.f32 %v5443_v42, %v9479_v0  ;;  %v9604_v0 = vadd.f32 %v9517_v9, %v9328_v24  ;;  %v9606_v42 = vpop.f32.mrf.mxu0  ;;  %v9620_v24 = vadd.f32 %v9523_v20, %v9350_v4  ;;  %v4902_v4 = vpop.f32.mrf.mxu3 }
 0x6d9   : > { %10530 = vst [vmem:[#allocation58_spill] sm:$0xff] %v9604_v0  ;;  %v5517_v58 = vsel %vm204_vm1, %v9604_v0, 0.0  ;;  %v5521_v34 = vsel %vm204_vm1, %v9620_v24, 0.0  ;;  %v9634_v0 = vadd.f32 %v9529_v1, %v9374_v30  ;;  %v5527_v30 = vsel %vm204_vm1, %v9640_v2, 0.0 }
 0x6da   : > { %10532 = vst [vmem:[#allocation52_spill] sm:$0xff] %v9620_v24  ;;  %v5518_v51 = vadd.f32 %v5517_v58, %v5516_v53 }
 0x6db   : > { %10534 = vst [vmem:[#allocation67_spill] sm:$0xff] %v9634_v0  ;;  %v5525_v48 = vsel %vm204_vm1, %v9634_v0, 0.0 }
 0x6de   : > { %v5446_v55 = vpop.f32.mrf.mxu1 }
 0x6df   : > { %v9594_v13 = vadd.f32 %v5446_v55, %v9484_v35  ;;  %v4624_v35 = vpop.f32.mrf.mxu2  ;;  %v5519_v55 = vsel %vm204_vm1, %v9612_v36, 0.0  ;;  %v9642_v62 = vpop.f32.mrf.mxu0 }
 0x6e0   : > { %v5520_v20 = vadd.f32 %v5519_v55, %v5518_v51  ;;  %v5529_v55 = vsel %vm204_vm1, %v9536_v57, 0.0  ;;  %v4905_v18 = vpop.f32.mrf.mxu3 }
 0x6e2   : > { %v5522_v36 = vadd.f32 %v5521_v34, %v5520_v20  ;;  %v5533_v20 = vsel %vm204_vm1, %v9544_v63, 0.0 }
 0x6e4   : > { %v5524_v53 = vadd.f32 %v5523_v61, %v5522_v36  ;;  %v5535_v61 = vsel %vm204_vm1, %v9548_v16, 0.0  ;;  %v5541_v16 = vsel %vm204_vm1, %v9562_v31, 0.0 }
 0x6e6   : > { %v9622_v9 = vpop.f32.mrf.mxu1  ;;  %v5526_v1 = vadd.f32 %v5525_v48, %v5524_v53  ;;  %v5537_v53 = vsel %vm204_vm1, %v9552_v17, 0.0  ;;  %v4393_v17 = vadd.f32 %v9482_v5, %v9214_v52  ;;  %v4395_v52 = vadd.f32 %v9490_v56, %v9234_v10 }
 0x6e7   : > { %v4627_v58 = vpop.f32.mrf.mxu2  ;;  %v5183_v36 = vpop.f32.mrf.mxu0  ;;  %v5547_v5 = vsel %vm204_vm1, %v9573_v47, 0.0 }
 0x6e8   : > { %v5528_v51 = vadd.f32 %v5527_v30, %v5526_v1  ;;  %v4391_v30 = vadd.f32 %v9471_v60, %v9194_v44  ;;  %v5543_v44 = vsel %vm204_vm1, %v9566_v33, 0.0 }
 0x6ea   : > { %v5530_v34 = vadd.f32 %v5529_v55, %v5528_v51  ;;  %v5539_v55 = vsel %vm204_vm1, %v9557_v54, 0.0  ;;  %v4669_v51 = vadd.f32 %v4615_v45, %v4391_v30 }
 0x6ec   : > { %v5532_v0 = vadd.f32 %v5531_v59, %v5530_v34  ;;  %v4392_v59 = vadd.f32 %v9477_v12, %v9204_v46  ;;  %v4947_v60 = vadd.f32 %v9575_v26, %v4669_v51  ;;  %v4394_v46 = vadd.f32 %v9487_v28, %v9224_v43 }
 0x6ed   : > { %v4673_v28 = vadd.f32 %v4627_v58, %v4395_v52  ;;  %v4396_v26 = vadd.f32 %v9493_v40, %v9244_v39  ;;  %v5553_v39 = vsel %vm204_vm1, %v9594_v13, 0.0 }
 0x6ee   : > { %v5452_v24 = vpop.f32.mrf.mxu1  ;;  %v5534_v48 = vadd.f32 %v5533_v20, %v5532_v0  ;;  %v4670_v63 = vadd.f32 %v4618_v41, %v4392_v59  ;;  %v4908_v0 = vpop.f32.mrf.mxu3  ;;  %v5545_v41 = vsel %vm204_vm1, %v9570_v22, 0.0 }
 0x6ef   : > { %v4630_v2 = vpop.f32.mrf.mxu2  ;;  %v5186_v12 = vpop.f32.mrf.mxu0  ;;  %v4951_v51 = vadd.f32 %v4905_v18, %v4673_v28 }
 0x6f0   : > { %v5536_v1 = vadd.f32 %v5535_v61, %v5534_v48  ;;  %v4671_v61 = vadd.f32 %v4621_v14, %v4393_v17  ;;  %v4948_v48 = vadd.f32 %v9582_v32, %v4670_v63  ;;  %v5225_v17 = vadd.f32 %v9577_v50, %v4947_v60 }
 0x6f1   : > { %v5549_v63 = vsel %vm204_vm1, %v9580_v6, 0.0  ;;  %v4674_v56 = vadd.f32 %v4630_v2, %v4396_v26 }
 0x6f2   : > { %v5538_v34 = vadd.f32 %v5537_v53, %v5536_v1  ;;  %v4672_v1 = vadd.f32 %v4624_v35, %v4394_v46  ;;  %v4949_v43 = vadd.f32 %v9596_v7, %v4671_v61  ;;  %v5226_v14 = vadd.f32 %v9587_v25, %v4948_v48 }
 0x6f3   : > { %v9690_v50 = vadd.f32 %v9622_v9, %v5225_v17  ;;  %v4397_v25 = vadd.f32 %v9496_v8, %v9254_v38  ;;  %v4952_v2 = vadd.f32 %v4908_v0, %v4674_v56  ;;  %v5229_v61 = vadd.f32 %v5183_v36, %v4951_v51 }
 0x6f4   : > { %v5540_v20 = vadd.f32 %v5539_v55, %v5538_v34  ;;  %v4950_v10 = vadd.f32 %v4902_v4, %v4672_v1  ;;  %v5551_v55 = vsel %vm204_vm1, %v9585_v29, 0.0  ;;  %v9694_v40 = vadd.f32 %v5452_v24, %v5226_v14 }
 0x6f5   : > { %v5227_v59 = vadd.f32 %v9606_v42, %v4949_v43  ;;  %v5555_v9 = vsel %vm204_vm1, %v9690_v50, 0.0 }
 0x6f6   : > { %v5455_v27 = vpop.f32.mrf.mxu1  ;;  %v5542_v45 = vadd.f32 %v5541_v16, %v5540_v20  ;;  %v4911_v7 = vpop.f32.mrf.mxu3  ;;  %v5228_v18 = vadd.f32 %v9642_v62, %v4950_v10  ;;  %v5557_v24 = vsel %vm204_vm1, %v9694_v40, 0.0 }
 0x6f7   : > { %v4633_v53 = vpop.f32.mrf.mxu2  ;;  %v5189_v34 = vpop.f32.mrf.mxu0  ;;  %v9701_v20 = vadd.f32 %v5455_v27, %v5227_v59  ;;  %v5230_v27 = vadd.f32 %v5186_v12, %v4952_v2  ;;  %v4400_v2 = vadd.f32 %v9505_v3, %v9284_v11 }
 0x6f8   : > { %v5544_v30 = vadd.f32 %v5543_v44, %v5542_v45  ;;  %v4675_v45 = vadd.f32 %v4633_v53, %v4397_v25 }
 0x6f9   : > { %v5559_v0 = vsel %vm204_vm1, %v9701_v20, 0.0 }
 0x6fa   : > { %v5546_v16 = vadd.f32 %v5545_v41, %v5544_v30  ;;  %v4953_v48 = vadd.f32 %v4911_v7, %v4675_v45 }
 0x6fc   : > { %v5548_v32 = vadd.f32 %v5547_v5, %v5546_v16  ;;  %v5231_v12 = vadd.f32 %v5189_v34, %v4953_v48 }
 0x6fe   : > { %v5458_v19 = vpop.f32.mrf.mxu1  ;;  %v5550_v58 = vadd.f32 %v5549_v63, %v5548_v32  ;;  %v4914_v30 = vpop.f32.mrf.mxu3 }
 0x6ff   : > { %v4636_v44 = vpop.f32.mrf.mxu2  ;;  %v9706_v42 = vadd.f32 %v5458_v19, %v5228_v18  ;;  %v4398_v19 = vadd.f32 %v9499_v49, %v9264_v23  ;;  %v5192_v5 = vpop.f32.mrf.mxu0  ;;  %v4399_v23 = vadd.f32 %v9502_v21, %v9274_v15 }
 0x700   : > { %v5552_v4 = vadd.f32 %v5551_v55, %v5550_v58 }
 0x701   : > { %v5561_v62 = vsel %vm204_vm1, %v9706_v42, 0.0  ;;  %v4676_v16 = vadd.f32 %v4636_v44, %v4398_v19 }
 0x702   : > { %v5554_v60 = vadd.f32 %v5553_v39, %v5552_v4 }
 0x703   : > { %v4954_v14 = vadd.f32 %v4914_v30, %v4676_v16 }
 0x704   : > { %v5556_v38 = vadd.f32 %v5555_v9, %v5554_v60 }
 0x705   : > { %v5232_v55 = vadd.f32 %v5192_v5, %v4954_v14 }
 0x706   : > { %v5461_v35 = vpop.f32.mrf.mxu1  ;;  %v5558_v41 = vadd.f32 %v5557_v24, %v5556_v38  ;;  %v4917_v49 = vpop.f32.mrf.mxu3  ;;  %v10536_v38 = vld [vmem:[#allocation61_spill] sm:$0xff] }
 0x707   : > { %v9710_v46 = vadd.f32 %v5461_v35, %v5229_v61  ;;  %v4639_v43 = vpop.f32.mrf.mxu2  ;;  %v5195_v51 = vpop.f32.mrf.mxu0 }
 0x708   : > { %v5560_v1 = vadd.f32 %v5559_v0, %v5558_v41  ;;  %v4677_v56 = vadd.f32 %v4639_v43, %v4399_v23 }
 0x709   : > { %v5563_v36 = vsel %vm204_vm1, %v9710_v46, 0.0 }
 0x70a   : > { %v5562_v52 = vadd.f32 %v5561_v62, %v5560_v1  ;;  %v4955_v59 = vadd.f32 %v4917_v49, %v4677_v56 }
 0x70c   : > { %v5564_v28 = vadd.f32 %v5563_v36, %v5562_v52  ;;  %v5233_v9 = vadd.f32 %v5195_v51, %v4955_v59 }
 0x70e   : > { %v5464_v8 = vpop.f32.mrf.mxu1  ;;  %v4920_v18 = vpop.f32.mrf.mxu3 }
 0x70f   : > { %v5508_v53 = vadd.f32 %v5464_v8, %v5230_v27  ;;  %v4642_v39 = vpop.f32.mrf.mxu2  ;;  %v5198_v45 = vpop.f32.mrf.mxu0  ;;  %v10537_v8 = vld [vmem:[#allocation33_spill] sm:$0xff] }
 0x710   : > { %v4678_v34 = vadd.f32 %v4642_v39, %v4400_v2  ;;  %v4401_v0 = vadd.f32 %v10537_v8, %v10536_v38 }
 0x711   : > { %v5565_v17 = vsel %vm204_vm1, %v5508_v53, 0.0 }
 0x712   : > { %v5566_v32 = vadd.f32 %v5565_v17, %v5564_v28  ;;  %v4956_v15 = vadd.f32 %v4920_v18, %v4678_v34 }
 0x714   : > { %v5234_v41 = vadd.f32 %v5198_v45, %v4956_v15 }
 0x716   : > { %v5467_v26 = vpop.f32.mrf.mxu1  ;;  %v4923_v30 = vpop.f32.mrf.mxu3 }
 0x717   : > { %v5509_v63 = vadd.f32 %v5467_v26, %v5231_v12  ;;  %v4645_v24 = vpop.f32.mrf.mxu2  ;;  %v5201_v19 = vpop.f32.mrf.mxu0 }
 0x718   : > { %v4679_v27 = vadd.f32 %v4645_v24, %v4401_v0 }
 0x719   : > { %v5567_v35 = vsel %vm204_vm1, %v5509_v63, 0.0 }
 0x71a   : > { %v5568_v10 = vadd.f32 %v5567_v35, %v5566_v32  ;;  %v4957_v11 = vadd.f32 %v4923_v30, %v4679_v27  ;;  %v10538_v35 = vld [vmem:[#allocation57_spill] sm:$0xff] }
 0x71c   : > { %v5235_v36 = vadd.f32 %v5201_v19, %v4957_v11 }
 0x71e   : > { %v5470_v7 = vpop.f32.mrf.mxu1 }
 0x71f   : > { %v5510_v58 = vadd.f32 %v5470_v7, %v5232_v55 }
 0x721   : > { %v5569_v25 = vsel %vm204_vm1, %v5510_v58, 0.0 }
 0x722   : > { %v5570_v4 = vadd.f32 %v5569_v25, %v5568_v10  ;;  %v10541_v25 = vld [vmem:[#allocation50_spill] sm:$0xff] }
 0x726   : > { %v5473_v44 = vpop.f32.mrf.mxu1 }
 0x727   : > { %v5511_v60 = vadd.f32 %v5473_v44, %v5233_v9  ;;  %v10543_v44 = vld [vmem:[#allocation60_spill] sm:$0xff] }
 0x729   : > { %v5571_v21 = vsel %vm204_vm1, %v5511_v60, 0.0 }
 0x72a   : > { %v5572_v61 = vadd.f32 %v5571_v21, %v5570_v4 }
 0x72e   : > { %v5476_v48 = vpop.f32.mrf.mxu1 }
 0x72f   : > { %v5512_v62 = vadd.f32 %v5476_v48, %v5234_v41  ;;  %v10545_v41 = vld [vmem:[#allocation34_spill] sm:$0xff] }
 0x731   : > { %v5573_v3 = vsel %vm204_vm1, %v5512_v62, 0.0 }
 0x732   : > { %v5574_v1 = vadd.f32 %v5573_v3, %v5572_v61  ;;  %v10544_v61 = vld [vmem:[#allocation67_spill] sm:$0xff] }
 0x736   : > { %v5479_v52 = vpop.f32.mrf.mxu1 }
 0x737   : > { %v5513_v5 = vadd.f32 %v5479_v52, %v5235_v36  ;;  %v10546_v52 = vld [vmem:[#allocation51_spill] sm:$0xff] }
 0x739   : > { %v5575_v16 = vsel %vm204_vm1, %v5513_v5, 0.0 }
 0x73a   : > { %v5576_v17 = vadd.f32 %v5575_v16, %v5574_v1 }
 0x73c   : > { %v5577_v12 = vrot.slane %v5576_v17, 4 }
 0x73e   : > { %v5578_v43 = vadd.f32 %v5577_v12, %v5576_v17 }
 0x740   : > { %v5579_v28 = vrot.slane %v5578_v43, 2 }
 0x742   : > { %v5580_v26 = vadd.f32 %v5579_v28, %v5578_v43  ;;  %v10547_v43 = vld [vmem:[#allocation54_spill] sm:$0xff] }
 0x744   : > { %v5581_v32 = vrot.slane %v5580_v26, 1 }
 0x746   : > { %v5582_v14 = vadd.f32 %v5581_v32, %v5580_v26 }
 0x748   : > { %v9731_v10 = vmul.f32 %v5582_v14, %v10538_v35  ;;  %v10548_v14 = vld [vmem:[#allocation48_spill] sm:$0xff] }
 0x74a   : > { %v9734_v23 = vsub.f32 %v5508_v53, %v9731_v10  ;;  %v9737_v49 = vsub.f32 %v5509_v63, %v9731_v10  ;;  %v9740_v56 = vsub.f32 %v5510_v58, %v9731_v10  ;;  %v9743_v55 = vsub.f32 %v5511_v60, %v9731_v10  ;;  %v10539_v53 = vld [vmem:[#allocation53_spill] sm:$0xff]  ;;  %v10540_v58 = vld [vmem:[#allocation58_spill] sm:$0xff] }
 0x74b   : > { %v9746_v7 = vsub.f32 %v5512_v62, %v9731_v10  ;;  %v9749_v51 = vsub.f32 %v5513_v5, %v9731_v10  ;;  %v9753_v39 = vsub.f32 %v9600_v37, %v9731_v10  ;;  %v9757_v63 = vsub.f32 %v10539_v53, %v9731_v10  ;;  %v10542_v37 = vld [vmem:[#allocation52_spill] sm:$0xff] }
 0x74c   : > { %v9761_v59 = vsub.f32 %v10540_v58, %v9731_v10  ;;  %v9765_v4 = vsub.f32 %v10541_v25, %v9731_v10  ;;  %v9773_v9 = vsub.f32 %v10542_v37, %v9731_v10  ;;  %v9779_v60 = vsub.f32 %v10543_v44, %v9731_v10 }
 0x74d   : > { %v5616_v2 = vmul.f32 %v9753_v39, %v9753_v39  ;;  %v5617_v34 = vmul.f32 %v9757_v63, %v9757_v63  ;;  %v9787_v38 = vsub.f32 %v10544_v61, %v9731_v10  ;;  %v9794_v48 = vsub.f32 %v10545_v41, %v9731_v10 }
 0x74e   : > { %v5618_v18 = vmul.f32 %v9761_v59, %v9761_v59  ;;  %v5619_v15 = vmul.f32 %v9765_v4, %v9765_v4  ;;  %v5620_v8 = vmul.f32 %v9773_v9, %v9773_v9  ;;  %v5621_v62 = vmul.f32 %v9779_v60, %v9779_v60 }
 0x74f   : > { %v5648_v21 = vsel %vm204_vm1, %v5616_v2, 0.0  ;;  %v5649_v45 = vsel %vm204_vm1, %v5617_v34, 0.0  ;;  %v9801_v3 = vsub.f32 %v9536_v57, %v9731_v10  ;;  %v5622_v1 = vmul.f32 %v9787_v38, %v9787_v38  ;;  %v10549_v34 = vld [vmem:[#allocation46_spill] sm:$0xff] }
 0x750   : > { %v5650_v24 = vadd.f32 %v5649_v45, %v5648_v21  ;;  %v5651_v0 = vsel %vm204_vm1, %v5618_v18, 0.0  ;;  %v5653_v30 = vsel %vm204_vm1, %v5619_v15, 0.0  ;;  %v5655_v19 = vsel %vm204_vm1, %v5620_v8, 0.0 }
 0x751   : > { %v9808_v5 = vsub.f32 %v10546_v52, %v9731_v10  ;;  %v5623_v16 = vmul.f32 %v9794_v48, %v9794_v48  ;;  %v5657_v17 = vsel %vm204_vm1, %v5621_v62, 0.0  ;;  %v9815_v57 = vsub.f32 %v10547_v43, %v9731_v10 }
 0x752   : > { %v5652_v27 = vadd.f32 %v5651_v0, %v5650_v24  ;;  %v5624_v28 = vmul.f32 %v9801_v3, %v9801_v3  ;;  %v5659_v26 = vsel %vm204_vm1, %v5622_v1, 0.0  ;;  %v9822_v53 = vsub.f32 %v10548_v14, %v9731_v10 }
 0x753   : > { %v5625_v58 = vmul.f32 %v9808_v5, %v9808_v5  ;;  %v5661_v25 = vsel %vm204_vm1, %v5623_v16, 0.0  ;;  %v9829_v37 = vsub.f32 %v10549_v34, %v9731_v10  ;;  %v5626_v18 = vmul.f32 %v9815_v57, %v9815_v57 }
 0x754   : > { %v5654_v11 = vadd.f32 %v5653_v30, %v5652_v27  ;;  %v5663_v44 = vsel %vm204_vm1, %v5624_v28, 0.0  ;;  %v9836_v21 = vsub.f32 %v9557_v54, %v9731_v10  ;;  %v5627_v45 = vmul.f32 %v9822_v53, %v9822_v53 }
 0x755   : > { %v5665_v24 = vsel %vm204_vm1, %v5625_v58, 0.0  ;;  %v9843_v8 = vsub.f32 %v9562_v31, %v9731_v10  ;;  %v5628_v0 = vmul.f32 %v9829_v37, %v9829_v37  ;;  %v5667_v27 = vsel %vm204_vm1, %v5626_v18, 0.0 }
 0x756   : > { %v5656_v36 = vadd.f32 %v5655_v19, %v5654_v11  ;;  %v9850_v54 = vsub.f32 %v9566_v33, %v9731_v10  ;;  %v5629_v62 = vmul.f32 %v9836_v21, %v9836_v21  ;;  %v5669_v30 = vsel %vm204_vm1, %v5627_v45, 0.0 }
 0x757   : > { %v9857_v31 = vsub.f32 %v9570_v22, %v9731_v10  ;;  %v5630_v1 = vmul.f32 %v9843_v8, %v9843_v8  ;;  %v5671_v19 = vsel %vm204_vm1, %v5628_v0, 0.0  ;;  %v9864_v33 = vsub.f32 %v9573_v47, %v9731_v10 }
 0x758   : > { %v5658_v12 = vadd.f32 %v5657_v17, %v5656_v36  ;;  %v5631_v52 = vmul.f32 %v9850_v54, %v9850_v54  ;;  %v5673_v16 = vsel %vm204_vm1, %v5629_v62, 0.0  ;;  %v9871_v22 = vsub.f32 %v9580_v6, %v9731_v10 }
 0x759   : > { %v5675_v43 = vsel %vm204_vm1, %v5630_v1, 0.0  ;;  %v9878_v47 = vsub.f32 %v9585_v29, %v9731_v10  ;;  %v9885_v6 = vsub.f32 %v9594_v13, %v9731_v10  ;;  %v9892_v29 = vsub.f32 %v9690_v50, %v9731_v10 }
 0x75a   : > { %v5660_v32 = vadd.f32 %v5659_v26, %v5658_v12  ;;  %v5632_v12 = vmul.f32 %v9857_v31, %v9857_v31  ;;  %v5633_v26 = vmul.f32 %v9864_v33, %v9864_v33  ;;  %v5634_v58 = vmul.f32 %v9871_v22, %v9871_v22 }
 0x75b   : > { %v5635_v34 = vmul.f32 %v9878_v47, %v9878_v47  ;;  %v9899_v13 = vsub.f32 %v9694_v40, %v9731_v10  ;;  %v9906_v50 = vsub.f32 %v9701_v20, %v9731_v10  ;;  %v9913_v40 = vsub.f32 %v9706_v42, %v9731_v10 }
 0x75c   : > { %v5662_v2 = vadd.f32 %v5661_v25, %v5660_v32  ;;  %v5677_v32 = vsel %vm204_vm1, %v5631_v52, 0.0  ;;  %v5679_v25 = vsel %vm204_vm1, %v5632_v12, 0.0  ;;  %v5681_v18 = vsel %vm204_vm1, %v5633_v26, 0.0 }
 0x75d   : > { %v5683_v45 = vsel %vm204_vm1, %v5634_v58, 0.0  ;;  %v5685_v0 = vsel %vm204_vm1, %v5635_v34, 0.0  ;;  %v9920_v20 = vsub.f32 %v9710_v46, %v9731_v10  ;;  %v5640_v42 = vmul.f32 %v9913_v40, %v9913_v40 }
 0x75e   : > { %v5664_v15 = vadd.f32 %v5663_v44, %v5662_v2  ;;  %v5642_v46 = vmul.f32 %v9734_v23, %v9734_v23 }
 0x75f   : > { %v5695_v10 = vsel %vm204_vm1, %v5640_v42, 0.0 }
 0x760   : > { %v5666_v61 = vadd.f32 %v5665_v24, %v5664_v15  ;;  %v5636_v15 = vmul.f32 %v9885_v6, %v9885_v6  ;;  %v5699_v58 = vsel %vm204_vm1, %v5642_v46, 0.0 }
 0x762   : > { %v5668_v41 = vadd.f32 %v5667_v27, %v5666_v61  ;;  %v5637_v61 = vmul.f32 %v9892_v29, %v9892_v29  ;;  %v5687_v62 = vsel %vm204_vm1, %v5636_v15, 0.0 }
 0x764   : > { %v5670_v11 = vadd.f32 %v5669_v30, %v5668_v41  ;;  %v5638_v41 = vmul.f32 %v9899_v13, %v9899_v13  ;;  %v5689_v1 = vsel %vm204_vm1, %v5637_v61, 0.0 }
 0x766   : > { %v5672_v36 = vadd.f32 %v5671_v19, %v5670_v11  ;;  %v5639_v11 = vmul.f32 %v9906_v50, %v9906_v50 }
 0x768   : > { %v5674_v17 = vadd.f32 %v5673_v16, %v5672_v36  ;;  %v5691_v36 = vsel %vm204_vm1, %v5638_v41, 0.0  ;;  %v5641_v16 = vmul.f32 %v9920_v20, %v9920_v20 }
 0x76a   : > { %v5676_v28 = vadd.f32 %v5675_v43, %v5674_v17  ;;  %v5693_v17 = vsel %vm204_vm1, %v5639_v11, 0.0  ;;  %v5697_v26 = vsel %vm204_vm1, %v5641_v16, 0.0 }
 0x76c   : > { %v5678_v14 = vadd.f32 %v5677_v32, %v5676_v28  ;;  %v5643_v28 = vmul.f32 %v9737_v49, %v9737_v49 }
 0x76e   : > { %v5680_v2 = vadd.f32 %v5679_v25, %v5678_v14  ;;  %v5644_v14 = vmul.f32 %v9740_v56, %v9740_v56  ;;  %v5701_v34 = vsel %vm204_vm1, %v5643_v28, 0.0 }
 0x770   : > { %v5682_v44 = vadd.f32 %v5681_v18, %v5680_v2  ;;  %v5645_v2 = vmul.f32 %v9743_v55, %v9743_v55  ;;  %v5703_v15 = vsel %vm204_vm1, %v5644_v14, 0.0 }
 0x772   : > { %v5684_v24 = vadd.f32 %v5683_v45, %v5682_v44  ;;  %v5646_v44 = vmul.f32 %v9746_v7, %v9746_v7  ;;  %v5705_v61 = vsel %vm204_vm1, %v5645_v2, 0.0 }
 0x774   : > { %v5686_v27 = vadd.f32 %v5685_v0, %v5684_v24  ;;  %v5647_v24 = vmul.f32 %v9749_v51, %v9749_v51 }
 0x776   : > { %v5688_v30 = vadd.f32 %v5687_v62, %v5686_v27  ;;  %v5707_v27 = vsel %vm204_vm1, %v5646_v44, 0.0  ;;  %v5709_v62 = vsel %vm204_vm1, %v5647_v24, 0.0 }
 0x778   : > { %v5690_v19 = vadd.f32 %v5689_v1, %v5688_v30 }
 0x77a   : > { %v5692_v52 = vadd.f32 %v5691_v36, %v5690_v19 }
 0x77c   : > { %v5694_v12 = vadd.f32 %v5693_v17, %v5692_v52 }
 0x77e   : > { %v5696_v43 = vadd.f32 %v5695_v10, %v5694_v12 }
 0x780   : > { %v5698_v32 = vadd.f32 %v5697_v26, %v5696_v43 }
 0x782   : > { %v5700_v25 = vadd.f32 %v5699_v58, %v5698_v32 }
 0x784   : > { %v5702_v18 = vadd.f32 %v5701_v34, %v5700_v25  ;;  %v10551_v34 = vld [vmem:[#allocation11_spill] sm:$0xff] }
 0x786   : > { %v5704_v45 = vadd.f32 %v5703_v15, %v5702_v18  ;;  %v10552_v18 = vld [vmem:[#allocation5_spill] sm:$0xff] }
 0x788   : > { %v5706_v0 = vadd.f32 %v5705_v61, %v5704_v45  ;;  %v10553_v45 = vld [vmem:[#allocation7_spill] sm:$0xff] }
 0x78a   : > { %v5708_v41 = vadd.f32 %v5707_v27, %v5706_v0  ;;  %v10555_v27 = vld [vmem:[#allocation17_spill] sm:$0xff] }
 0x78c   : > { %v5710_v30 = vadd.f32 %v5709_v62, %v5708_v41  ;;  %v10556_v62 = vld [vmem:[#allocation19_spill] sm:$0xff] }
 0x78e   : > { %v5711_v11 = vrot.slane %v5710_v30, 4 }
 0x790   : > { %v5712_v1 = vadd.f32 %v5711_v11, %v5710_v30  ;;  %v10557_v11 = vld [vmem:[#allocation21_spill] sm:$0xff] }
 0x792   : > { %v5713_v19 = vrot.slane %v5712_v1, 2 }
 0x794   : > { %v5714_v42 = vadd.f32 %v5713_v19, %v5712_v1  ;;  %v10558_v19 = vld [vmem:[#allocation23_spill] sm:$0xff] }
 0x796   : > { %v5715_v36 = vrot.slane %v5714_v42, 1 }
 0x798   : > { %v5716_v52 = vadd.f32 %v5715_v36, %v5714_v42  ;;  %v10559_v36 = vld [vmem:[#allocation25_spill] sm:$0xff] }
 0x79a   : > { %v5717_v16 = vmul.f32 %v5716_v52, %v10538_v35 }
 0x79c   : > { %v5718_v17 = vadd.f32 1e-05, %v5717_v16  ;;  %v10560_v16 = vld [vmem:[#allocation27_spill] sm:$0xff] }
 0x79e   : > { %6518 = vrsqrt.f32 %v5718_v17  ;;  %vm5725_vm9 = vweird.f32 %v5718_v17 }
 0x7a4   : > { %v6519_v12 = vpop.eup %6518 }
 0x7a5   : > { %v5720_v46 = vmul.f32 %v6519_v12, %v5718_v17  ;;  %vm5726_vm8 = vweird.f32 %v6519_v12 }
 0x7a6   : > { %vm5727_vm10 = vmor %vm5725_vm9, %vm5726_vm8 }
 0x7a7   : > { %v5721_v10 = vmul.f32 %v6519_v12, %v5720_v46 }
 0x7a9   : > { %v5722_v43 = vmul.f32 0.5, %v5721_v10  ;;  %v10562_v10 = vld [vmem:[#allocation31_spill] sm:$0xff] }
 0x7ab   : > { %v5723_v28 = vsub.f32 1.5, %v5722_v43 }
 0x7ad   : > { %v5724_v26 = vmul.f32 %v6519_v12, %v5723_v28  ;;  %v10563_v28 = vld [vmem:[#allocation32_spill] sm:$0xff] }
 0x7af   : > { %v9952_v32 = vsel %vm5727_vm10, %v6519_v12, %v5724_v26  ;;  %v10561_v12 = vld [vmem:[#allocation29_spill] sm:$0xff] }
 0x7b0   : > { %v5729_v14 = vmul.f32 %v9952_v32, %v9753_v39  ;;  %v5730_v35 = vmul.f32 %v9952_v32, %v9757_v63  ;;  %v5731_v58 = vmul.f32 %v9952_v32, %v9761_v59  ;;  %v5732_v25 = vmul.f32 %v9952_v32, %v9765_v4  ;;  %v10550_v59 = vld [vmem:[#allocation9_spill] sm:$0xff] }
 0x7b1   : > { %v5733_v2 = vmul.f32 %v9952_v32, %v9773_v9  ;;  %v5734_v39 = vmul.f32 %v9952_v32, %v9779_v60  ;;  %v5735_v63 = vmul.f32 %v9952_v32, %v9787_v38  ;;  %v5736_v15 = vmul.f32 %v9952_v32, %v9794_v48  ;;  %v10554_v60 = vld [vmem:[#allocation15_spill] sm:$0xff] }
 0x7b2   : > { %v5761_v4 = vadd.f32 %v5729_v14, %v10550_v59  ;;  %v5762_v9 = vadd.f32 %v5730_v35, %v10551_v34  ;;  %v5763_v44 = vadd.f32 %v5731_v58, %v10552_v18  ;;  %v5764_v24 = vadd.f32 %v5732_v25, %v10553_v45  ;;  %v10564_v14 = vld [vmem:[#allocation3_spill] sm:$0xff]  ;;  %v10565_v58 = vld [vmem:[#allocation4_spill] sm:$0xff]  ;;  %v10571_v45 = vld [vmem:[#allocation14_spill] sm:$0xff] }
 0x7b3   : > { %v5737_v61 = vmul.f32 %v9952_v32, %v9801_v3  ;;  %v5765_v0 = vadd.f32 %v5733_v2, %v10554_v60  ;;  %v5738_v38 = vmul.f32 %v9952_v32, %v9808_v5  ;;  %v5766_v41 = vadd.f32 %v5734_v39, %v10555_v27  ;;  %v10566_v2 = vld [vmem:[#allocation6_spill] sm:$0xff]  ;;  %v10574_v27 = vld [vmem:[#allocation20_spill] sm:$0xff] }
 0x7b4   : > { %5793 = vst.msk [vmem:[%s9969_s5] sm:$0xff] %vm204_vm1, %v5761_v4  ;;  %v5739_v48 = vmul.f32 %v9952_v32, %v9815_v57  ;;  %v5767_v30 = vadd.f32 %v5735_v63, %v10556_v62  ;;  %v5740_v3 = vmul.f32 %v9952_v32, %v9822_v53  ;;  %v5768_v1 = vadd.f32 %v5736_v15, %v10557_v11  ;;  %v10567_v63 = vld [vmem:[#allocation8_spill] sm:$0xff]  ;;  %v10568_v4 = vld [vmem:[#allocation10_spill] sm:$0xff] }
 0x7b5   : > { %5794 = vst.msk [vmem:[%s9969_s5 + $0x8] sm:$0xff] %vm204_vm1, %v5762_v9  ;;  %v5741_v5 = vmul.f32 %v9952_v32, %v9829_v37  ;;  %v5769_v42 = vadd.f32 %v5737_v61, %v10558_v19  ;;  %v5742_v57 = vmul.f32 %v9952_v32, %v9836_v21  ;;  %v5770_v52 = vadd.f32 %v5738_v38, %v10559_v36  ;;  %v10569_v9 = vld [vmem:[#allocation12_spill] sm:$0xff]  ;;  %v10579_v19 = vld [vmem:[#allocation30_spill] sm:$0xff]  ;;  %v10581_v36 = vld [vmem:[#allocation69_spill] sm:$0xff] }
 0x7b6   : > { %5795 = vst.msk [vmem:[%s9969_s5 + $0x10] sm:$0xff] %vm204_vm1, %v5763_v44  ;;  %v5743_v53 = vmul.f32 %v9952_v32, %v9843_v8  ;;  %v5771_v17 = vadd.f32 %v5739_v48, %v10560_v16  ;;  %v5744_v37 = vmul.f32 %v9952_v32, %v9850_v54  ;;  %v5772_v46 = vadd.f32 %v5740_v3, %v10561_v12  ;;  %v10570_v44 = vld [vmem:[#allocation13_spill] sm:$0xff]  ;;  %v10572_v61 = vld [vmem:[#allocation16_spill] sm:$0xff]  ;;  %v10575_v48 = vld [vmem:[#allocation22_spill] sm:$0xff] }
 0x7b7   : > { %5796 = vst.msk [vmem:[%s9969_s5 + $0x18] sm:$0xff] %vm204_vm1, %v5764_v24  ;;  %v5745_v21 = vmul.f32 %v9952_v32, %v9857_v31  ;;  %v5773_v43 = vadd.f32 %v5741_v5, %v10562_v10  ;;  %v5746_v8 = vmul.f32 %v9952_v32, %v9864_v33  ;;  %v5774_v26 = vadd.f32 %v5742_v57, %v10563_v28 }
 0x7b8   : > { %5797 = vst.msk [vmem:[%s9969_s5 + $0x20] sm:$0xff] %vm204_vm1, %v5765_v0  ;;  %v5747_v54 = vmul.f32 %v9952_v32, %v9871_v22  ;;  %v5775_v35 = vadd.f32 %v5743_v53, %v10564_v14  ;;  %v5748_v31 = vmul.f32 %v9952_v32, %v9878_v47  ;;  %v5776_v25 = vadd.f32 %v5744_v37, %v10565_v58  ;;  %v10573_v0 = vld [vmem:[#allocation18_spill] sm:$0xff] }
 0x7b9   : > { %5798 = vst.msk [vmem:[%s9969_s5 + $0x28] sm:$0xff] %vm204_vm1, %v5766_v41  ;;  %v5749_v33 = vmul.f32 %v9952_v32, %v9885_v6  ;;  %v5777_v39 = vadd.f32 %v5745_v21, %v10566_v2  ;;  %v5750_v22 = vmul.f32 %v9952_v32, %v9892_v29  ;;  %v5778_v59 = vadd.f32 %v5746_v8, %v10567_v63 }
 0x7ba   : > { %5799 = vst.msk [vmem:[%s9969_s5 + $0x30] sm:$0xff] %vm204_vm1, %v5767_v30  ;;  %v5751_v47 = vmul.f32 %v9952_v32, %v9899_v13  ;;  %v5779_v34 = vadd.f32 %v5747_v54, %v10568_v4  ;;  %v5752_v6 = vmul.f32 %v9952_v32, %v9906_v50  ;;  %v5780_v18 = vadd.f32 %v5748_v31, %v10569_v9  ;;  %v10576_v30 = vld [vmem:[#allocation24_spill] sm:$0xff] }
 0x7bb   : > { %5800 = vst.msk [vmem:[%s9969_s5 + $0x38] sm:$0xff] %vm204_vm1, %v5768_v1  ;;  %v5753_v29 = vmul.f32 %v9952_v32, %v9913_v40  ;;  %v5781_v15 = vadd.f32 %v5749_v33, %v10570_v44  ;;  %v5754_v13 = vmul.f32 %v9952_v32, %v9920_v20  ;;  %v5782_v24 = vadd.f32 %v5750_v22, %v10571_v45  ;;  %v10578_v1 = vld [vmem:[#allocation28_spill] sm:$0xff] }
 0x7bc   : > { %5801 = vst.msk [vmem:[%s9969_s5 + $0x40] sm:$0xff] %vm204_vm1, %v5769_v42  ;;  %v5755_v50 = vmul.f32 %v9952_v32, %v9734_v23  ;;  %v5783_v60 = vadd.f32 %v5751_v47, %v10572_v61  ;;  %v5756_v40 = vmul.f32 %v9952_v32, %v9737_v49  ;;  %v5784_v38 = vadd.f32 %v5752_v6, %v10573_v0 }
 0x7bd   : > { %5802 = vst.msk [vmem:[%s9969_s5 + $0x48] sm:$0xff] %vm204_vm1, %v5770_v52  ;;  %v5757_v20 = vmul.f32 %v9952_v32, %v9740_v56  ;;  %v5785_v41 = vadd.f32 %v5753_v29, %v10574_v27  ;;  %v5758_v23 = vmul.f32 %v9952_v32, %v9743_v55  ;;  %v5786_v49 = vadd.f32 %v5754_v13, %v10575_v48  ;;  %v10577_v55 = vld [vmem:[#allocation26_spill] sm:$0xff] }
 0x7be   : > { %5803 = vst.msk [vmem:[%s9969_s5 + $0x50] sm:$0xff] %vm204_vm1, %v5771_v17  ;;  %v5759_v62 = vmul.f32 %v9952_v32, %v9746_v7  ;;  %v5787_v56 = vadd.f32 %v5755_v50, %v10576_v30  ;;  %v5760_v3 = vmul.f32 %v9952_v32, %v9749_v51  ;;  %v5788_v11 = vadd.f32 %v5756_v40, %v10577_v55  ;;  %v10580_v7 = vld [vmem:[#allocation68_spill] sm:$0xff] }
 0x7bf   : > { %5804 = vst.msk [vmem:[%s9969_s5 + $0x58] sm:$0xff] %vm204_vm1, %v5772_v46  ;;  %v5789_v5 = vadd.f32 %v5757_v20, %v10578_v1  ;;  %v5790_v42 = vadd.f32 %v5758_v23, %v10579_v19 }
 0x7c0   : > { %5805 = vst.msk [vmem:[%s9969_s5 + $0x60] sm:$0xff] %vm204_vm1, %v5773_v43  ;;  %v5791_v57 = vadd.f32 %v5759_v62, %v10580_v7  ;;  %v5792_v52 = vadd.f32 %v5760_v3, %v10581_v36 }
 0x7c1   : > { %5806 = vst.msk [vmem:[%s9969_s5 + $0x68] sm:$0xff] %vm204_vm1, %v5774_v26 }
 0x7c2   : > { %5807 = vst.msk [vmem:[%s9969_s5 + $0x70] sm:$0xff] %vm204_vm1, %v5775_v35 }
 0x7c3   : > { %5808 = vst.msk [vmem:[%s9969_s5 + $0x78] sm:$0xff] %vm204_vm1, %v5776_v25 }
 0x7c4   : > { %5809 = vst.msk [vmem:[%s9969_s5 + $0x80] sm:$0xff] %vm204_vm1, %v5777_v39 }
 0x7c5   : > { %5810 = vst.msk [vmem:[%s9969_s5 + $0x88] sm:$0xff] %vm204_vm1, %v5778_v59 }
 0x7c6   : > { %5811 = vst.msk [vmem:[%s9969_s5 + $0x90] sm:$0xff] %vm204_vm1, %v5779_v34 }
 0x7c7   : > { %5812 = vst.msk [vmem:[%s9969_s5 + $0x98] sm:$0xff] %vm204_vm1, %v5780_v18 }
 0x7c8   : > { %5813 = vst.msk [vmem:[%s9969_s5 + $0xa0] sm:$0xff] %vm204_vm1, %v5781_v15 }
 0x7c9   : > { %5814 = vst.msk [vmem:[%s9969_s5 + $0xa8] sm:$0xff] %vm204_vm1, %v5782_v24 }
 0x7ca   : > { %5815 = vst.msk [vmem:[%s9969_s5 + $0xb0] sm:$0xff] %vm204_vm1, %v5783_v60 }
 0x7cb   : > { %5816 = vst.msk [vmem:[%s9969_s5 + $0xb8] sm:$0xff] %vm204_vm1, %v5784_v38 }
 0x7cc   : > { %5817 = vst.msk [vmem:[%s9969_s5 + $0xc0] sm:$0xff] %vm204_vm1, %v5785_v41 }
 0x7cd   : > { %5818 = vst.msk [vmem:[%s9969_s5 + $0xc8] sm:$0xff] %vm204_vm1, %v5786_v49 }
 0x7ce   : > { %5819 = vst.msk [vmem:[%s9969_s5 + $0xd0] sm:$0xff] %vm204_vm1, %v5787_v56 }
 0x7cf   : > { %5820 = vst.msk [vmem:[%s9969_s5 + $0xd8] sm:$0xff] %vm204_vm1, %v5788_v11 }
 0x7d0   : > { %5821 = vst.msk [vmem:[%s9969_s5 + $0xe0] sm:$0xff] %vm204_vm1, %v5789_v5 }
 0x7d1   : > { %5822 = vst.msk [vmem:[%s9969_s5 + $0xe8] sm:$0xff] %vm204_vm1, %v5790_v42 }
 0x7d2   : > { %5823 = vst.msk [vmem:[%s9969_s5 + $0xf0] sm:$0xff] %vm204_vm1, %v5791_v57 }
 0x7d3   : > { %5824 = vst.msk [vmem:[%s9969_s5 + $0xf8] sm:$0xff] %vm204_vm1, %v5792_v52 }
 0x7d4 PF: > { %s13_s12 = sadd.s32 1, %s6526_s12  }
 0x7d5   : > { %p10_p4 = scmp.ge.s32.totalorder %s13_s12, 4  }
 0x7d7   :  { %12 = sbr.rel (!%p10_p4) target bundleno = 1 (0x1), region = 81 }

</bundles_post_ra>
